<compile_context>
chip_gen: v5e
topology: v5e:2x2
jax: 0.10.0
libtpu: 0.0.40
codegen_flags: <defaults>
</compile_context>

<pallas_src>
import functools

import jax
import jax.numpy as jnp
import numpy as np
from jax.experimental import pallas as pl
from jax.experimental.pallas import tpu as pltpu

# ----------------------------- configuration --------------------------------
NUM_LAYERS = 2
NUM_BLOCKS = [1, 1]
NUM_CHANNELS = 8
CONV_K0 = 3
CONV_K1 = 3
SKIP_K = 1
PAD0 = 1
PAD1 = 1
NUM_CLASSES = 10
PADDED_CLASSES = 128           # lane-dense logits (zero-padded, sliced later)
BN_EPS = 1e-5

_COMPILER_PARAMS = pltpu.CompilerParams(vmem_limit_bytes=32 * 1024 * 1024)


# --------------------------- in-kernel helpers -------------------------------
def _relu(x):
    return jnp.maximum(x, 0.0)


def _bn_cm(x, gamma, beta):
    """BatchNorm2d forward (training-mode batch stats, biased variance).

    x: [C, M] f32, stats reduced over the lane (pixel) axis.
    """
    mean = jnp.mean(x, axis=1, keepdims=True)
    var = jnp.mean(x * x, axis=1, keepdims=True) - mean * mean
    var = jnp.maximum(var, 0.0)                       # guard one-pass variance
    return (x - mean) * jax.lax.rsqrt(var + BN_EPS) * gamma + beta


def _conv3x3_cm(x_cm, w_taps, masks, ww):
    """3x3 stride-1 'same' conv in channels-on-sublane [C, M] layout.

    x_cm  : [cin, M] f32, flat pixel index m = n*H*W + h*W + w.
    w_taps: [cout, 9*cin] bf16, row order (tap, cin), tap = 3*(di+1)+(dj+1).
    masks : [9, M] f32 0/1, tap t valid iff (h+di, w+dj) is inside the image.

    Each tap: out[m] = x[m + di*W + dj] realised as a circular lane roll
    (pltpu.roll(x, s, a)[..., i] == x[..., (i - s) % M], i.e. jnp.roll) and a
    border mask; wrapped lanes are always border lanes so they are masked.
    The nine masked shifts are stacked on sublanes and contracted in ONE MXU
    dot (K = 9*cin) instead of 9 small dots + 8 f32 accumulation adds.
    """
    cin, m = x_cm.shape
    assert masks.shape == (9, m)
    pieces = []
    for di in (-1, 0, 1):
        for dj in (-1, 0, 1):
            t = 3 * (di + 1) + (dj + 1)
            off = di * ww + dj
            if off == 0:
                pieces.append(x_cm)                   # centre tap: mask == 1
            else:
                shifted = pltpu.roll(x_cm, (-off) % m, 1)
                pieces.append(shifted * masks[t:t + 1, :])
    patches = jnp.concatenate(pieces, axis=0).astype(jnp.bfloat16)   # [9*cin, M]
    return jnp.dot(w_taps, patches, preferred_element_type=jnp.float32)


# ------------------------------ fused kernel ----------------------------------
def _resnet_kernel(x_ref, m16_ref, m8_ref, sel_ref,
                   w0_ref, g0_ref, b0_ref,
                   w1a_ref, g1a_ref, b1a_ref,
                   w1b_ref, g1b_ref, b1b_ref,
                   w2a_ref, g2a_ref, b2a_ref,
                   wsc_ref, gsc_ref, bsc_ref,
                   w2b_ref, g2b_ref, b2b_ref,
                   fcw_ref, fcb_ref,
                   o_ref, *, n, h, w):
    """Whole ResNet forward; every intermediate stays in VMEM as [C, M] f32."""
    m16 = m16_ref[...]                                # [9, n*h*w]
    m8 = m8_ref[...]                                  # [9, n*h*w/4]
    x = x_ref[...]                                    # [C1, n*h*w]

    # ---- stem: conv3x3(s=1, p=1) + BN + ReLU --------------------------------
    a0 = _relu(_bn_cm(_conv3x3_cm(x, w0_ref[...], m16, w),
                      g0_ref[...], b0_ref[...]))

    # ---- layer1 BasicBlock (stride 1, identity shortcut) --------------------
    h1 = _relu(_bn_cm(_conv3x3_cm(a0, w1a_ref[...], m16, w),
                      g1a_ref[...], b1a_ref[...]))
    y1 = _relu(_bn_cm(_conv3x3_cm(h1, w1b_ref[...], m16, w),
                      g1b_ref[...], b1b_ref[...]) + a0)

    # ---- layer2 BasicBlock (stride 2, 1x1-conv shortcut) --------------------
    sel = sel_ref[...]                                # [n*h*w, n*(h/2)*(w/2)]
    # conv1: stride-2 conv == stride-1 conv sampled at even (h, w); sampling is
    # a one-hot matmul (MXU) to avoid lane gathers / strided value reshapes.
    z_full = _conv3x3_cm(y1, w2a_ref[...], m16, w)                    # [C2, M1]
    z = jnp.dot(z_full, sel, preferred_element_type=jnp.float32)      # [C2, M2]
    h2 = _relu(_bn_cm(z, g2a_ref[...], b2a_ref[...]))

    # shortcut: 1x1 stride-2 conv + BN (on the same sampled pixels)
    y1_sub = jnp.dot(y1, sel, preferred_element_type=jnp.float32)     # [C1, M2]
    sc = _bn_cm(jnp.dot(wsc_ref[...], y1_sub.astype(jnp.bfloat16),
                        preferred_element_type=jnp.float32),
                gsc_ref[...], bsc_ref[...])

    # conv2: 3x3, stride 1, pad 1 + BN + residual + ReLU
    y2 = _relu(_bn_cm(_conv3x3_cm(h2, w2b_ref[...], m8, w // 2),
                      g2b_ref[...], b2b_ref[...]) + sc)               # [C2, M2]

    # ---- global average pool + Linear (classes zero-padded to 128 lanes) ----
    ho, wo = h // 2, w // 2
    c2 = y2.shape[0]
    pooled = jnp.mean(y2.T.reshape(n, ho * wo, c2), axis=1)           # [n, C2]
    logits = jnp.dot(pooled, fcw_ref[...], preferred_element_type=jnp.float32)
    o_ref[...] = logits + fcb_ref[...]                                # [n, 128]


def _full_spec(shape):
    nd = len(shape)
    return pl.BlockSpec(shape, lambda: (0,) * nd)


# ------------------------------ JAX wrapper -----------------------------------
@jax.jit
def resnet_forward(prep, x_nchw):
    """Forward pass; `prep` is the (hoisted) output of prepare_params()."""
    n, cin, h, w = x_nchw.shape
    assert cin <= NUM_CHANNELS
    m1 = n * h * w

    # Input layout plumbing only: NCHW -> channels-on-sublane [C1, N*H*W].
    x_cm = jnp.transpose(x_nchw.astype(jnp.float32), (1, 0, 2, 3)).reshape(cin, m1)
    x_cm = jnp.pad(x_cm, ((0, NUM_CHANNELS - cin), (0, 0)))

    args = (x_cm,) + tuple(prep)
    kern = functools.partial(_resnet_kernel, n=n, h=h, w=w)
    logits_pad = pl.pallas_call(
        kern,
        out_shape=jax.ShapeDtypeStruct((n, PADDED_CLASSES), jnp.float32),
        in_specs=[_full_spec(a.shape) for a in args],
        out_specs=_full_spec((n, PADDED_CLASSES)),
        compiler_params=_COMPILER_PARAMS,
    )(*args)
    return logits_pad[:, :NUM_CLASSES]


# ------------------------- one-time parameter prep ----------------------------
def _fold_conv3x3(w_oikk, cin_pad=None):
    """torch [Cout, Cin, 3, 3] -> [Cout, 9*Cin'] bf16, row order (tap, cin)."""
    cout, cin = w_oikk.shape[:2]
    if cin_pad is not None and cin_pad > cin:
        w_oikk = jnp.pad(w_oikk, ((0, 0), (0, cin_pad - cin), (0, 0), (0, 0)))
    w = jnp.transpose(w_oikk, (0, 2, 3, 1))           # [Cout, kh, kw, Cin']
    return w.reshape(cout, -1).astype(jnp.bfloat16)


def _bn_cm_params(gamma, beta, c):
    return (gamma.reshape(c, 1).astype(jnp.float32),
            beta.reshape(c, 1).astype(jnp.float32))


def _tap_masks(n, hh, ww):
    """[9, n*hh*ww] 0/1 masks: tap (di, dj) valid iff (h+di, w+dj) in image."""
    lane = np.arange(n * hh * ww)
    hi = (lane // ww) % hh
    wi = lane % ww
    rows = []
    for di in (-1, 0, 1):
        for dj in (-1, 0, 1):
            rows.append(((hi + di >= 0) & (hi + di < hh) &
                         (wi + dj >= 0) & (wi + dj < ww)).astype(np.float32))
    return jnp.asarray(np.stack(rows, axis=0))


def _stride2_select(n, hh, ww):
    """[n*hh*ww, n*(hh/2)*(ww/2)] one-hot: column (n,ho,wo) selects row (n,2ho,2wo)."""
    ho, wo = hh // 2, ww // 2
    m1, m2 = n * hh * ww, n * ho * wo
    col = np.arange(m2)
    row = (col // (ho * wo)) * hh * ww + 2 * ((col // wo) % ho) * ww + 2 * (col % wo)
    s = np.zeros((m1, m2), np.float32)
    s[row, col] = 1.0
    return jnp.asarray(s)


def prepare_params(params, *, n, h, w):
    """One-time preprocessing of weights + constants (hoisted out of forward)."""
    assert NUM_LAYERS == 2 and NUM_BLOCKS == [1, 1]
    assert CONV_K0 == CONV_K1 == 3 and SKIP_K == 1 and PAD0 == PAD1 == 1
    assert h % 2 == 0 and w % 2 == 0

    c1 = NUM_CHANNELS
    c2 = 2 * c1
    blk1 = params["layers"][0][0]
    blk2 = params["layers"][1][0]

    fcw = jnp.zeros((c2, PADDED_CLASSES), jnp.float32)
    fcw = fcw.at[:, :NUM_CLASSES].set(params["fc_w"].astype(jnp.float32))
    fcb = jnp.zeros((1, PADDED_CLASSES), jnp.float32)
    fcb = fcb.at[:, :NUM_CLASSES].set(
        params["fc_b"].astype(jnp.float32).reshape(1, -1))

    wsc = blk2["short_w"].reshape(c2, c1).astype(jnp.bfloat16)

    return (
        _tap_masks(n, h, w),                                  # m16
        _tap_masks(n, h // 2, w // 2),                        # m8
        _stride2_select(n, h, w),                             # sel
        _fold_conv3x3(params["conv1_w"], cin_pad=c1),
        *_bn_cm_params(params["bn1_gamma"], params["bn1_beta"], c1),
        _fold_conv3x3(blk1["conv1_w"]),
        *_bn_cm_params(blk1["bn1_gamma"], blk1["bn1_beta"], c1),
        _fold_conv3x3(blk1["conv2_w"]),
        *_bn_cm_params(blk1["bn2_gamma"], blk1["bn2_beta"], c1),
        _fold_conv3x3(blk2["conv1_w"]),
        *_bn_cm_params(blk2["bn1_gamma"], blk2["bn1_beta"], c2),
        wsc,
        *_bn_cm_params(blk2["short_gamma"], blk2["short_beta"], c2),
        _fold_conv3x3(blk2["conv2_w"]),
        *_bn_cm_params(blk2["bn2_gamma"], blk2["bn2_beta"], c2),
        fcw, fcb,
    )


# ------------------------------ parameter init --------------------------------
def init_params(key):
    def nxt():
        nonlocal key
        key, sub = jax.random.split(key)
        return sub

    def conv_w(cout, cin, k):
        return 0.1 * jax.random.normal(nxt(), (cout, cin, k, k), jnp.float32)

    def bn(c):
        gamma = 1.0 + 0.05 * jax.random.normal(nxt(), (c,), jnp.float32)
        beta = 0.05 * jax.random.normal(nxt(), (c,), jnp.float32)
        return gamma, beta

    params = {}
    in_planes = NUM_CHANNELS
    params["conv1_w"] = conv_w(NUM_CHANNELS, 3, CONV_K0)
    params["bn1_gamma"], params["bn1_beta"] = bn(NUM_CHANNELS)

    layers = []
    planes = NUM_CHANNELS
    for li in range(NUM_LAYERS):
        if li > 0:
            planes *= 2
        stride0 = 1 if li == 0 else 2
        strides = [stride0] + [1] * (NUM_BLOCKS[li] - 1)
        blocks = []
        for s in strides:
            blk = {"stride": s}
            blk["conv1_w"] = conv_w(planes, in_planes, CONV_K1)
            blk["bn1_gamma"], blk["bn1_beta"] = bn(planes)
            blk["conv2_w"] = conv_w(planes, planes, CONV_K1)
            blk["bn2_gamma"], blk["bn2_beta"] = bn(planes)
            if s != 1 or in_planes != planes:
                blk["short_w"] = conv_w(planes, in_planes, SKIP_K)
                blk["short_gamma"], blk["short_beta"] = bn(planes)
            else:
                blk["short_w"] = None
            in_planes = planes
            blocks.append(blk)
        layers.append(blocks)
    params["layers"] = layers

    final_c = planes
    params["fc_w"] = (
        0.1 * jax.random.normal(nxt(), (final_c, NUM_CLASSES), jnp.float32)
    )  # stored as [C, num_classes] (== PyTorch linear weight.T)
    params["fc_b"] = 0.1 * jax.random.normal(nxt(), (1, NUM_CLASSES), jnp.float32)
    return params


# ---------------------------------- main ---------------------------------------
if __name__ == "__main__":
    key = jax.random.PRNGKey(0)
    k_param, k_x = jax.random.split(key)
    params = init_params(k_param)

    # CIFAR-like small input, NCHW as in PyTorch.
    x = jax.random.normal(k_x, (2, 3, 16, 16), jnp.float32)

    prep = prepare_params(params, n=2, h=16, w=16)    # hoisted, done once
    logits = jax.block_until_ready(resnet_forward(prep, x))

    assert logits.shape == (2, NUM_CLASSES), logits.shape
    assert bool(jnp.all(jnp.isfinite(logits))), "non-finite output"
    print("KERNEL_OK")
</pallas_src>

<mosaic_0001>
module attributes {stable_mosaic.version = 11 : i64} {
  func.func @_resnet_kernel(%arg0: memref<8x512xf32, #tpu.memory_space<vmem>>, %arg1: memref<9x512xf32, #tpu.memory_space<vmem>>, %arg2: memref<9x128xf32, #tpu.memory_space<vmem>>, %arg3: memref<512x128xf32, #tpu.memory_space<vmem>>, %arg4: memref<8x72xbf16, #tpu.memory_space<vmem>>, %arg5: memref<8x1xf32, #tpu.memory_space<vmem>>, %arg6: memref<8x1xf32, #tpu.memory_space<vmem>>, %arg7: memref<8x72xbf16, #tpu.memory_space<vmem>>, %arg8: memref<8x1xf32, #tpu.memory_space<vmem>>, %arg9: memref<8x1xf32, #tpu.memory_space<vmem>>, %arg10: memref<8x72xbf16, #tpu.memory_space<vmem>>, %arg11: memref<8x1xf32, #tpu.memory_space<vmem>>, %arg12: memref<8x1xf32, #tpu.memory_space<vmem>>, %arg13: memref<16x72xbf16, #tpu.memory_space<vmem>>, %arg14: memref<16x1xf32, #tpu.memory_space<vmem>>, %arg15: memref<16x1xf32, #tpu.memory_space<vmem>>, %arg16: memref<16x8xbf16, #tpu.memory_space<vmem>>, %arg17: memref<16x1xf32, #tpu.memory_space<vmem>>, %arg18: memref<16x1xf32, #tpu.memory_space<vmem>>, %arg19: memref<16x144xbf16, #tpu.memory_space<vmem>>, %arg20: memref<16x1xf32, #tpu.memory_space<vmem>>, %arg21: memref<16x1xf32, #tpu.memory_space<vmem>>, %arg22: memref<16x128xf32, #tpu.memory_space<vmem>>, %arg23: memref<1x128xf32, #tpu.memory_space<vmem>>, %arg24: memref<2x128xf32, #tpu.memory_space<vmem>>) attributes {dimension_semantics = [], scalar_prefetch = 0 : i64, scratch_operands = 0 : i64, tpu.core_type = #tpu.core_type<tc>} {
    %c0 = arith.constant 0 : index
    %c0_0 = arith.constant 0 : index
    %0 = vector.load %arg1[%c0, %c0_0] : memref<9x512xf32, #tpu.memory_space<vmem>>, vector<9x512xf32>
    %c0_1 = arith.constant 0 : index
    %c0_2 = arith.constant 0 : index
    %1 = vector.load %arg2[%c0_1, %c0_2] : memref<9x128xf32, #tpu.memory_space<vmem>>, vector<9x128xf32>
    %c0_3 = arith.constant 0 : index
    %c0_4 = arith.constant 0 : index
    %2 = vector.load %arg0[%c0_3, %c0_4] : memref<8x512xf32, #tpu.memory_space<vmem>>, vector<8x512xf32>
    %c0_5 = arith.constant 0 : index
    %c0_6 = arith.constant 0 : index
    %3 = vector.load %arg4[%c0_5, %c0_6] : memref<8x72xbf16, #tpu.memory_space<vmem>>, vector<8x72xbf16>
    %c17_i32 = arith.constant 17 : i32
    %4 = tpu.dynamic_rotate %2 by %c17_i32 dim 1 : vector<8x512xf32>, i32 -> vector<8x512xf32>
    %5 = vector.extract_strided_slice %0 {offsets = [0, 0], sizes = [1, 512], strides = [1, 1]} : vector<9x512xf32> to vector<1x512xf32>
    %6 = vector.broadcast %5 : vector<1x512xf32> to vector<8x512xf32>
    %7 = arith.mulf %4, %6 : vector<8x512xf32>
    %c16_i32 = arith.constant 16 : i32
    %8 = tpu.dynamic_rotate %2 by %c16_i32 dim 1 : vector<8x512xf32>, i32 -> vector<8x512xf32>
    %9 = vector.extract_strided_slice %0 {offsets = [1, 0], sizes = [1, 512], strides = [1, 1]} : vector<9x512xf32> to vector<1x512xf32>
    %10 = vector.broadcast %9 : vector<1x512xf32> to vector<8x512xf32>
    %11 = arith.mulf %8, %10 : vector<8x512xf32>
    %c15_i32 = arith.constant 15 : i32
    %12 = tpu.dynamic_rotate %2 by %c15_i32 dim 1 : vector<8x512xf32>, i32 -> vector<8x512xf32>
    %13 = vector.extract_strided_slice %0 {offsets = [2, 0], sizes = [1, 512], strides = [1, 1]} : vector<9x512xf32> to vector<1x512xf32>
    %14 = vector.broadcast %13 : vector<1x512xf32> to vector<8x512xf32>
    %15 = arith.mulf %12, %14 : vector<8x512xf32>
    %c1_i32 = arith.constant 1 : i32
    %16 = tpu.dynamic_rotate %2 by %c1_i32 dim 1 : vector<8x512xf32>, i32 -> vector<8x512xf32>
    %17 = vector.extract_strided_slice %0 {offsets = [3, 0], sizes = [1, 512], strides = [1, 1]} : vector<9x512xf32> to vector<1x512xf32>
    %18 = vector.broadcast %17 : vector<1x512xf32> to vector<8x512xf32>
    %19 = arith.mulf %16, %18 : vector<8x512xf32>
    %c511_i32 = arith.constant 511 : i32
    %20 = tpu.dynamic_rotate %2 by %c511_i32 dim 1 : vector<8x512xf32>, i32 -> vector<8x512xf32>
    %21 = vector.extract_strided_slice %0 {offsets = [5, 0], sizes = [1, 512], strides = [1, 1]} : vector<9x512xf32> to vector<1x512xf32>
    %22 = vector.broadcast %21 : vector<1x512xf32> to vector<8x512xf32>
    %23 = arith.mulf %20, %22 : vector<8x512xf32>
    %c497_i32 = arith.constant 497 : i32
    %24 = tpu.dynamic_rotate %2 by %c497_i32 dim 1 : vector<8x512xf32>, i32 -> vector<8x512xf32>
    %25 = vector.extract_strided_slice %0 {offsets = [6, 0], sizes = [1, 512], strides = [1, 1]} : vector<9x512xf32> to vector<1x512xf32>
    %26 = vector.broadcast %25 : vector<1x512xf32> to vector<8x512xf32>
    %27 = arith.mulf %24, %26 : vector<8x512xf32>
    %c496_i32 = arith.constant 496 : i32
    %28 = tpu.dynamic_rotate %2 by %c496_i32 dim 1 : vector<8x512xf32>, i32 -> vector<8x512xf32>
    %29 = vector.extract_strided_slice %0 {offsets = [7, 0], sizes = [1, 512], strides = [1, 1]} : vector<9x512xf32> to vector<1x512xf32>
    %30 = vector.broadcast %29 : vector<1x512xf32> to vector<8x512xf32>
    %31 = arith.mulf %28, %30 : vector<8x512xf32>
    %c495_i32 = arith.constant 495 : i32
    %32 = tpu.dynamic_rotate %2 by %c495_i32 dim 1 : vector<8x512xf32>, i32 -> vector<8x512xf32>
    %33 = vector.extract_strided_slice %0 {offsets = [8, 0], sizes = [1, 512], strides = [1, 1]} : vector<9x512xf32> to vector<1x512xf32>
    %34 = vector.broadcast %33 : vector<1x512xf32> to vector<8x512xf32>
    %35 = arith.mulf %32, %34 : vector<8x512xf32>
    %36 = tpu.concatenate %7, %11, %15, %19, %2, %23, %27, %31, %35 in 0 : vector<8x512xf32>, vector<8x512xf32>, vector<8x512xf32>, vector<8x512xf32>, vector<8x512xf32>, vector<8x512xf32>, vector<8x512xf32>, vector<8x512xf32>, vector<8x512xf32> -> vector<72x512xf32>
    %37 = arith.truncf %36 : vector<72x512xf32> to vector<72x512xbf16>
    %cst = arith.constant dense<0.000000e+00> : vector<8x512xf32>
    %38 = tpu.matmul %3, %37, %cst {dimension_numbers = #tpu.dot_dimension_numbers<[1], [0], [0], [1], [0, 0, 1, 1], [], []>} : vector<8x72xbf16>, vector<72x512xbf16>, vector<8x512xf32> -> vector<8x512xf32>
    %c0_7 = arith.constant 0 : index
    %c0_8 = arith.constant 0 : index
    %39 = vector.load %arg5[%c0_7, %c0_8] : memref<8x1xf32, #tpu.memory_space<vmem>>, vector<8x1xf32>
    %c0_9 = arith.constant 0 : index
    %c0_10 = arith.constant 0 : index
    %40 = vector.load %arg6[%c0_9, %c0_10] : memref<8x1xf32, #tpu.memory_space<vmem>>, vector<8x1xf32>
    %cst_11 = arith.constant dense<0.000000e+00> : vector<8xf32>
    %41 = vector.multi_reduction <add>, %38, %cst_11 [1] : vector<8x512xf32> to vector<8xf32>
    %42 = vector.shape_cast %41 : vector<8xf32> to vector<8x1xf32>
    %cst_12 = arith.constant 5.120000e+02 : f32
    %43 = vector.broadcast %cst_12 : f32 to vector<8x1xf32>
    %44 = arith.divf %42, %43 : vector<8x1xf32>
    %45 = arith.mulf %38, %38 : vector<8x512xf32>
    %cst_13 = arith.constant dense<0.000000e+00> : vector<8xf32>
    %46 = vector.multi_reduction <add>, %45, %cst_13 [1] : vector<8x512xf32> to vector<8xf32>
    %47 = vector.shape_cast %46 : vector<8xf32> to vector<8x1xf32>
    %cst_14 = arith.constant 5.120000e+02 : f32
    %48 = vector.broadcast %cst_14 : f32 to vector<8x1xf32>
    %49 = arith.divf %47, %48 : vector<8x1xf32>
    %50 = arith.mulf %44, %44 : vector<8x1xf32>
    %51 = arith.subf %49, %50 : vector<8x1xf32>
    %cst_15 = arith.constant 0.000000e+00 : f32
    %52 = vector.broadcast %cst_15 : f32 to vector<8x1xf32>
    %53 = arith.maximumf %51, %52 : vector<8x1xf32>
    %54 = vector.broadcast %44 : vector<8x1xf32> to vector<8x512xf32>
    %55 = arith.subf %38, %54 : vector<8x512xf32>
    %cst_16 = arith.constant 9.99999974E-6 : f32
    %56 = vector.broadcast %cst_16 : f32 to vector<8x1xf32>
    %57 = arith.addf %53, %56 : vector<8x1xf32>
    %58 = math.rsqrt %57 : vector<8x1xf32>
    %59 = vector.broadcast %58 : vector<8x1xf32> to vector<8x512xf32>
    %60 = arith.mulf %55, %59 : vector<8x512xf32>
    %61 = vector.broadcast %39 : vector<8x1xf32> to vector<8x512xf32>
    %62 = arith.mulf %60, %61 : vector<8x512xf32>
    %63 = vector.broadcast %40 : vector<8x1xf32> to vector<8x512xf32>
    %64 = arith.addf %62, %63 : vector<8x512xf32>
    %cst_17 = arith.constant 0.000000e+00 : f32
    %65 = vector.broadcast %cst_17 : f32 to vector<8x512xf32>
    %66 = arith.maximumf %64, %65 : vector<8x512xf32>
    %c0_18 = arith.constant 0 : index
    %c0_19 = arith.constant 0 : index
    %67 = vector.load %arg7[%c0_18, %c0_19] : memref<8x72xbf16, #tpu.memory_space<vmem>>, vector<8x72xbf16>
    %c17_i32_20 = arith.constant 17 : i32
    %68 = tpu.dynamic_rotate %66 by %c17_i32_20 dim 1 : vector<8x512xf32>, i32 -> vector<8x512xf32>
    %69 = vector.extract_strided_slice %0 {offsets = [0, 0], sizes = [1, 512], strides = [1, 1]} : vector<9x512xf32> to vector<1x512xf32>
    %70 = vector.broadcast %69 : vector<1x512xf32> to vector<8x512xf32>
    %71 = arith.mulf %68, %70 : vector<8x512xf32>
    %c16_i32_21 = arith.constant 16 : i32
    %72 = tpu.dynamic_rotate %66 by %c16_i32_21 dim 1 : vector<8x512xf32>, i32 -> vector<8x512xf32>
    %73 = vector.extract_strided_slice %0 {offsets = [1, 0], sizes = [1, 512], strides = [1, 1]} : vector<9x512xf32> to vector<1x512xf32>
    %74 = vector.broadcast %73 : vector<1x512xf32> to vector<8x512xf32>
    %75 = arith.mulf %72, %74 : vector<8x512xf32>
    %c15_i32_22 = arith.constant 15 : i32
    %76 = tpu.dynamic_rotate %66 by %c15_i32_22 dim 1 : vector<8x512xf32>, i32 -> vector<8x512xf32>
    %77 = vector.extract_strided_slice %0 {offsets = [2, 0], sizes = [1, 512], strides = [1, 1]} : vector<9x512xf32> to vector<1x512xf32>
    %78 = vector.broadcast %77 : vector<1x512xf32> to vector<8x512xf32>
    %79 = arith.mulf %76, %78 : vector<8x512xf32>
    %c1_i32_23 = arith.constant 1 : i32
    %80 = tpu.dynamic_rotate %66 by %c1_i32_23 dim 1 : vector<8x512xf32>, i32 -> vector<8x512xf32>
    %81 = vector.extract_strided_slice %0 {offsets = [3, 0], sizes = [1, 512], strides = [1, 1]} : vector<9x512xf32> to vector<1x512xf32>
    %82 = vector.broadcast %81 : vector<1x512xf32> to vector<8x512xf32>
    %83 = arith.mulf %80, %82 : vector<8x512xf32>
    %c511_i32_24 = arith.constant 511 : i32
    %84 = tpu.dynamic_rotate %66 by %c511_i32_24 dim 1 : vector<8x512xf32>, i32 -> vector<8x512xf32>
    %85 = vector.extract_strided_slice %0 {offsets = [5, 0], sizes = [1, 512], strides = [1, 1]} : vector<9x512xf32> to vector<1x512xf32>
    %86 = vector.broadcast %85 : vector<1x512xf32> to vector<8x512xf32>
    %87 = arith.mulf %84, %86 : vector<8x512xf32>
    %c497_i32_25 = arith.constant 497 : i32
    %88 = tpu.dynamic_rotate %66 by %c497_i32_25 dim 1 : vector<8x512xf32>, i32 -> vector<8x512xf32>
    %89 = vector.extract_strided_slice %0 {offsets = [6, 0], sizes = [1, 512], strides = [1, 1]} : vector<9x512xf32> to vector<1x512xf32>
    %90 = vector.broadcast %89 : vector<1x512xf32> to vector<8x512xf32>
    %91 = arith.mulf %88, %90 : vector<8x512xf32>
    %c496_i32_26 = arith.constant 496 : i32
    %92 = tpu.dynamic_rotate %66 by %c496_i32_26 dim 1 : vector<8x512xf32>, i32 -> vector<8x512xf32>
    %93 = vector.extract_strided_slice %0 {offsets = [7, 0], sizes = [1, 512], strides = [1, 1]} : vector<9x512xf32> to vector<1x512xf32>
    %94 = vector.broadcast %93 : vector<1x512xf32> to vector<8x512xf32>
    %95 = arith.mulf %92, %94 : vector<8x512xf32>
    %c495_i32_27 = arith.constant 495 : i32
    %96 = tpu.dynamic_rotate %66 by %c495_i32_27 dim 1 : vector<8x512xf32>, i32 -> vector<8x512xf32>
    %97 = vector.extract_strided_slice %0 {offsets = [8, 0], sizes = [1, 512], strides = [1, 1]} : vector<9x512xf32> to vector<1x512xf32>
    %98 = vector.broadcast %97 : vector<1x512xf32> to vector<8x512xf32>
    %99 = arith.mulf %96, %98 : vector<8x512xf32>
    %100 = tpu.concatenate %71, %75, %79, %83, %66, %87, %91, %95, %99 in 0 : vector<8x512xf32>, vector<8x512xf32>, vector<8x512xf32>, vector<8x512xf32>, vector<8x512xf32>, vector<8x512xf32>, vector<8x512xf32>, vector<8x512xf32>, vector<8x512xf32> -> vector<72x512xf32>
    %101 = arith.truncf %100 : vector<72x512xf32> to vector<72x512xbf16>
    %cst_28 = arith.constant dense<0.000000e+00> : vector<8x512xf32>
    %102 = tpu.matmul %67, %101, %cst_28 {dimension_numbers = #tpu.dot_dimension_numbers<[1], [0], [0], [1], [0, 0, 1, 1], [], []>} : vector<8x72xbf16>, vector<72x512xbf16>, vector<8x512xf32> -> vector<8x512xf32>
    %c0_29 = arith.constant 0 : index
    %c0_30 = arith.constant 0 : index
    %103 = vector.load %arg8[%c0_29, %c0_30] : memref<8x1xf32, #tpu.memory_space<vmem>>, vector<8x1xf32>
    %c0_31 = arith.constant 0 : index
    %c0_32 = arith.constant 0 : index
    %104 = vector.load %arg9[%c0_31, %c0_32] : memref<8x1xf32, #tpu.memory_space<vmem>>, vector<8x1xf32>
    %cst_33 = arith.constant dense<0.000000e+00> : vector<8xf32>
    %105 = vector.multi_reduction <add>, %102, %cst_33 [1] : vector<8x512xf32> to vector<8xf32>
    %106 = vector.shape_cast %105 : vector<8xf32> to vector<8x1xf32>
    %cst_34 = arith.constant 5.120000e+02 : f32
    %107 = vector.broadcast %cst_34 : f32 to vector<8x1xf32>
    %108 = arith.divf %106, %107 : vector<8x1xf32>
    %109 = arith.mulf %102, %102 : vector<8x512xf32>
    %cst_35 = arith.constant dense<0.000000e+00> : vector<8xf32>
    %110 = vector.multi_reduction <add>, %109, %cst_35 [1] : vector<8x512xf32> to vector<8xf32>
    %111 = vector.shape_cast %110 : vector<8xf32> to vector<8x1xf32>
    %cst_36 = arith.constant 5.120000e+02 : f32
    %112 = vector.broadcast %cst_36 : f32 to vector<8x1xf32>
    %113 = arith.divf %111, %112 : vector<8x1xf32>
    %114 = arith.mulf %108, %108 : vector<8x1xf32>
    %115 = arith.subf %113, %114 : vector<8x1xf32>
    %cst_37 = arith.constant 0.000000e+00 : f32
    %116 = vector.broadcast %cst_37 : f32 to vector<8x1xf32>
    %117 = arith.maximumf %115, %116 : vector<8x1xf32>
    %118 = vector.broadcast %108 : vector<8x1xf32> to vector<8x512xf32>
    %119 = arith.subf %102, %118 : vector<8x512xf32>
    %cst_38 = arith.constant 9.99999974E-6 : f32
    %120 = vector.broadcast %cst_38 : f32 to vector<8x1xf32>
    %121 = arith.addf %117, %120 : vector<8x1xf32>
    %122 = math.rsqrt %121 : vector<8x1xf32>
    %123 = vector.broadcast %122 : vector<8x1xf32> to vector<8x512xf32>
    %124 = arith.mulf %119, %123 : vector<8x512xf32>
    %125 = vector.broadcast %103 : vector<8x1xf32> to vector<8x512xf32>
    %126 = arith.mulf %124, %125 : vector<8x512xf32>
    %127 = vector.broadcast %104 : vector<8x1xf32> to vector<8x512xf32>
    %128 = arith.addf %126, %127 : vector<8x512xf32>
    %cst_39 = arith.constant 0.000000e+00 : f32
    %129 = vector.broadcast %cst_39 : f32 to vector<8x512xf32>
    %130 = arith.maximumf %128, %129 : vector<8x512xf32>
    %c0_40 = arith.constant 0 : index
    %c0_41 = arith.constant 0 : index
    %131 = vector.load %arg10[%c0_40, %c0_41] : memref<8x72xbf16, #tpu.memory_space<vmem>>, vector<8x72xbf16>
    %c17_i32_42 = arith.constant 17 : i32
    %132 = tpu.dynamic_rotate %130 by %c17_i32_42 dim 1 : vector<8x512xf32>, i32 -> vector<8x512xf32>
    %133 = vector.extract_strided_slice %0 {offsets = [0, 0], sizes = [1, 512], strides = [1, 1]} : vector<9x512xf32> to vector<1x512xf32>
    %134 = vector.broadcast %133 : vector<1x512xf32> to vector<8x512xf32>
    %135 = arith.mulf %132, %134 : vector<8x512xf32>
    %c16_i32_43 = arith.constant 16 : i32
    %136 = tpu.dynamic_rotate %130 by %c16_i32_43 dim 1 : vector<8x512xf32>, i32 -> vector<8x512xf32>
    %137 = vector.extract_strided_slice %0 {offsets = [1, 0], sizes = [1, 512], strides = [1, 1]} : vector<9x512xf32> to vector<1x512xf32>
    %138 = vector.broadcast %137 : vector<1x512xf32> to vector<8x512xf32>
    %139 = arith.mulf %136, %138 : vector<8x512xf32>
    %c15_i32_44 = arith.constant 15 : i32
    %140 = tpu.dynamic_rotate %130 by %c15_i32_44 dim 1 : vector<8x512xf32>, i32 -> vector<8x512xf32>
    %141 = vector.extract_strided_slice %0 {offsets = [2, 0], sizes = [1, 512], strides = [1, 1]} : vector<9x512xf32> to vector<1x512xf32>
    %142 = vector.broadcast %141 : vector<1x512xf32> to vector<8x512xf32>
    %143 = arith.mulf %140, %142 : vector<8x512xf32>
    %c1_i32_45 = arith.constant 1 : i32
    %144 = tpu.dynamic_rotate %130 by %c1_i32_45 dim 1 : vector<8x512xf32>, i32 -> vector<8x512xf32>
    %145 = vector.extract_strided_slice %0 {offsets = [3, 0], sizes = [1, 512], strides = [1, 1]} : vector<9x512xf32> to vector<1x512xf32>
    %146 = vector.broadcast %145 : vector<1x512xf32> to vector<8x512xf32>
    %147 = arith.mulf %144, %146 : vector<8x512xf32>
    %c511_i32_46 = arith.constant 511 : i32
    %148 = tpu.dynamic_rotate %130 by %c511_i32_46 dim 1 : vector<8x512xf32>, i32 -> vector<8x512xf32>
    %149 = vector.extract_strided_slice %0 {offsets = [5, 0], sizes = [1, 512], strides = [1, 1]} : vector<9x512xf32> to vector<1x512xf32>
    %150 = vector.broadcast %149 : vector<1x512xf32> to vector<8x512xf32>
    %151 = arith.mulf %148, %150 : vector<8x512xf32>
    %c497_i32_47 = arith.constant 497 : i32
    %152 = tpu.dynamic_rotate %130 by %c497_i32_47 dim 1 : vector<8x512xf32>, i32 -> vector<8x512xf32>
    %153 = vector.extract_strided_slice %0 {offsets = [6, 0], sizes = [1, 512], strides = [1, 1]} : vector<9x512xf32> to vector<1x512xf32>
    %154 = vector.broadcast %153 : vector<1x512xf32> to vector<8x512xf32>
    %155 = arith.mulf %152, %154 : vector<8x512xf32>
    %c496_i32_48 = arith.constant 496 : i32
    %156 = tpu.dynamic_rotate %130 by %c496_i32_48 dim 1 : vector<8x512xf32>, i32 -> vector<8x512xf32>
    %157 = vector.extract_strided_slice %0 {offsets = [7, 0], sizes = [1, 512], strides = [1, 1]} : vector<9x512xf32> to vector<1x512xf32>
    %158 = vector.broadcast %157 : vector<1x512xf32> to vector<8x512xf32>
    %159 = arith.mulf %156, %158 : vector<8x512xf32>
    %c495_i32_49 = arith.constant 495 : i32
    %160 = tpu.dynamic_rotate %130 by %c495_i32_49 dim 1 : vector<8x512xf32>, i32 -> vector<8x512xf32>
    %161 = vector.extract_strided_slice %0 {offsets = [8, 0], sizes = [1, 512], strides = [1, 1]} : vector<9x512xf32> to vector<1x512xf32>
    %162 = vector.broadcast %161 : vector<1x512xf32> to vector<8x512xf32>
    %163 = arith.mulf %160, %162 : vector<8x512xf32>
    %164 = tpu.concatenate %135, %139, %143, %147, %130, %151, %155, %159, %163 in 0 : vector<8x512xf32>, vector<8x512xf32>, vector<8x512xf32>, vector<8x512xf32>, vector<8x512xf32>, vector<8x512xf32>, vector<8x512xf32>, vector<8x512xf32>, vector<8x512xf32> -> vector<72x512xf32>
    %165 = arith.truncf %164 : vector<72x512xf32> to vector<72x512xbf16>
    %cst_50 = arith.constant dense<0.000000e+00> : vector<8x512xf32>
    %166 = tpu.matmul %131, %165, %cst_50 {dimension_numbers = #tpu.dot_dimension_numbers<[1], [0], [0], [1], [0, 0, 1, 1], [], []>} : vector<8x72xbf16>, vector<72x512xbf16>, vector<8x512xf32> -> vector<8x512xf32>
    %c0_51 = arith.constant 0 : index
    %c0_52 = arith.constant 0 : index
    %167 = vector.load %arg11[%c0_51, %c0_52] : memref<8x1xf32, #tpu.memory_space<vmem>>, vector<8x1xf32>
    %c0_53 = arith.constant 0 : index
    %c0_54 = arith.constant 0 : index
    %168 = vector.load %arg12[%c0_53, %c0_54] : memref<8x1xf32, #tpu.memory_space<vmem>>, vector<8x1xf32>
    %cst_55 = arith.constant dense<0.000000e+00> : vector<8xf32>
    %169 = vector.multi_reduction <add>, %166, %cst_55 [1] : vector<8x512xf32> to vector<8xf32>
    %170 = vector.shape_cast %169 : vector<8xf32> to vector<8x1xf32>
    %cst_56 = arith.constant 5.120000e+02 : f32
    %171 = vector.broadcast %cst_56 : f32 to vector<8x1xf32>
    %172 = arith.divf %170, %171 : vector<8x1xf32>
    %173 = arith.mulf %166, %166 : vector<8x512xf32>
    %cst_57 = arith.constant dense<0.000000e+00> : vector<8xf32>
    %174 = vector.multi_reduction <add>, %173, %cst_57 [1] : vector<8x512xf32> to vector<8xf32>
    %175 = vector.shape_cast %174 : vector<8xf32> to vector<8x1xf32>
    %cst_58 = arith.constant 5.120000e+02 : f32
    %176 = vector.broadcast %cst_58 : f32 to vector<8x1xf32>
    %177 = arith.divf %175, %176 : vector<8x1xf32>
    %178 = arith.mulf %172, %172 : vector<8x1xf32>
    %179 = arith.subf %177, %178 : vector<8x1xf32>
    %cst_59 = arith.constant 0.000000e+00 : f32
    %180 = vector.broadcast %cst_59 : f32 to vector<8x1xf32>
    %181 = arith.maximumf %179, %180 : vector<8x1xf32>
    %182 = vector.broadcast %172 : vector<8x1xf32> to vector<8x512xf32>
    %183 = arith.subf %166, %182 : vector<8x512xf32>
    %cst_60 = arith.constant 9.99999974E-6 : f32
    %184 = vector.broadcast %cst_60 : f32 to vector<8x1xf32>
    %185 = arith.addf %181, %184 : vector<8x1xf32>
    %186 = math.rsqrt %185 : vector<8x1xf32>
    %187 = vector.broadcast %186 : vector<8x1xf32> to vector<8x512xf32>
    %188 = arith.mulf %183, %187 : vector<8x512xf32>
    %189 = vector.broadcast %167 : vector<8x1xf32> to vector<8x512xf32>
    %190 = arith.mulf %188, %189 : vector<8x512xf32>
    %191 = vector.broadcast %168 : vector<8x1xf32> to vector<8x512xf32>
    %192 = arith.addf %190, %191 : vector<8x512xf32>
    %193 = arith.addf %192, %66 : vector<8x512xf32>
    %cst_61 = arith.constant 0.000000e+00 : f32
    %194 = vector.broadcast %cst_61 : f32 to vector<8x512xf32>
    %195 = arith.maximumf %193, %194 : vector<8x512xf32>
    %c0_62 = arith.constant 0 : index
    %c0_63 = arith.constant 0 : index
    %196 = vector.load %arg3[%c0_62, %c0_63] : memref<512x128xf32, #tpu.memory_space<vmem>>, vector<512x128xf32>
    %c0_64 = arith.constant 0 : index
    %c0_65 = arith.constant 0 : index
    %197 = vector.load %arg13[%c0_64, %c0_65] : memref<16x72xbf16, #tpu.memory_space<vmem>>, vector<16x72xbf16>
    %c17_i32_66 = arith.constant 17 : i32
    %198 = tpu.dynamic_rotate %195 by %c17_i32_66 dim 1 : vector<8x512xf32>, i32 -> vector<8x512xf32>
    %199 = vector.extract_strided_slice %0 {offsets = [0, 0], sizes = [1, 512], strides = [1, 1]} : vector<9x512xf32> to vector<1x512xf32>
    %200 = vector.broadcast %199 : vector<1x512xf32> to vector<8x512xf32>
    %201 = arith.mulf %198, %200 : vector<8x512xf32>
    %c16_i32_67 = arith.constant 16 : i32
    %202 = tpu.dynamic_rotate %195 by %c16_i32_67 dim 1 : vector<8x512xf32>, i32 -> vector<8x512xf32>
    %203 = vector.extract_strided_slice %0 {offsets = [1, 0], sizes = [1, 512], strides = [1, 1]} : vector<9x512xf32> to vector<1x512xf32>
    %204 = vector.broadcast %203 : vector<1x512xf32> to vector<8x512xf32>
    %205 = arith.mulf %202, %204 : vector<8x512xf32>
    %c15_i32_68 = arith.constant 15 : i32
    %206 = tpu.dynamic_rotate %195 by %c15_i32_68 dim 1 : vector<8x512xf32>, i32 -> vector<8x512xf32>
    %207 = vector.extract_strided_slice %0 {offsets = [2, 0], sizes = [1, 512], strides = [1, 1]} : vector<9x512xf32> to vector<1x512xf32>
    %208 = vector.broadcast %207 : vector<1x512xf32> to vector<8x512xf32>
    %209 = arith.mulf %206, %208 : vector<8x512xf32>
    %c1_i32_69 = arith.constant 1 : i32
    %210 = tpu.dynamic_rotate %195 by %c1_i32_69 dim 1 : vector<8x512xf32>, i32 -> vector<8x512xf32>
    %211 = vector.extract_strided_slice %0 {offsets = [3, 0], sizes = [1, 512], strides = [1, 1]} : vector<9x512xf32> to vector<1x512xf32>
    %212 = vector.broadcast %211 : vector<1x512xf32> to vector<8x512xf32>
    %213 = arith.mulf %210, %212 : vector<8x512xf32>
    %c511_i32_70 = arith.constant 511 : i32
    %214 = tpu.dynamic_rotate %195 by %c511_i32_70 dim 1 : vector<8x512xf32>, i32 -> vector<8x512xf32>
    %215 = vector.extract_strided_slice %0 {offsets = [5, 0], sizes = [1, 512], strides = [1, 1]} : vector<9x512xf32> to vector<1x512xf32>
    %216 = vector.broadcast %215 : vector<1x512xf32> to vector<8x512xf32>
    %217 = arith.mulf %214, %216 : vector<8x512xf32>
    %c497_i32_71 = arith.constant 497 : i32
    %218 = tpu.dynamic_rotate %195 by %c497_i32_71 dim 1 : vector<8x512xf32>, i32 -> vector<8x512xf32>
    %219 = vector.extract_strided_slice %0 {offsets = [6, 0], sizes = [1, 512], strides = [1, 1]} : vector<9x512xf32> to vector<1x512xf32>
    %220 = vector.broadcast %219 : vector<1x512xf32> to vector<8x512xf32>
    %221 = arith.mulf %218, %220 : vector<8x512xf32>
    %c496_i32_72 = arith.constant 496 : i32
    %222 = tpu.dynamic_rotate %195 by %c496_i32_72 dim 1 : vector<8x512xf32>, i32 -> vector<8x512xf32>
    %223 = vector.extract_strided_slice %0 {offsets = [7, 0], sizes = [1, 512], strides = [1, 1]} : vector<9x512xf32> to vector<1x512xf32>
    %224 = vector.broadcast %223 : vector<1x512xf32> to vector<8x512xf32>
    %225 = arith.mulf %222, %224 : vector<8x512xf32>
    %c495_i32_73 = arith.constant 495 : i32
    %226 = tpu.dynamic_rotate %195 by %c495_i32_73 dim 1 : vector<8x512xf32>, i32 -> vector<8x512xf32>
    %227 = vector.extract_strided_slice %0 {offsets = [8, 0], sizes = [1, 512], strides = [1, 1]} : vector<9x512xf32> to vector<1x512xf32>
    %228 = vector.broadcast %227 : vector<1x512xf32> to vector<8x512xf32>
    %229 = arith.mulf %226, %228 : vector<8x512xf32>
    %230 = tpu.concatenate %201, %205, %209, %213, %195, %217, %221, %225, %229 in 0 : vector<8x512xf32>, vector<8x512xf32>, vector<8x512xf32>, vector<8x512xf32>, vector<8x512xf32>, vector<8x512xf32>, vector<8x512xf32>, vector<8x512xf32>, vector<8x512xf32> -> vector<72x512xf32>
    %231 = arith.truncf %230 : vector<72x512xf32> to vector<72x512xbf16>
    %cst_74 = arith.constant dense<0.000000e+00> : vector<16x512xf32>
    %232 = tpu.matmul %197, %231, %cst_74 {dimension_numbers = #tpu.dot_dimension_numbers<[1], [0], [0], [1], [0, 0, 1, 1], [], []>} : vector<16x72xbf16>, vector<72x512xbf16>, vector<16x512xf32> -> vector<16x512xf32>
    %cst_75 = arith.constant dense<0.000000e+00> : vector<16x128xf32>
    %233 = tpu.matmul %232, %196, %cst_75 {dimension_numbers = #tpu.dot_dimension_numbers<[1], [0], [0], [1], [0, 0, 1, 1], [], []>} : vector<16x512xf32>, vector<512x128xf32>, vector<16x128xf32> -> vector<16x128xf32>
    %c0_76 = arith.constant 0 : index
    %c0_77 = arith.constant 0 : index
    %234 = vector.load %arg14[%c0_76, %c0_77] : memref<16x1xf32, #tpu.memory_space<vmem>>, vector<16x1xf32>
    %c0_78 = arith.constant 0 : index
    %c0_79 = arith.constant 0 : index
    %235 = vector.load %arg15[%c0_78, %c0_79] : memref<16x1xf32, #tpu.memory_space<vmem>>, vector<16x1xf32>
    %cst_80 = arith.constant dense<0.000000e+00> : vector<16xf32>
    %236 = vector.multi_reduction <add>, %233, %cst_80 [1] : vector<16x128xf32> to vector<16xf32>
    %237 = vector.shape_cast %236 : vector<16xf32> to vector<16x1xf32>
    %cst_81 = arith.constant 1.280000e+02 : f32
    %238 = vector.broadcast %cst_81 : f32 to vector<16x1xf32>
    %239 = arith.divf %237, %238 : vector<16x1xf32>
    %240 = arith.mulf %233, %233 : vector<16x128xf32>
    %cst_82 = arith.constant dense<0.000000e+00> : vector<16xf32>
    %241 = vector.multi_reduction <add>, %240, %cst_82 [1] : vector<16x128xf32> to vector<16xf32>
    %242 = vector.shape_cast %241 : vector<16xf32> to vector<16x1xf32>
    %cst_83 = arith.constant 1.280000e+02 : f32
    %243 = vector.broadcast %cst_83 : f32 to vector<16x1xf32>
    %244 = arith.divf %242, %243 : vector<16x1xf32>
    %245 = arith.mulf %239, %239 : vector<16x1xf32>
    %246 = arith.subf %244, %245 : vector<16x1xf32>
    %cst_84 = arith.constant 0.000000e+00 : f32
    %247 = vector.broadcast %cst_84 : f32 to vector<16x1xf32>
    %248 = arith.maximumf %246, %247 : vector<16x1xf32>
    %249 = vector.broadcast %239 : vector<16x1xf32> to vector<16x128xf32>
    %250 = arith.subf %233, %249 : vector<16x128xf32>
    %cst_85 = arith.constant 9.99999974E-6 : f32
    %251 = vector.broadcast %cst_85 : f32 to vector<16x1xf32>
    %252 = arith.addf %248, %251 : vector<16x1xf32>
    %253 = math.rsqrt %252 : vector<16x1xf32>
    %254 = vector.broadcast %253 : vector<16x1xf32> to vector<16x128xf32>
    %255 = arith.mulf %250, %254 : vector<16x128xf32>
    %256 = vector.broadcast %234 : vector<16x1xf32> to vector<16x128xf32>
    %257 = arith.mulf %255, %256 : vector<16x128xf32>
    %258 = vector.broadcast %235 : vector<16x1xf32> to vector<16x128xf32>
    %259 = arith.addf %257, %258 : vector<16x128xf32>
    %cst_86 = arith.constant 0.000000e+00 : f32
    %260 = vector.broadcast %cst_86 : f32 to vector<16x128xf32>
    %261 = arith.maximumf %259, %260 : vector<16x128xf32>
    %cst_87 = arith.constant dense<0.000000e+00> : vector<8x128xf32>
    %262 = tpu.matmul %195, %196, %cst_87 {dimension_numbers = #tpu.dot_dimension_numbers<[1], [0], [0], [1], [0, 0, 1, 1], [], []>} : vector<8x512xf32>, vector<512x128xf32>, vector<8x128xf32> -> vector<8x128xf32>
    %c0_88 = arith.constant 0 : index
    %c0_89 = arith.constant 0 : index
    %263 = vector.load %arg16[%c0_88, %c0_89] : memref<16x8xbf16, #tpu.memory_space<vmem>>, vector<16x8xbf16>
    %264 = arith.truncf %262 : vector<8x128xf32> to vector<8x128xbf16>
    %cst_90 = arith.constant dense<0.000000e+00> : vector<16x128xf32>
    %265 = tpu.matmul %263, %264, %cst_90 {dimension_numbers = #tpu.dot_dimension_numbers<[1], [0], [0], [1], [0, 0, 1, 1], [], []>} : vector<16x8xbf16>, vector<8x128xbf16>, vector<16x128xf32> -> vector<16x128xf32>
    %c0_91 = arith.constant 0 : index
    %c0_92 = arith.constant 0 : index
    %266 = vector.load %arg17[%c0_91, %c0_92] : memref<16x1xf32, #tpu.memory_space<vmem>>, vector<16x1xf32>
    %c0_93 = arith.constant 0 : index
    %c0_94 = arith.constant 0 : index
    %267 = vector.load %arg18[%c0_93, %c0_94] : memref<16x1xf32, #tpu.memory_space<vmem>>, vector<16x1xf32>
    %cst_95 = arith.constant dense<0.000000e+00> : vector<16xf32>
    %268 = vector.multi_reduction <add>, %265, %cst_95 [1] : vector<16x128xf32> to vector<16xf32>
    %269 = vector.shape_cast %268 : vector<16xf32> to vector<16x1xf32>
    %cst_96 = arith.constant 1.280000e+02 : f32
    %270 = vector.broadcast %cst_96 : f32 to vector<16x1xf32>
    %271 = arith.divf %269, %270 : vector<16x1xf32>
    %272 = arith.mulf %265, %265 : vector<16x128xf32>
    %cst_97 = arith.constant dense<0.000000e+00> : vector<16xf32>
    %273 = vector.multi_reduction <add>, %272, %cst_97 [1] : vector<16x128xf32> to vector<16xf32>
    %274 = vector.shape_cast %273 : vector<16xf32> to vector<16x1xf32>
    %cst_98 = arith.constant 1.280000e+02 : f32
    %275 = vector.broadcast %cst_98 : f32 to vector<16x1xf32>
    %276 = arith.divf %274, %275 : vector<16x1xf32>
    %277 = arith.mulf %271, %271 : vector<16x1xf32>
    %278 = arith.subf %276, %277 : vector<16x1xf32>
    %cst_99 = arith.constant 0.000000e+00 : f32
    %279 = vector.broadcast %cst_99 : f32 to vector<16x1xf32>
    %280 = arith.maximumf %278, %279 : vector<16x1xf32>
    %281 = vector.broadcast %271 : vector<16x1xf32> to vector<16x128xf32>
    %282 = arith.subf %265, %281 : vector<16x128xf32>
    %cst_100 = arith.constant 9.99999974E-6 : f32
    %283 = vector.broadcast %cst_100 : f32 to vector<16x1xf32>
    %284 = arith.addf %280, %283 : vector<16x1xf32>
    %285 = math.rsqrt %284 : vector<16x1xf32>
    %286 = vector.broadcast %285 : vector<16x1xf32> to vector<16x128xf32>
    %287 = arith.mulf %282, %286 : vector<16x128xf32>
    %288 = vector.broadcast %266 : vector<16x1xf32> to vector<16x128xf32>
    %289 = arith.mulf %287, %288 : vector<16x128xf32>
    %290 = vector.broadcast %267 : vector<16x1xf32> to vector<16x128xf32>
    %291 = arith.addf %289, %290 : vector<16x128xf32>
    %c0_101 = arith.constant 0 : index
    %c0_102 = arith.constant 0 : index
    %292 = vector.load %arg19[%c0_101, %c0_102] : memref<16x144xbf16, #tpu.memory_space<vmem>>, vector<16x144xbf16>
    %c9_i32 = arith.constant 9 : i32
    %293 = tpu.dynamic_rotate %261 by %c9_i32 dim 1 : vector<16x128xf32>, i32 -> vector<16x128xf32>
    %294 = vector.extract_strided_slice %1 {offsets = [0, 0], sizes = [1, 128], strides = [1, 1]} : vector<9x128xf32> to vector<1x128xf32>
    %295 = vector.broadcast %294 : vector<1x128xf32> to vector<16x128xf32>
    %296 = arith.mulf %293, %295 : vector<16x128xf32>
    %c8_i32 = arith.constant 8 : i32
    %297 = tpu.dynamic_rotate %261 by %c8_i32 dim 1 : vector<16x128xf32>, i32 -> vector<16x128xf32>
    %298 = vector.extract_strided_slice %1 {offsets = [1, 0], sizes = [1, 128], strides = [1, 1]} : vector<9x128xf32> to vector<1x128xf32>
    %299 = vector.broadcast %298 : vector<1x128xf32> to vector<16x128xf32>
    %300 = arith.mulf %297, %299 : vector<16x128xf32>
    %c7_i32 = arith.constant 7 : i32
    %301 = tpu.dynamic_rotate %261 by %c7_i32 dim 1 : vector<16x128xf32>, i32 -> vector<16x128xf32>
    %302 = vector.extract_strided_slice %1 {offsets = [2, 0], sizes = [1, 128], strides = [1, 1]} : vector<9x128xf32> to vector<1x128xf32>
    %303 = vector.broadcast %302 : vector<1x128xf32> to vector<16x128xf32>
    %304 = arith.mulf %301, %303 : vector<16x128xf32>
    %c1_i32_103 = arith.constant 1 : i32
    %305 = tpu.dynamic_rotate %261 by %c1_i32_103 dim 1 : vector<16x128xf32>, i32 -> vector<16x128xf32>
    %306 = vector.extract_strided_slice %1 {offsets = [3, 0], sizes = [1, 128], strides = [1, 1]} : vector<9x128xf32> to vector<1x128xf32>
    %307 = vector.broadcast %306 : vector<1x128xf32> to vector<16x128xf32>
    %308 = arith.mulf %305, %307 : vector<16x128xf32>
    %c127_i32 = arith.constant 127 : i32
    %309 = tpu.dynamic_rotate %261 by %c127_i32 dim 1 : vector<16x128xf32>, i32 -> vector<16x128xf32>
    %310 = vector.extract_strided_slice %1 {offsets = [5, 0], sizes = [1, 128], strides = [1, 1]} : vector<9x128xf32> to vector<1x128xf32>
    %311 = vector.broadcast %310 : vector<1x128xf32> to vector<16x128xf32>
    %312 = arith.mulf %309, %311 : vector<16x128xf32>
    %c121_i32 = arith.constant 121 : i32
    %313 = tpu.dynamic_rotate %261 by %c121_i32 dim 1 : vector<16x128xf32>, i32 -> vector<16x128xf32>
    %314 = vector.extract_strided_slice %1 {offsets = [6, 0], sizes = [1, 128], strides = [1, 1]} : vector<9x128xf32> to vector<1x128xf32>
    %315 = vector.broadcast %314 : vector<1x128xf32> to vector<16x128xf32>
    %316 = arith.mulf %313, %315 : vector<16x128xf32>
    %c120_i32 = arith.constant 120 : i32
    %317 = tpu.dynamic_rotate %261 by %c120_i32 dim 1 : vector<16x128xf32>, i32 -> vector<16x128xf32>
    %318 = vector.extract_strided_slice %1 {offsets = [7, 0], sizes = [1, 128], strides = [1, 1]} : vector<9x128xf32> to vector<1x128xf32>
    %319 = vector.broadcast %318 : vector<1x128xf32> to vector<16x128xf32>
    %320 = arith.mulf %317, %319 : vector<16x128xf32>
    %c119_i32 = arith.constant 119 : i32
    %321 = tpu.dynamic_rotate %261 by %c119_i32 dim 1 : vector<16x128xf32>, i32 -> vector<16x128xf32>
    %322 = vector.extract_strided_slice %1 {offsets = [8, 0], sizes = [1, 128], strides = [1, 1]} : vector<9x128xf32> to vector<1x128xf32>
    %323 = vector.broadcast %322 : vector<1x128xf32> to vector<16x128xf32>
    %324 = arith.mulf %321, %323 : vector<16x128xf32>
    %325 = tpu.concatenate %296, %300, %304, %308, %261, %312, %316, %320, %324 in 0 : vector<16x128xf32>, vector<16x128xf32>, vector<16x128xf32>, vector<16x128xf32>, vector<16x128xf32>, vector<16x128xf32>, vector<16x128xf32>, vector<16x128xf32>, vector<16x128xf32> -> vector<144x128xf32>
    %326 = arith.truncf %325 : vector<144x128xf32> to vector<144x128xbf16>
    %cst_104 = arith.constant dense<0.000000e+00> : vector<16x128xf32>
    %327 = tpu.matmul %292, %326, %cst_104 {dimension_numbers = #tpu.dot_dimension_numbers<[1], [0], [0], [1], [0, 0, 1, 1], [], []>} : vector<16x144xbf16>, vector<144x128xbf16>, vector<16x128xf32> -> vector<16x128xf32>
    %c0_105 = arith.constant 0 : index
    %c0_106 = arith.constant 0 : index
    %328 = vector.load %arg20[%c0_105, %c0_106] : memref<16x1xf32, #tpu.memory_space<vmem>>, vector<16x1xf32>
    %c0_107 = arith.constant 0 : index
    %c0_108 = arith.constant 0 : index
    %329 = vector.load %arg21[%c0_107, %c0_108] : memref<16x1xf32, #tpu.memory_space<vmem>>, vector<16x1xf32>
    %cst_109 = arith.constant dense<0.000000e+00> : vector<16xf32>
    %330 = vector.multi_reduction <add>, %327, %cst_109 [1] : vector<16x128xf32> to vector<16xf32>
    %331 = vector.shape_cast %330 : vector<16xf32> to vector<16x1xf32>
    %cst_110 = arith.constant 1.280000e+02 : f32
    %332 = vector.broadcast %cst_110 : f32 to vector<16x1xf32>
    %333 = arith.divf %331, %332 : vector<16x1xf32>
    %334 = arith.mulf %327, %327 : vector<16x128xf32>
    %cst_111 = arith.constant dense<0.000000e+00> : vector<16xf32>
    %335 = vector.multi_reduction <add>, %334, %cst_111 [1] : vector<16x128xf32> to vector<16xf32>
    %336 = vector.shape_cast %335 : vector<16xf32> to vector<16x1xf32>
    %cst_112 = arith.constant 1.280000e+02 : f32
    %337 = vector.broadcast %cst_112 : f32 to vector<16x1xf32>
    %338 = arith.divf %336, %337 : vector<16x1xf32>
    %339 = arith.mulf %333, %333 : vector<16x1xf32>
    %340 = arith.subf %338, %339 : vector<16x1xf32>
    %cst_113 = arith.constant 0.000000e+00 : f32
    %341 = vector.broadcast %cst_113 : f32 to vector<16x1xf32>
    %342 = arith.maximumf %340, %341 : vector<16x1xf32>
    %343 = vector.broadcast %333 : vector<16x1xf32> to vector<16x128xf32>
    %344 = arith.subf %327, %343 : vector<16x128xf32>
    %cst_114 = arith.constant 9.99999974E-6 : f32
    %345 = vector.broadcast %cst_114 : f32 to vector<16x1xf32>
    %346 = arith.addf %342, %345 : vector<16x1xf32>
    %347 = math.rsqrt %346 : vector<16x1xf32>
    %348 = vector.broadcast %347 : vector<16x1xf32> to vector<16x128xf32>
    %349 = arith.mulf %344, %348 : vector<16x128xf32>
    %350 = vector.broadcast %328 : vector<16x1xf32> to vector<16x128xf32>
    %351 = arith.mulf %349, %350 : vector<16x128xf32>
    %352 = vector.broadcast %329 : vector<16x1xf32> to vector<16x128xf32>
    %353 = arith.addf %351, %352 : vector<16x128xf32>
    %354 = arith.addf %353, %291 : vector<16x128xf32>
    %cst_115 = arith.constant 0.000000e+00 : f32
    %355 = vector.broadcast %cst_115 : f32 to vector<16x128xf32>
    %356 = arith.maximumf %354, %355 : vector<16x128xf32>
    %357 = tpu.transpose %356, [1, 0] : vector<16x128xf32> -> vector<128x16xf32>
    %358 = vector.shape_cast %357 : vector<128x16xf32> to vector<2x64x16xf32>
    %cst_116 = arith.constant dense<0.000000e+00> : vector<2x16xf32>
    %359 = vector.multi_reduction <add>, %358, %cst_116 [1] : vector<2x64x16xf32> to vector<2x16xf32>
    %cst_117 = arith.constant 6.400000e+01 : f32
    %360 = vector.broadcast %cst_117 : f32 to vector<2x16xf32>
    %361 = arith.divf %359, %360 : vector<2x16xf32>
    %c0_118 = arith.constant 0 : index
    %c0_119 = arith.constant 0 : index
    %362 = vector.load %arg22[%c0_118, %c0_119] : memref<16x128xf32, #tpu.memory_space<vmem>>, vector<16x128xf32>
    %cst_120 = arith.constant dense<0.000000e+00> : vector<2x128xf32>
    %363 = tpu.matmul %361, %362, %cst_120 {dimension_numbers = #tpu.dot_dimension_numbers<[1], [0], [0], [1], [0, 0, 1, 1], [], []>} : vector<2x16xf32>, vector<16x128xf32>, vector<2x128xf32> -> vector<2x128xf32>
    %c0_121 = arith.constant 0 : index
    %c0_122 = arith.constant 0 : index
    %364 = vector.load %arg23[%c0_121, %c0_122] : memref<1x128xf32, #tpu.memory_space<vmem>>, vector<1x128xf32>
    %365 = vector.broadcast %364 : vector<1x128xf32> to vector<2x128xf32>
    %366 = arith.addf %363, %365 : vector<2x128xf32>
    %c0_123 = arith.constant 0 : index
    %c0_124 = arith.constant 0 : index
    %367 = vector.load %arg24[%c0_123, %c0_124] : memref<2x128xf32, #tpu.memory_space<vmem>>, vector<2x128xf32>
    tpu.vector_store %arg24[%c0_123, %c0_124], %366 {strides = array<i32>} : memref<2x128xf32, #tpu.memory_space<vmem>>, vector<2x128xf32>,
    return
  }
}

</mosaic_0001>

<bundles_post_ra>
// kernel: resnet_forward.1
= control target key start
LH: loop header
LB: loop body
LE: loop exit
PB: predicated region body
PF: predicated region fallthrough
CT: control target
= control target key end

     0   :  { %s3731_s0 = inlined_call_operand.vmem [shape: f32[8,512], index: 0, kind: input, shape index: {}]   ;;  %s3732_s1 = inlined_call_operand.vmem [shape: f32[9,512], index: 1, kind: input, shape index: {}]   ;;  %s3733_s2 = inlined_call_operand.vmem [shape: f32[9,128], index: 2, kind: input, shape index: {}]   ;;  %s3734_s3 = inlined_call_operand.hbm [shape: f32[512,128], index: 3, kind: input, shape index: {}]   ;;  %s3735_s4 = inlined_call_operand.vmem [shape: bf16[8,72], index: 4, kind: input, shape index: {}]   ;;  %s3736_s5 = inlined_call_operand.vmem [shape: f32[8,1], index: 5, kind: input, shape index: {}]   ;;  %s3737_s6 = inlined_call_operand.vmem [shape: f32[8,1], index: 6, kind: input, shape index: {}]   ;;  %s3738_s7 = inlined_call_operand.vmem [shape: bf16[8,72], index: 7, kind: input, shape index: {}]   ;;  %s3739_s8 = inlined_call_operand.vmem [shape: f32[8,1], index: 8, kind: input, shape index: {}]   ;;  %s3740_s9 = inlined_call_operand.vmem [shape: f32[8,1], index: 9, kind: input, shape index: {}]   ;;  %s3741_s10 = inlined_call_operand.vmem [shape: bf16[8,72], index: 10, kind: input, shape index: {}]   ;;  %s3742_s11 = inlined_call_operand.vmem [shape: f32[8,1], index: 11, kind: input, shape index: {}]   ;;  %s3743_s12 = inlined_call_operand.vmem [shape: f32[8,1], index: 12, kind: input, shape index: {}]   ;;  %s3744_s13 = inlined_call_operand.vmem [shape: bf16[16,72], index: 13, kind: input, shape index: {}]   ;;  %s3745_s14 = inlined_call_operand.vmem [shape: f32[16,1], index: 14, kind: input, shape index: {}]   ;;  %s3746_s15 = inlined_call_operand.vmem [shape: f32[16,1], index: 15, kind: input, shape index: {}]   ;;  %s3747_s16 = inlined_call_operand.vmem [shape: bf16[16,8], index: 16, kind: input, shape index: {}]   ;;  %s3748_s17 = inlined_call_operand.vmem [shape: f32[16,1], index: 17, kind: input, shape index: {}]   ;;  %s3749_s18 = inlined_call_operand.vmem [shape: f32[16,1], index: 18, kind: input, shape index: {}]   ;;  %s3750_s19 = inlined_call_operand.vmem [shape: bf16[16,144], index: 19, kind: input, shape index: {}]   ;;  %s3751_s20 = inlined_call_operand.vmem [shape: f32[16,1], index: 20, kind: input, shape index: {}]   ;;  %s3752_s21 = inlined_call_operand.vmem [shape: f32[16,1], index: 21, kind: input, shape index: {}]   ;;  %s3753_s22 = inlined_call_operand.vmem [shape: f32[16,128], index: 22, kind: input, shape index: {}]   ;;  %s3754_s23 = inlined_call_operand.vmem [shape: f32[1,128], index: 23, kind: input, shape index: {}]   ;;  %s3755_s24 = inlined_call_operand.hbm [shape: f32[2,128], index: 24, kind: output, shape index: {}]  }
   0x1   :  { %3763 = sst [smem:[#allocation10_spill]] %s3731_s0 }
   0x2   :  { %3764 = sst [smem:[#allocation11_spill]] %s3732_s1 }
   0x3   :  { %3765 = sst [smem:[#allocation12_spill]] %s3733_s2 }
   0x4   :  { %3766 = sst [smem:[#allocation13_spill]] %s3734_s3 }
   0x5   :  { %3767 = sst [smem:[#allocation14_spill]] %s3735_s4 }
   0x6   :  { %3768 = sst [smem:[#allocation15_spill]] %s3736_s5 }
   0x7   :  { %3769 = sst [smem:[#allocation16_spill]] %s3737_s6 }
   0x8   :  { %3770 = sst [smem:[#allocation17_spill]] %s3738_s7 }
   0x9   :  { %3771 = sst [smem:[#allocation18_spill]] %s3739_s8 }
   0xa   :  { %29 = vsyncpa [#allocation3], 0 }
   0xb   :  { %30 = vsyncpa [#allocation4], 0  ;;  %s3772_s27 = sld [smem:[#allocation13_spill]]  ;;  %s2115_s6 = smov [#allocation2]  }
   0xc   :  { %s43_s2 = sshll.u32 %s2115_s6, 4  ;;  %s2116_s29 = smov 128   ;;  %s44_s2 = int_to_ptr.vmem [resolvable:$true] %s43_s2 }
   0xd   :  { %s3759_s0 = smov 8  }
  0x11   :  { %s41_s28 = sshll.u32 %s3772_s27, 4  ;;  %s42_s28 = int_to_ptr.hbm [resolvable:$true] %s41_s28 }
  0x12   :  { %49 = dma.hbm_to_vmem [thread:$0]  %s42_s28, 8192, %s44_s2, [#allocation3], %s2116_s29, %s2116_s29, %s3759_s0  }
  0x13   :  { %2111 = dma.done.wait [#allocation3], 8192  }
  0x14   :  { %2112 = vsyncadd [#allocation3], 4294959104  ;;  %s3773_s3 = sld [smem:[#allocation10_spill]]  ;;  %s2118_s25 = smov 112   ;;  %v118_v8 = vlaneseq  ;;  %vm304_vm3 = vcmask 1043456   ;;  %vm300_vm9 = vcmask 588800  }
  0x15   :  { %s2119_s8 = smov 113   ;;  %s2120_s4 = smov 111  }
  0x16   :  { %s2121_s28 = smov 127   ;;  %s2122_s6 = smov 15   ;;  %v2357_v10 = vand.u32 127, %v118_v8 }
  0x17   :  { %s2123_s2 = smov 1   ;;  %s2124_s30 = smov 17  }
  0x18   :  { %s2125_s1 = smov 16   ;;  %vm267_vm0 = vcmp.lt.s32.totalorder %v2357_v10, 111  ;;  %s3774_s26 = sld [smem:[#allocation11_spill]]  ;;  %vm225_vm1 = vcmp.lt.s32.totalorder %v2357_v10, 113  ;;  %vm246_vm2 = vcmp.lt.s32.totalorder %v2357_v10, 112  ;;  %vm204_vm4 = vcmp.lt.s32.totalorder %v2357_v10, 127 }
  0x19   :  { %vm183_vm5 = vcmp.lt.s32.totalorder %v2357_v10, 1  ;;  %vm162_vm6 = vcmp.lt.s32.totalorder %v2357_v10, 15  ;;  %vm141_vm7 = vcmp.lt.s32.totalorder %v2357_v10, 16  ;;  %vm120_vm8 = vcmp.lt.s32.totalorder %v2357_v10, 17  ;;  %s3775_s7 = sld [smem:[#allocation14_spill]] }
  0x1a   :  { %v2268_v0 = vld [vmem:[%s3773_s3 + $0x8] sm:$0xff]  ;;  %v2279_v1 = vld [vmem:[%s3773_s3 + $0x10] sm:$0xff]  ;;  %v2290_v2 = vld [vmem:[%s3773_s3] sm:$0xff]  ;;  %s3776_s5 = sld [smem:[#allocation15_spill]] }
  0x1b   :  { %240 = vrot.lane.b32.xlu2 %v2268_v0, %s2118_s25  ;;  %219 = vrot.lane.b32.xlu1 %v2268_v0, %s2119_s8  ;;  %v2307_v3 = vld [vmem:[%s3773_s3 + $0x18] sm:$0xff]  ;;  %s3777_s0 = sld [smem:[#allocation16_spill]] }
  0x1c   :  { %261 = vrot.lane.b32.xlu0 %v2268_v0, %s2120_s4  ;;  %s3778_s3 = sld [smem:[#allocation18_spill]] }
  0x1e   :  { %v2363_v11 = vld [vmem:[%s3774_s26 + $0x28] ss:$0 sm:$0xff]  ;;  %v2432_v44 = vld [vmem:[%s3774_s26 + $0x20] ss:$0 sm:$0xff]  ;;  %v2437_v45 = vld [vmem:[%s3774_s26 + $0x30] ss:$0 sm:$0xff] }
  0x1f   :  { %v96_v15 = vld [vmem:[%s3774_s26 + $0x8] sm:$0xff]  ;;  %v2448_v52 = vld [vmem:[%s3774_s26 + $0x38] ss:$0 sm:$0xff] }
  0x20   :  { %v2376_v17 = vperm.slane %v96_v15, 6  ;;  %v2383_v20 = vperm.slane %v96_v15, 7  ;;  %v2392_v25 = vperm.slane %v96_v15, 5  ;;  %v2408_v34 = vperm.slane %v96_v15, 3 }
  0x21   :  { %v2411_v35 = vperm.slane %v96_v15, 2  ;;  %v2454_v58 = vperm.slane %v96_v15, 1  ;;  %v2458_v60 = vperm.slane %v96_v15, 0 }
  0x23   :  { %242 = vrot.lane.b32.xlu2 %v2279_v1, %s2118_s25  ;;  %221 = vrot.lane.b32.xlu1 %v2279_v1, %s2119_s8 }
  0x24   :  { %263 = vrot.lane.b32.xlu0 %v2279_v1, %s2120_s4 }
  0x2b   :  { %200 = vrot.lane.b32.xlu1 %v2279_v1, %s2121_s28  ;;  %154 = vrot.lane.b32.xlu2 %v2290_v2, %s2122_s6 }
  0x2c   :  { %198 = vrot.lane.b32.xlu0 %v2268_v0, %s2121_s28 }
  0x33   :  { %175 = vrot.lane.b32.xlu1 %v2290_v2, %s2123_s2  ;;  %177 = vrot.lane.b32.xlu2 %v2268_v0, %s2123_s2 }
  0x34   :  { %156 = vrot.lane.b32.xlu0 %v2268_v0, %s2122_s6 }
  0x3b   :  { %259 = vrot.lane.b32.xlu1 %v2290_v2, %s2120_s4  ;;  %110 = vrot.lane.b32.xlu2 %v2290_v2, %s2124_s30 }
  0x3c   :  { %265 = vrot.lane.b32.xlu0 %v2307_v3, %s2120_s4 }
  0x43   :  { %133 = vrot.lane.b32.xlu1 %v2290_v2, %s2125_s1  ;;  %135 = vrot.lane.b32.xlu2 %v2268_v0, %s2125_s1 }
  0x44   :  { %112 = vrot.lane.b32.xlu0 %v2268_v0, %s2124_s30 }
  0x4b   :  { %244 = vrot.lane.b32.xlu1 %v2307_v3, %s2118_s25  ;;  %217 = vrot.lane.b32.xlu2 %v2290_v2, %s2119_s8 }
  0x4c   :  { %223 = vrot.lane.b32.xlu0 %v2307_v3, %s2119_s8 }
  0x53   :  { %202 = vrot.lane.b32.xlu1 %v2307_v3, %s2121_s28  ;;  %196 = vrot.lane.b32.xlu2 %v2290_v2, %s2121_s28 }
  0x54   :  { %238 = vrot.lane.b32.xlu0 %v2290_v2, %s2118_s25 }
  0x5b   :  { %179 = vrot.lane.b32.xlu1 %v2279_v1, %s2123_s2  ;;  %160 = vrot.lane.b32.xlu2 %v2307_v3, %s2122_s6 }
  0x5c   :  { %158 = vrot.lane.b32.xlu0 %v2279_v1, %s2122_s6 }
  0x63   :  { %114 = vrot.lane.b32.xlu1 %v2279_v1, %s2124_s30  ;;  %137 = vrot.lane.b32.xlu2 %v2279_v1, %s2125_s1 }
  0x64   :  { %181 = vrot.lane.b32.xlu0 %v2307_v3, %s2123_s2 }
  0x6b   :  { %139 = vrot.lane.b32.xlu1 %v2307_v3, %s2125_s1 }
  0x6c   :  { %116 = vrot.lane.b32.xlu0 %v2307_v3, %s2124_s30 }
  0x75   :  { %v2349_v4 = vpop.permute.xlu2 %240 }
  0x7d   :  { %v2351_v5 = vpop.permute.xlu2 %242 }
  0x7e   :  { %v248_v21 = vsel %vm246_vm2, %v2349_v4, %v2351_v5 }
  0x7f   :  { %v256_v27 = vmul.f32 %v2383_v20, %v248_v21 }
  0x85   :  { %v2353_v6 = vpop.permute.xlu2 %154 }
  0x8d   :  { %v2355_v7 = vpop.permute.xlu1 %219  ;;  %v2365_v12 = vpop.permute.xlu2 %177 }
  0x8e   :  { %v262_v9 = vpop.permute.xlu0 %261 }
  0x95   :  { %v2368_v13 = vpop.permute.xlu1 %221  ;;  %v2399_v29 = vpop.permute.xlu2 %110 }
  0x96   :  { %v264_v14 = vpop.permute.xlu0 %263  ;;  %v227_v18 = vsel %vm225_vm1, %v2355_v7, %v2368_v13 }
  0x97   :  { %v269_v16 = vsel %vm267_vm0, %v262_v9, %v264_v14  ;;  %v235_v23 = vmul.f32 %v2376_v17, %v227_v18 }
  0x98   :  { %v277_v19 = vmul.f32 %v2363_v11, %v269_v16  ;;  %v2478_v16 = vld [vmem:[%s3774_s26 + $0x10] sm:$0xff] }
  0x99   :  { %v293_v31 = vpack.c.bf16 %v256_v27, %v235_v23  ;;  %v2490_v23 = vld [vmem:[%s3775_s7] sm:$0xf]  ;;  %s3784_s7 = smov 8  }
  0x9a   :  { %v297_v22 = vpack.c.bf16 %v277_v19, %v277_v19  ;;  %v2481_v19 = vperm.slane %v2478_v16, 7 }
  0x9c   :  { %v309_v24 = vsel %vm304_vm3, %v297_v22, 0  ;;  %v2485_v22 = vperm.slane %v2478_v16, 6 }
  0x9d   :  { %333 = vmatpush.bf16.msra.mxu3 %v309_v24  ;;  %v2394_v26 = vpop.permute.xlu1 %200  ;;  %v2427_v42 = vpop.permute.xlu2 %135 }
  0x9e   :  { %v2397_v28 = vpop.permute.xlu0 %198 }
  0x9f   :  { %v206_v30 = vsel %vm204_vm4, %v2397_v28, %v2394_v26 }
  0xa0   :  { %v214_v32 = vmul.f32 %v2392_v25, %v206_v30 }
  0xa1   :  { %334 = vmatpush.bf16.msra.mxu3 %v293_v31 }
  0xa2   :  { %v289_v33 = vpack.c.bf16 %v214_v32, %v2268_v0 }
  0xa5   :  { %335 = vmatpush.bf16.msra.mxu3 %v289_v33  ;;  %v2413_v36 = vpop.permute.xlu1 %175  ;;  %v218_v56 = vpop.permute.xlu2 %217 }
  0xa6   :  { %v2415_v37 = vpop.permute.xlu0 %156  ;;  %v186_v38 = vsel %vm183_vm5, %v2413_v36, %v2365_v12 }
  0xa7   :  { %v165_v39 = vsel %vm162_vm6, %v2353_v6, %v2415_v37  ;;  %v193_v40 = vmul.f32 %v2408_v34, %v186_v38 }
  0xa8   :  { %v172_v41 = vmul.f32 %v2411_v35, %v165_v39  ;;  %v2505_v39 = vld [vmem:[%s3774_s26] sm:$0xff] }
  0xaa   :  { %v285_v43 = vpack.c.bf16 %v193_v40, %v172_v41  ;;  %v2516_v41 = vperm.slane %v2505_v39, 6 }
  0xac   :  { %336 = vmatpush.bf16.msra.mxu3 %v285_v43 }
  0xad   :  { %v260_v46 = vpop.permute.xlu1 %259  ;;  %v197_v24 = vpop.permute.xlu2 %196 }
  0xae   :  { %v266_v47 = vpop.permute.xlu0 %265  ;;  %v270_v48 = vsel %vm267_vm0, %v260_v46, %v262_v9 }
  0xaf   :  { %v276_v49 = vmul.f32 %v2432_v44, %v270_v48  ;;  %v268_v50 = vsel %vm267_vm0, %v264_v14, %v266_v47  ;;  %v271_v53 = vsel %vm267_vm0, %v266_v47, %v260_v46  ;;  %v2522_v46 = vperm.slane %v2505_v39, 7 }
  0xb0   :  { %v278_v51 = vmul.f32 %v2437_v45, %v268_v50  ;;  %v279_v61 = vmul.f32 %v2448_v52, %v271_v53  ;;  %v228_v48 = vsel %vm225_vm1, %v218_v56, %v2355_v7  ;;  %v2536_v53 = vperm.slane %v2505_v39, 5 }
  0xb1   :  { %v296_v54 = vpack.c.bf16 %v276_v49, %v276_v49 }
  0xb2   :  { %v298_v55 = vpack.c.bf16 %v278_v51, %v278_v51  ;;  %v299_v15 = vpack.c.bf16 %v279_v61, %v279_v61  ;;  %v207_v51 = vsel %vm204_vm4, %v197_v24, %v2397_v28 }
  0xb3   :  { %v306_v57 = vsel %vm304_vm3, %v296_v54, 0 }
  0xb4   :  { %320 = vmatpush.bf16.msra.mxu0 %v306_v57  ;;  %v312_v59 = vsel %vm304_vm3, %v298_v55, 0  ;;  %v315_v21 = vsel %vm304_vm3, %v299_v15, 0 }
  0xb5   :  { %346 = vmatpush.bf16.msra.mxu2 %v312_v59  ;;  %v2461_v62 = vpop.permute.xlu1 %133  ;;  %v161_v7 = vpop.permute.xlu2 %160 }
  0xb6   :  { %v2463_v63 = vpop.permute.xlu0 %112  ;;  %v144_v0 = vsel %vm141_vm7, %v2461_v62, %v2427_v42 }
  0xb7   :  { %v123_v8 = vsel %vm120_vm8, %v2399_v29, %v2463_v63  ;;  %v151_v9 = vmul.f32 %v2454_v58, %v144_v0  ;;  %v234_v0 = vmul.f32 %v2516_v41, %v228_v48 }
  0xb8   :  { %v130_v14 = vmul.f32 %v2458_v60, %v123_v8 }
  0xba   :  { %v281_v18 = vpack.c.bf16 %v151_v9, %v130_v14 }
  0xbc   :  { %337 = vmatpush.bf16.msra.mxu3 %v281_v18 }
  0xbd   :  { %v245_v27 = vpop.permute.xlu1 %244 }
  0xbe   :  { %v224_v30 = vpop.permute.xlu0 %223  ;;  %v247_v31 = vsel %vm246_vm2, %v2351_v5, %v245_v27  ;;  %v2510_v5 = vld [vmem:[%s3774_s26 + $0x18] sm:$0xff] }
  0xbf   :  { %v226_v32 = vsel %vm225_vm1, %v2368_v13, %v224_v30  ;;  %v257_v33 = vmul.f32 %v2481_v19, %v247_v31  ;;  %1966 = vmatmul.msk.bf16.vlgmr.msra.gmra.mxu3 %vm300_vm9, %v2490_v23  ;;  %v2513_v13 = vperm.slane %v2478_v16, 5  ;;  %v2519_v43 = vperm.slane %v2510_v5, 6 }
  0xc0   :  { %359 = vmatpush.bf16.msrb.mxu3 %v315_v21  ;;  %v236_v38 = vmul.f32 %v2485_v22, %v226_v32  ;;  %v2525_v47 = vperm.slane %v2510_v5, 7  ;;  %v229_v49 = vsel %vm225_vm1, %v224_v30, %v218_v56  ;;  %v2542_v57 = vperm.slane %v2510_v5, 5 }
  0xc2   :  { %v294_v40 = vpack.c.bf16 %v257_v33, %v236_v38 }
  0xc4   :  { %347 = vmatpush.bf16.msra.mxu2 %v294_v40 }
  0xc5   :  { %v203_v50 = vpop.permute.xlu1 %202 }
  0xc6   :  { %v239_v54 = vpop.permute.xlu0 %238  ;;  %v205_v55 = vsel %vm204_vm4, %v2394_v26, %v203_v50  ;;  %v208_v28 = vsel %vm204_vm4, %v203_v50, %v197_v24  ;;  %v237_v26 = vmul.f32 %v2519_v43, %v229_v49  ;;  %v2560_v24 = vperm.slane %v2478_v16, 3  ;;  %v138_v49 = vpop.permute.xlu2 %137 }
  0xc7   :  { %v249_v56 = vsel %vm246_vm2, %v239_v54, %v2349_v4  ;;  %v250_v59 = vsel %vm246_vm2, %v245_v27, %v239_v54  ;;  %v215_v61 = vmul.f32 %v2513_v13, %v205_v55  ;;  %v213_v4 = vmul.f32 %v2536_v53, %v207_v51 }
  0xc8   :  { %v255_v8 = vmul.f32 %v2522_v46, %v249_v56  ;;  %v258_v9 = vmul.f32 %v2525_v47, %v250_v59  ;;  %v216_v21 = vmul.f32 %v2542_v57, %v208_v28  ;;  %v2563_v27 = vperm.slane %v2478_v16, 2 }
  0xc9   :  { %v290_v14 = vpack.c.bf16 %v215_v61, %v2279_v1  ;;  %v288_v32 = vpack.c.bf16 %v213_v4, %v2290_v2  ;;  %v2576_v51 = vperm.slane %v2505_v39, 2  ;;  %v2582_v2 = vperm.slane %v2478_v16, 0 }
  0xca   :  { %v292_v15 = vpack.c.bf16 %v255_v8, %v234_v0  ;;  %v295_v18 = vpack.c.bf16 %v258_v9, %v237_v26  ;;  %v291_v33 = vpack.c.bf16 %v216_v21, %v2307_v3  ;;  %v143_v3 = vsel %vm141_vm7, %v2427_v42, %v138_v49 }
  0xcb   :  { %348 = vmatpush.bf16.msra.mxu2 %v290_v14  ;;  %v2591_v54 = vperm.slane %v2505_v39, 3  ;;  %v2594_v55 = vperm.slane %v2510_v5, 3  ;;  %v166_v56 = vsel %vm162_vm6, %v161_v7, %v2353_v6  ;;  %v2619_v21 = vperm.slane %v2510_v5, 1 }
  0xcc   :  { %321 = vmatpush.bf16.msra.mxu0 %v292_v15  ;;  %360 = vmatpush.bf16.msrb.mxu3 %v295_v18  ;;  %v171_v8 = vmul.f32 %v2576_v51, %v166_v56  ;;  %v2616_v18 = vperm.slane %v2505_v39, 1  ;;  %v369_v56 = vld [vmem:[%s3776_s5] sm:$0xff] }
  0xcd   :  { %v180_v30 = vpop.permute.xlu1 %179 }
  0xce   :  { %v159_v31 = vpop.permute.xlu0 %158  ;;  %v185_v1 = vsel %vm183_vm5, %v2365_v12, %v180_v30  ;;  %v2579_v12 = vperm.slane %v2478_v16, 1 }
  0xcf   :  { %v164_v38 = vsel %vm162_vm6, %v2415_v37, %v159_v31  ;;  %v194_v40 = vmul.f32 %v2560_v24, %v185_v1  ;;  %v2588_v37 = vperm.slane %v2510_v5, 2  ;;  %v163_v16 = vsel %vm162_vm6, %v159_v31, %v161_v7 }
  0xd0   :  { %v173_v48 = vmul.f32 %v2563_v27, %v164_v38  ;;  %322 = vmatpush.bf16.msra.mxu0 %v288_v32  ;;  %361 = vmatpush.bf16.msrb.mxu3 %v291_v33  ;;  %v152_v61 = vmul.f32 %v2579_v12, %v143_v3 }
  0xd1   :  { %v174_v7 = vmul.f32 %v2588_v37, %v163_v16  ;;  %v2126_v16 = vmov 0  }
  0xd2   :  { %v286_v50 = vpack.c.bf16 %v194_v40, %v173_v48  ;;  %2026 = vset.pattern.permute.xlu1 %v2126_v16  ;;  %2027 = vset.pattern.permute.xlu2 %v2126_v16 }
  0xd3   :  { %418 = vperm.xlu1 %2026, %v369_v56   ;;  %2028 = vset.pattern.permute.xlu0 %v2126_v16 }
  0xd4   :  { %349 = vmatpush.bf16.msra.mxu2 %v286_v50 }
  0xd5   :  { %v115_v59 = vpop.permute.xlu1 %114 }
  0xd6   :  { %v182_v28 = vpop.permute.xlu0 %181  ;;  %v122_v42 = vsel %vm120_vm8, %v2463_v63, %v115_v59 }
  0xd7   :  { %v184_v0 = vsel %vm183_vm5, %v180_v30, %v182_v28  ;;  %v187_v26 = vsel %vm183_vm5, %v182_v28, %v2413_v36  ;;  %v131_v6 = vmul.f32 %v2582_v2, %v122_v42  ;;  %v2622_v36 = vperm.slane %v2505_v39, 0 }
  0xd8   :  { %v192_v9 = vmul.f32 %v2591_v54, %v187_v26  ;;  %v195_v14 = vmul.f32 %v2594_v55, %v184_v0  ;;  %v2625_v30 = vperm.slane %v2510_v5, 0 }
  0xd9   :  { %v282_v63 = vpack.c.bf16 %v152_v61, %v131_v6 }
  0xda   :  { %v284_v4 = vpack.c.bf16 %v192_v9, %v171_v8  ;;  %v287_v15 = vpack.c.bf16 %v195_v14, %v174_v7 }
  0xdb   :  { %350 = vmatpush.bf16.msra.mxu2 %v282_v63 }
  0xdc   :  { %323 = vmatpush.bf16.msra.mxu0 %v284_v4  ;;  %362 = vmatpush.bf16.msrb.mxu3 %v287_v15 }
  0xdd   :  { %v140_v31 = vpop.permute.xlu1 %139 }
  0xde   :  { %v117_v1 = vpop.permute.xlu0 %116  ;;  %v142_v32 = vsel %vm141_vm7, %v138_v49, %v140_v31  ;;  %v145_v33 = vsel %vm141_vm7, %v140_v31, %v2461_v62  ;;  %1967 = vmatmul.msk.bf16.vlgmr.msra.gmra.mxu2 %vm300_vm9, %v2490_v23 }
  0xdf   :  { %v121_v38 = vsel %vm120_vm8, %v115_v59, %v117_v1  ;;  %v124_v39 = vsel %vm120_vm8, %v117_v1, %v2399_v29  ;;  %v150_v5 = vmul.f32 %v2616_v18, %v145_v33  ;;  %v153_v40 = vmul.f32 %v2619_v21, %v142_v32  ;;  %v370_v59 = vld [vmem:[%s3777_s0] sm:$0xff]  ;;  %s3779_s0 = sld [smem:[#allocation17_spill]] }
  0xe0   :  { %v129_v48 = vmul.f32 %v2622_v36, %v124_v39  ;;  %v132_v49 = vmul.f32 %v2625_v30, %v121_v38  ;;  %427 = vperm.xlu1 %2026, %v370_v59   ;;  %v2127_v32 = vmov 512.0  }
  0xe1   :  { %2035 = vrcp.f32 %v2127_v32 }
  0xe2   :  { %v280_v50 = vpack.c.bf16 %v150_v5, %v129_v48  ;;  %v283_v62 = vpack.c.bf16 %v153_v40, %v132_v49 }
  0xe4   :  { %324 = vmatpush.bf16.msra.mxu0 %v280_v50  ;;  %363 = vmatpush.bf16.msrb.mxu3 %v283_v62 }
  0xe7   :  { %1965 = vmatmul.msk.bf16.vlgmr.msra.gmra.mxu0 %vm300_vm9, %v2490_v23  ;;  %1968 = vmatmul.msk.bf16.vlgmr.msrb.gmra.mxu3 %vm300_vm9, %v2490_v23  ;;  %v2036_v33 = vpop.eup %2035 }
  0xe8   :  { %v377_v38 = vmul.f32 512.0, %v2036_v33  ;;  %vm381_vm10 = vweird.f32 %v2036_v33 }
  0xea   :  { %v378_v39 = vsub.f32 1.0, %v377_v38 }
  0xec   :  { %v379_v5 = vmul.f32 %v2036_v33, %v378_v39 }
  0xee   :  { %v380_v40 = vadd.f32 %v2036_v33, %v379_v5 }
  0xf0   :  { %v2653_v48 = vsel %vm381_vm10, %v2036_v33, %v380_v40 }
 0x142   :  { %v339_v3 = vpop.f32.mrf.mxu3 }
 0x143   :  { %v385_v61 = vmul.f32 %v339_v3, %v339_v3 }
 0x14a   :  { %v341_v29 = vpop.f32.mrf.mxu3 }
 0x161   :  { %v352_v28 = vpop.f32.mrf.mxu2 }
 0x162   :  { %v386_v26 = vmul.f32 %v352_v28, %v352_v28 }
 0x164   :  { %v326_v42 = vpop.f32.mrf.mxu0 }
 0x165   :  { %v371_v23 = vadd.f32 %v339_v3, %v326_v42  ;;  %v384_v0 = vmul.f32 %v326_v42, %v326_v42 }
 0x167   :  { %v388_v6 = vadd.f32 %v385_v61, %v384_v0  ;;  %v372_v7 = vadd.f32 %v371_v23, %v352_v28 }
 0x169   :  { %v354_v8 = vpop.f32.mrf.mxu2  ;;  %v389_v4 = vadd.f32 %v388_v6, %v386_v26 }
 0x16a   :  { %v365_v9 = vpop.f32.mrf.mxu3  ;;  %v419_v8 = vpop.permute.xlu1 %418 }
 0x16b   :  { %v373_v14 = vadd.f32 %v372_v7, %v365_v9  ;;  %v387_v63 = vmul.f32 %v365_v9, %v365_v9 }
 0x16c   :  { %v328_v15 = vpop.f32.mrf.mxu0 }
 0x16d   :  { %374 = vadd.xlane.f32.xlu2 %v373_v14  ;;  %v390_v31 = vadd.f32 %v389_v4, %v387_v63 }
 0x16f   :  { %391 = vadd.xlane.f32.xlu0 %v390_v31 }
 0x172   :  { %v367_v1 = vpop.f32.mrf.mxu3 }
 0x1e0   :  { %v375_v49 = vpop.xlane.xlu2 %374 }
 0x1e1   :  { %v383_v50 = vmul.f32 %v2653_v48, %v375_v49 }
 0x1e2   :  { %v392_v62 = vpop.xlane.xlu0 %391 }
 0x1e3   :  { %v393_v29 = vmul.f32 %v392_v62, %v2653_v48  ;;  %v394_v56 = vmul.f32 %v383_v50, %v383_v50  ;;  %v398_v63 = vsub.f32 %v339_v3, %v383_v50  ;;  %v399_v4 = vsub.f32 %v352_v28, %v383_v50  ;;  %v428_v62 = vpop.permute.xlu1 %427 }
 0x1e4   :  { %v400_v15 = vsub.f32 %v365_v9, %v383_v50  ;;  %v397_v1 = vsub.f32 %v326_v42, %v383_v50  ;;  %v654_v9 = vld [vmem:[%s3778_s3] sm:$0xff] }
 0x1e5   :  { %v395_v16 = vsub.f32 %v393_v29, %v394_v56 }
 0x1e7   :  { %v396_v59 = vmax.f32 %v395_v16, 0.0 }
 0x1e9   :  { %v401_v61 = vadd.f32 1e-05, %v396_v59 }
 0x1eb   :  { %2037 = vrsqrt.f32 %v401_v61  ;;  %vm408_vm12 = vweird.f32 %v401_v61 }
 0x1f1   :  { %v2038_v23 = vpop.eup %2037 }
 0x1f2   :  { %v403_v0 = vmul.f32 %v2038_v23, %v401_v61  ;;  %vm409_vm11 = vweird.f32 %v2038_v23 }
 0x1f3   :  { %vm410_vm13 = vmor %vm408_vm12, %vm409_vm11 }
 0x1f4   :  { %v404_v26 = vmul.f32 %v2038_v23, %v403_v0 }
 0x1f6   :  { %v405_v6 = vmul.f32 0.5, %v404_v26 }
 0x1f8   :  { %v406_v7 = vsub.f32 1.5, %v405_v6 }
 0x1fa   :  { %v407_v14 = vmul.f32 %v2038_v23, %v406_v7  ;;  %v655_v7 = vld [vmem:[%s3740_s9] sm:$0xff] }
 0x1fc   :  { %v411_v31 = vsel %vm410_vm13, %v2038_v23, %v407_v14 }
 0x1fd   :  { %v413_v32 = vmul.f32 %v411_v31, %v398_v63  ;;  %v414_v33 = vmul.f32 %v411_v31, %v399_v4  ;;  %v415_v38 = vmul.f32 %v411_v31, %v400_v15  ;;  %v412_v39 = vmul.f32 %v411_v31, %v397_v1 }
 0x1ff   :  { %v422_v5 = vmul.f32 %v419_v8, %v413_v32  ;;  %v423_v40 = vmul.f32 %v419_v8, %v414_v33  ;;  %v424_v49 = vmul.f32 %v419_v8, %v415_v38  ;;  %v421_v59 = vmul.f32 %v419_v8, %v412_v39 }
 0x201   :  { %v431_v29 = vadd.f32 %v428_v62, %v422_v5  ;;  %v432_v56 = vadd.f32 %v428_v62, %v423_v40  ;;  %v433_v16 = vadd.f32 %v428_v62, %v424_v49  ;;  %v430_v28 = vadd.f32 %v428_v62, %v421_v59 }
 0x203   :  { %v2657_v0 = vmax.f32 %v431_v29, 0.0  ;;  %v2659_v61 = vmax.f32 %v432_v56, 0.0  ;;  %v2661_v3 = vmax.f32 %v433_v16, 0.0  ;;  %v2669_v42 = vmax.f32 %v430_v28, 0.0 }
 0x205   :  { %525 = vrot.lane.b32.xlu0 %v2661_v3, %s2119_s8  ;;  %555 = vrot.lane.b32.xlu1 %v2659_v61, %s2120_s4 }
 0x206   :  { %553 = vrot.lane.b32.xlu2 %v2657_v0, %s2120_s4 }
 0x20d   :  { %557 = vrot.lane.b32.xlu1 %v2661_v3, %s2120_s4  ;;  %535 = vrot.lane.b32.xlu0 %v2669_v42, %s2118_s25 }
 0x20e   :  { %519 = vrot.lane.b32.xlu2 %v2669_v42, %s2119_s8 }
 0x215   :  { %521 = vrot.lane.b32.xlu0 %v2657_v0, %s2119_s8  ;;  %551 = vrot.lane.b32.xlu1 %v2669_v42, %s2120_s4 }
 0x216   :  { %509 = vrot.lane.b32.xlu2 %v2661_v3, %s2121_s28 }
 0x21d   :  { %473 = vrot.lane.b32.xlu0 %v2657_v0, %s2122_s6  ;;  %523 = vrot.lane.b32.xlu1 %v2659_v61, %s2119_s8 }
 0x21e   :  { %503 = vrot.lane.b32.xlu2 %v2669_v42, %s2121_s28 }
 0x225   :  { %491 = vrot.lane.b32.xlu0 %v2659_v61, %s2123_s2  ;;  %539 = vrot.lane.b32.xlu1 %v2659_v61, %s2118_s25 }
 0x226   :  { %489 = vrot.lane.b32.xlu2 %v2657_v0, %s2123_s2 }
 0x22d   :  { %493 = vrot.lane.b32.xlu0 %v2661_v3, %s2123_s2  ;;  %541 = vrot.lane.b32.xlu1 %v2661_v3, %s2118_s25 }
 0x22e   :  { %477 = vrot.lane.b32.xlu2 %v2661_v3, %s2122_s6 }
 0x235   :  { %457 = vrot.lane.b32.xlu0 %v2657_v0, %s2125_s1  ;;  %507 = vrot.lane.b32.xlu1 %v2659_v61, %s2121_s28 }
 0x236   :  { %443 = vrot.lane.b32.xlu2 %v2659_v61, %s2124_s30 }
 0x23d   :  { %487 = vrot.lane.b32.xlu0 %v2669_v42, %s2123_s2  ;;  %537 = vrot.lane.b32.xlu1 %v2657_v0, %s2118_s25 }
 0x23e   :  { %471 = vrot.lane.b32.xlu2 %v2669_v42, %s2122_s6 }
 0x245   :  { %439 = vrot.lane.b32.xlu0 %v2669_v42, %s2124_s30  ;;  %475 = vrot.lane.b32.xlu1 %v2659_v61, %s2122_s6 }
 0x246   :  { %461 = vrot.lane.b32.xlu2 %v2661_v3, %s2125_s1 }
 0x24d   :  { %505 = vrot.lane.b32.xlu1 %v2657_v0, %s2121_s28 }
 0x255   :  { %441 = vrot.lane.b32.xlu1 %v2657_v0, %s2124_s30 }
 0x25d   :  { %459 = vrot.lane.b32.xlu1 %v2659_v61, %s2125_s1 }
 0x260   :  { %v554_v50 = vpop.permute.xlu2 %553 }
 0x265   :  { %445 = vrot.lane.b32.xlu1 %v2661_v3, %s2124_s30 }
 0x268   :  { %v520_v32 = vpop.permute.xlu2 %519 }
 0x26d   :  { %455 = vrot.lane.b32.xlu1 %v2669_v42, %s2125_s1 }
 0x270   :  { %v510_v16 = vpop.permute.xlu2 %509 }
 0x275   :  { %696 = vperm.xlu1 %2026, %v654_v9  }
 0x277   :  { %v526_v23 = vpop.permute.xlu0 %525  ;;  %v556_v26 = vpop.permute.xlu1 %555 }
 0x278   :  { %v560_v6 = vsel %vm267_vm0, %v554_v50, %v556_v26 }
 0x279   :  { %v564_v8 = vmul.f32 %v2363_v11, %v560_v6 }
 0x27b   :  { %v584_v14 = vpack.c.bf16 %v564_v8, %v564_v8  ;;  %v530_v8 = vsel %vm225_vm1, %v526_v23, %v520_v32 }
 0x27d   :  { %705 = vperm.xlu1 %2026, %v655_v7   ;;  %v594_v63 = vsel %vm304_vm3, %v584_v14, 0 }
 0x27e   :  { %618 = vmatpush.bf16.msra.mxu1 %v594_v63 }
 0x27f   :  { %v558_v4 = vpop.permute.xlu1 %557  ;;  %v536_v31 = vpop.permute.xlu0 %535 }
 0x280   :  { %v559_v15 = vsel %vm267_vm0, %v556_v26, %v558_v4 }
 0x281   :  { %v565_v1 = vmul.f32 %v2437_v45, %v559_v15 }
 0x283   :  { %v585_v33 = vpack.c.bf16 %v565_v1, %v565_v1  ;;  %v534_v1 = vmul.f32 %v530_v8, %v2519_v43 }
 0x285   :  { %v597_v11 = vsel %vm304_vm3, %v585_v33, 0 }
 0x286   :  { %631 = vmatpush.bf16.msrb.mxu2 %v597_v11 }
 0x287   :  { %v552_v38 = vpop.permute.xlu1 %551  ;;  %v522_v62 = vpop.permute.xlu0 %521 }
 0x288   :  { %v561_v39 = vsel %vm267_vm0, %v552_v38, %v554_v50  ;;  %v562_v5 = vsel %vm267_vm0, %v558_v4, %v552_v38  ;;  %v2753_v50 = vpop.permute.xlu2 %503 }
 0x289   :  { %v566_v40 = vmul.f32 %v2448_v52, %v562_v5  ;;  %v563_v49 = vmul.f32 %v2432_v44, %v561_v39  ;;  %v514_v63 = vsel %vm204_vm4, %v510_v16, %v2753_v50 }
 0x28a   :  { %v518_v39 = vmul.f32 %v514_v63, %v2542_v57 }
 0x28b   :  { %v586_v29 = vpack.c.bf16 %v566_v40, %v566_v40  ;;  %v583_v56 = vpack.c.bf16 %v563_v49, %v563_v49 }
 0x28d   :  { %v591_v59 = vsel %vm304_vm3, %v583_v56, 0  ;;  %v600_v28 = vsel %vm304_vm3, %v586_v29, 0  ;;  %v578_v29 = vpack.c.bf16 %v518_v39, %v2661_v3 }
 0x28e   :  { %605 = vmatpush.bf16.msrb.mxu0 %v591_v59  ;;  %644 = vmatpush.bf16.msra.mxu3 %v600_v28 }
 0x28f   :  { %v524_v9 = vpop.permute.xlu1 %523  ;;  %v2751_v26 = vpop.permute.xlu0 %473 }
 0x290   :  { %v527_v44 = vsel %vm225_vm1, %v524_v9, %v526_v23  ;;  %v490_v33 = vpop.permute.xlu2 %489  ;;  %v528_v63 = vsel %vm225_vm1, %v522_v62, %v524_v9 }
 0x291   :  { %v533_v38 = vmul.f32 %v527_v44, %v2485_v22 }
 0x297   :  { %v540_v6 = vpop.permute.xlu1 %539  ;;  %v492_v7 = vpop.permute.xlu0 %491 }
 0x298   :  { %v478_v8 = vpop.permute.xlu2 %477  ;;  %v496_v9 = vsel %vm183_vm5, %v490_v33, %v492_v7 }
 0x29f   :  { %v542_v14 = vpop.permute.xlu1 %541  ;;  %v494_v59 = vpop.permute.xlu0 %493 }
 0x2a0   :  { %v543_v4 = vsel %vm246_vm2, %v540_v6, %v542_v14  ;;  %v546_v15 = vsel %vm246_vm2, %v542_v14, %v536_v31  ;;  %v529_v14 = vsel %vm225_vm1, %v520_v32, %v522_v62  ;;  %v444_v62 = vpop.permute.xlu2 %443 }
 0x2a1   :  { %v550_v11 = vmul.f32 %v546_v15, %v2525_v47  ;;  %v549_v23 = vmul.f32 %v543_v4, %v2481_v19 }
 0x2a3   :  { %v581_v5 = vpack.c.bf16 %v549_v23, %v533_v38  ;;  %v582_v40 = vpack.c.bf16 %v550_v11, %v534_v1  ;;  %v531_v1 = vmul.f32 %v529_v14, %v2516_v41  ;;  %v532_v38 = vmul.f32 %v528_v63, %v2376_v17 }
 0x2a5   :  { %632 = vmatpush.bf16.msrb.mxu2 %v581_v5  ;;  %645 = vmatpush.bf16.msra.mxu3 %v582_v40 }
 0x2a7   :  { %v508_v49 = vpop.permute.xlu1 %507  ;;  %v2788_v39 = vpop.permute.xlu0 %457 }
 0x2a8   :  { %v511_v56 = vsel %vm204_vm4, %v508_v49, %v510_v16 }
 0x2a9   :  { %646 = vmatpush.bf16.msra.mxu3 %v578_v29  ;;  %v517_v28 = vmul.f32 %v511_v56, %v2513_v13  ;;  %v501_v56 = vmul.f32 %v496_v9, %v2560_v24 }
 0x2ab   :  { %v577_v44 = vpack.c.bf16 %v517_v28, %v2659_v61 }
 0x2ad   :  { %633 = vmatpush.bf16.msrb.mxu2 %v577_v44 }
 0x2af   :  { %v538_v4 = vpop.permute.xlu1 %537 }
 0x2b0   :  { %v544_v15 = vsel %vm246_vm2, %v538_v4, %v540_v6  ;;  %v545_v16 = vsel %vm246_vm2, %v536_v31, %v538_v4  ;;  %v495_v31 = vsel %vm183_vm5, %v492_v7, %v494_v59  ;;  %v472_v7 = vpop.permute.xlu2 %471 }
 0x2b1   :  { %v547_v11 = vmul.f32 %v545_v16, %v2522_v46  ;;  %v548_v23 = vmul.f32 %v544_v15, %v2383_v20  ;;  %v502_v28 = vmul.f32 %v495_v31, %v2594_v55  ;;  %v488_v15 = vpop.permute.xlu0 %487  ;;  %v481_v9 = vsel %vm162_vm6, %v472_v7, %v2751_v26 }
 0x2b3   :  { %v579_v32 = vpack.c.bf16 %v547_v11, %v531_v1  ;;  %v580_v5 = vpack.c.bf16 %v548_v23, %v532_v38  ;;  %v497_v1 = vsel %vm183_vm5, %v488_v15, %v490_v33  ;;  %v498_v11 = vsel %vm183_vm5, %v494_v59, %v488_v15 }
 0x2b4   :  { %v482_v33 = vsel %vm162_vm6, %v478_v8, %v472_v7  ;;  %v499_v59 = vmul.f32 %v498_v11, %v2591_v54  ;;  %v500_v31 = vmul.f32 %v497_v1, %v2408_v34  ;;  %v438_v7 = vld [vmem:[%s3779_s0] sm:$0xf]  ;;  %s2132_s0 = smov 119  }
 0x2b5   :  { %606 = vmatpush.bf16.msrb.mxu0 %v579_v32  ;;  %619 = vmatpush.bf16.msra.mxu1 %v580_v5 }
 0x2b7   :  { %v476_v6 = vpop.permute.xlu1 %475 }
 0x2b8   :  { %v479_v40 = vsel %vm162_vm6, %v476_v6, %v478_v8  ;;  %v480_v29 = vsel %vm162_vm6, %v2751_v26, %v476_v6  ;;  %v462_v15 = vpop.permute.xlu2 %461 }
 0x2b9   :  { %v486_v44 = vmul.f32 %v479_v40, %v2588_v37  ;;  %v485_v14 = vmul.f32 %v480_v29, %v2563_v27  ;;  %v484_v40 = vmul.f32 %v481_v9, %v2411_v35 }
 0x2bb   :  { %v573_v63 = vpack.c.bf16 %v501_v56, %v485_v14  ;;  %v574_v4 = vpack.c.bf16 %v502_v28, %v486_v44  ;;  %v572_v26 = vpack.c.bf16 %v500_v31, %v484_v40 }
 0x2bd   :  { %634 = vmatpush.bf16.msrb.mxu2 %v573_v63  ;;  %647 = vmatpush.bf16.msra.mxu3 %v574_v4 }
 0x2bf   :  { %v506_v16 = vpop.permute.xlu1 %505 }
 0x2c0   :  { %v512_v38 = vsel %vm204_vm4, %v506_v16, %v508_v49  ;;  %v513_v23 = vsel %vm204_vm4, %v2753_v50, %v506_v16  ;;  %v483_v50 = vmul.f32 %v482_v33, %v2576_v51 }
 0x2c1   :  { %v515_v32 = vmul.f32 %v513_v23, %v2536_v53  ;;  %v516_v5 = vmul.f32 %v512_v38, %v2392_v25 }
 0x2c2   :  { %v571_v56 = vpack.c.bf16 %v499_v59, %v483_v50 }
 0x2c3   :  { %v575_v49 = vpack.c.bf16 %v515_v32, %v2669_v42  ;;  %v576_v6 = vpack.c.bf16 %v516_v5, %v2657_v0  ;;  %v440_v5 = vpop.permute.xlu0 %439 }
 0x2c5   :  { %607 = vmatpush.bf16.msrb.mxu0 %v575_v49  ;;  %620 = vmatpush.bf16.msra.mxu1 %v576_v6 }
 0x2c7   :  { %v442_v29 = vpop.permute.xlu1 %441 }
 0x2c8   :  { %v448_v8 = vsel %vm120_vm8, %v442_v29, %v444_v62  ;;  %v449_v9 = vsel %vm120_vm8, %v440_v5, %v442_v29 }
 0x2c9   :  { %608 = vmatpush.bf16.msrb.mxu0 %v571_v56  ;;  %621 = vmatpush.bf16.msra.mxu1 %v572_v26  ;;  %v453_v14 = vmul.f32 %v448_v8, %v2582_v2  ;;  %v452_v49 = vmul.f32 %v449_v9, %v2458_v60 }
 0x2cf   :  { %v460_v28 = vpop.permute.xlu1 %459 }
 0x2d0   :  { %v464_v44 = vsel %vm141_vm7, %v2788_v39, %v460_v28  ;;  %v463_v16 = vsel %vm141_vm7, %v460_v28, %v462_v15 }
 0x2d1   :  { %v469_v63 = vmul.f32 %v464_v44, %v2579_v12  ;;  %v470_v38 = vmul.f32 %v463_v16, %v2619_v21 }
 0x2d3   :  { %v569_v4 = vpack.c.bf16 %v469_v63, %v453_v14 }
 0x2d5   :  { %635 = vmatpush.bf16.msrb.mxu2 %v569_v4 }
 0x2d7   :  { %v446_v1 = vpop.permute.xlu1 %445 }
 0x2d8   :  { %v447_v11 = vsel %vm120_vm8, %v444_v62, %v446_v1  ;;  %1971 = vmatmul.msk.bf16.vlgmr.msrb.gmra.mxu2 %vm300_vm9, %v438_v7  ;;  %v450_v33 = vsel %vm120_vm8, %v446_v1, %v440_v5 }
 0x2d9   :  { %v454_v23 = vmul.f32 %v447_v11, %v2625_v30  ;;  %v451_v6 = vmul.f32 %v450_v33, %v2622_v36 }
 0x2db   :  { %v570_v32 = vpack.c.bf16 %v470_v38, %v454_v23 }
 0x2dd   :  { %648 = vmatpush.bf16.msra.mxu3 %v570_v32 }
 0x2df   :  { %v456_v59 = vpop.permute.xlu1 %455 }
 0x2e0   :  { %v465_v62 = vsel %vm141_vm7, %v456_v59, %v2788_v39  ;;  %v466_v31 = vsel %vm141_vm7, %v462_v15, %v456_v59  ;;  %1972 = vmatmul.msk.bf16.vlgmr.msra.gmra.mxu3 %vm300_vm9, %v438_v7 }
 0x2e1   :  { %v467_v50 = vmul.f32 %v466_v31, %v2616_v18  ;;  %v468_v40 = vmul.f32 %v465_v62, %v2454_v58 }
 0x2e3   :  { %v567_v29 = vpack.c.bf16 %v467_v50, %v451_v6  ;;  %v568_v56 = vpack.c.bf16 %v468_v40, %v452_v49 }
 0x2e5   :  { %609 = vmatpush.bf16.msrb.mxu0 %v567_v29  ;;  %622 = vmatpush.bf16.msra.mxu1 %v568_v56 }
 0x2e8   :  { %1969 = vmatmul.msk.bf16.vlgmr.msrb.gmra.mxu0 %vm300_vm9, %v438_v7  ;;  %1970 = vmatmul.msk.bf16.vlgmr.msra.gmra.mxu1 %vm300_vm9, %v438_v7 }
 0x35b   :  { %v637_v39 = vpop.f32.mrf.mxu2 }
 0x35c   :  { %v664_v14 = vmul.f32 %v637_v39, %v637_v39 }
 0x363   :  { %v650_v26 = vpop.f32.mrf.mxu3  ;;  %v639_v8 = vpop.f32.mrf.mxu2 }
 0x364   :  { %v665_v1 = vmul.f32 %v650_v26, %v650_v26 }
 0x365   :  { %v611_v28 = vpop.f32.mrf.mxu0  ;;  %v624_v44 = vpop.f32.mrf.mxu1 }
 0x366   :  { %v662_v63 = vmul.f32 %v611_v28, %v611_v28  ;;  %v656_v4 = vadd.f32 %v624_v44, %v611_v28  ;;  %v663_v15 = vmul.f32 %v624_v44, %v624_v44 }
 0x368   :  { %v657_v16 = vadd.f32 %v656_v4, %v637_v39  ;;  %v666_v11 = vadd.f32 %v663_v15, %v662_v63 }
 0x36a   :  { %v658_v38 = vadd.f32 %v657_v16, %v650_v26  ;;  %v667_v23 = vadd.f32 %v666_v11, %v664_v14  ;;  %v697_v14 = vpop.permute.xlu1 %696 }
 0x36b   :  { %v652_v32 = vpop.f32.mrf.mxu3 }
 0x36c   :  { %659 = vadd.xlane.f32.xlu2 %v658_v38  ;;  %v668_v5 = vadd.f32 %v667_v23, %v665_v1 }
 0x36d   :  { %v613_v9 = vpop.f32.mrf.mxu0  ;;  %v626_v33 = vpop.f32.mrf.mxu1 }
 0x36e   :  { %669 = vadd.xlane.f32.xlu0 %v668_v5 }
 0x3df   :  { %v660_v7 = vpop.xlane.xlu2 %659 }
 0x3e0   :  { %v661_v59 = vmul.f32 %v660_v7, %v2653_v48 }
 0x3e1   :  { %v670_v62 = vpop.xlane.xlu0 %669 }
 0x3e2   :  { %v671_v31 = vmul.f32 %v670_v62, %v2653_v48  ;;  %v672_v49 = vmul.f32 %v661_v59, %v661_v59  ;;  %v676_v16 = vsub.f32 %v624_v44, %v661_v59  ;;  %v677_v1 = vsub.f32 %v637_v39, %v661_v59 }
 0x3e3   :  { %v675_v38 = vsub.f32 %v611_v28, %v661_v59  ;;  %v678_v23 = vsub.f32 %v650_v26, %v661_v59  ;;  %v932_v59 = vld [vmem:[%s3742_s11] sm:$0xff] }
 0x3e4   :  { %v673_v6 = vsub.f32 %v671_v31, %v672_v49  ;;  %v706_v31 = vpop.permute.xlu1 %705 }
 0x3e6   :  { %v674_v50 = vmax.f32 %v673_v6, 0.0 }
 0x3e8   :  { %v679_v40 = vadd.f32 1e-05, %v674_v50 }
 0x3ea   :  { %2039 = vrsqrt.f32 %v679_v40  ;;  %vm686_vm15 = vweird.f32 %v679_v40 }
 0x3f0   :  { %v2040_v29 = vpop.eup %2039 }
 0x3f1   :  { %v681_v56 = vmul.f32 %v2040_v29, %v679_v40  ;;  %vm687_vm14 = vweird.f32 %v2040_v29 }
 0x3f2   :  { %vm688_vm10 = vmor %vm686_vm15, %vm687_vm14 }
 0x3f3   :  { %v682_v8 = vmul.f32 %v2040_v29, %v681_v56 }
 0x3f5   :  { %v683_v63 = vmul.f32 0.5, %v682_v8 }
 0x3f7   :  { %v684_v4 = vsub.f32 1.5, %v683_v63 }
 0x3f9   :  { %v685_v15 = vmul.f32 %v2040_v29, %v684_v4 }
 0x3fb   :  { %v689_v11 = vsel %vm688_vm10, %v2040_v29, %v685_v15  ;;  %v2942_v15 = vld [vmem:[%s3774_s26 + $0x28] ss:$0 sm:$0xff] }
 0x3fc   :  { %v691_v32 = vmul.f32 %v689_v11, %v676_v16  ;;  %v692_v5 = vmul.f32 %v689_v11, %v677_v1  ;;  %v690_v9 = vmul.f32 %v689_v11, %v675_v38  ;;  %v693_v33 = vmul.f32 %v689_v11, %v678_v23  ;;  %3780 = vst [vmem:[#allocation8_spill] sm:$0xff] %v2942_v15  ;;  %v933_v1 = vld [vmem:[%s3743_s12] sm:$0xff] }
 0x3fe   :  { %v700_v7 = vmul.f32 %v697_v14, %v691_v32  ;;  %v701_v62 = vmul.f32 %v697_v14, %v692_v5  ;;  %v699_v50 = vmul.f32 %v697_v14, %v690_v9  ;;  %v702_v56 = vmul.f32 %v697_v14, %v693_v33 }
 0x400   :  { %v709_v49 = vadd.f32 %v706_v31, %v700_v7  ;;  %v710_v6 = vadd.f32 %v706_v31, %v701_v62  ;;  %v708_v39 = vadd.f32 %v706_v31, %v699_v50  ;;  %v711_v26 = vadd.f32 %v706_v31, %v702_v56  ;;  %v2960_v50 = vld [vmem:[%s3774_s26 + $0x20] ss:$0 sm:$0xff] }
 0x401   :  { %3781 = vst [vmem:[#allocation9_spill] sm:$0xff] %v2960_v50 }
 0x402   :  { %v2860_v8 = vmax.f32 %v709_v49, 0.0  ;;  %v2862_v40 = vmax.f32 %v710_v6, 0.0  ;;  %v2870_v28 = vmax.f32 %v708_v39, 0.0  ;;  %v2872_v44 = vmax.f32 %v711_v26, 0.0 }
 0x404   :  { %801 = vrot.lane.b32.xlu0 %v2862_v40, %s2119_s8  ;;  %833 = vrot.lane.b32.xlu1 %v2862_v40, %s2120_s4 }
 0x405   :  { %831 = vrot.lane.b32.xlu2 %v2860_v8, %s2120_s4 }
 0x40c   :  { %835 = vrot.lane.b32.xlu1 %v2872_v44, %s2120_s4  ;;  %813 = vrot.lane.b32.xlu0 %v2870_v28, %s2118_s25 }
 0x40d   :  { %797 = vrot.lane.b32.xlu2 %v2870_v28, %s2119_s8 }
 0x414   :  { %799 = vrot.lane.b32.xlu0 %v2860_v8, %s2119_s8  ;;  %829 = vrot.lane.b32.xlu1 %v2870_v28, %s2120_s4 }
 0x415   :  { %787 = vrot.lane.b32.xlu2 %v2872_v44, %s2121_s28 }
 0x41c   :  { %751 = vrot.lane.b32.xlu0 %v2860_v8, %s2122_s6  ;;  %803 = vrot.lane.b32.xlu1 %v2872_v44, %s2119_s8 }
 0x41d   :  { %781 = vrot.lane.b32.xlu2 %v2870_v28, %s2121_s28 }
 0x424   :  { %769 = vrot.lane.b32.xlu0 %v2862_v40, %s2123_s2  ;;  %817 = vrot.lane.b32.xlu1 %v2862_v40, %s2118_s25 }
 0x425   :  { %767 = vrot.lane.b32.xlu2 %v2860_v8, %s2123_s2 }
 0x42c   :  { %771 = vrot.lane.b32.xlu0 %v2872_v44, %s2123_s2  ;;  %819 = vrot.lane.b32.xlu1 %v2872_v44, %s2118_s25 }
 0x42d   :  { %755 = vrot.lane.b32.xlu2 %v2872_v44, %s2122_s6 }
 0x434   :  { %735 = vrot.lane.b32.xlu0 %v2860_v8, %s2125_s1  ;;  %785 = vrot.lane.b32.xlu1 %v2862_v40, %s2121_s28 }
 0x435   :  { %721 = vrot.lane.b32.xlu2 %v2862_v40, %s2124_s30 }
 0x43c   :  { %765 = vrot.lane.b32.xlu0 %v2870_v28, %s2123_s2  ;;  %815 = vrot.lane.b32.xlu1 %v2860_v8, %s2118_s25 }
 0x43d   :  { %749 = vrot.lane.b32.xlu2 %v2870_v28, %s2122_s6 }
 0x444   :  { %717 = vrot.lane.b32.xlu0 %v2870_v28, %s2124_s30  ;;  %753 = vrot.lane.b32.xlu1 %v2862_v40, %s2122_s6 }
 0x445   :  { %739 = vrot.lane.b32.xlu2 %v2872_v44, %s2125_s1 }
 0x44c   :  { %783 = vrot.lane.b32.xlu1 %v2860_v8, %s2121_s28 }
 0x454   :  { %719 = vrot.lane.b32.xlu1 %v2860_v8, %s2124_s30 }
 0x45c   :  { %737 = vrot.lane.b32.xlu1 %v2862_v40, %s2125_s1 }
 0x45f   :  { %v832_v29 = vpop.permute.xlu2 %831 }
 0x464   :  { %723 = vrot.lane.b32.xlu1 %v2872_v44, %s2124_s30 }
 0x467   :  { %v798_v33 = vpop.permute.xlu2 %797 }
 0x46c   :  { %733 = vrot.lane.b32.xlu1 %v2870_v28, %s2125_s1 }
 0x474   :  { %974 = vperm.xlu1 %2026, %v932_v59  }
 0x476   :  { %v2935_v14 = vpop.permute.xlu0 %801  ;;  %v834_v63 = vpop.permute.xlu1 %833 }
 0x477   :  { %v838_v4 = vsel %vm267_vm0, %v832_v29, %v834_v63 }
 0x478   :  { %v842_v16 = vmul.f32 %v2942_v15, %v838_v4 }
 0x47a   :  { %v862_v11 = vpack.c.bf16 %v842_v16, %v842_v16 }
 0x47c   :  { %983 = vperm.xlu1 %2026, %v933_v1   ;;  %v872_v38 = vsel %vm304_vm3, %v862_v11, 0 }
 0x47d   :  { %896 = vmatpush.bf16.msrb.mxu1 %v872_v38 }
 0x47e   :  { %v836_v23 = vpop.permute.xlu1 %835  ;;  %v814_v9 = vpop.permute.xlu0 %813 }
 0x47f   :  { %v837_v32 = vsel %vm267_vm0, %v834_v63, %v836_v23  ;;  %v788_v63 = vpop.permute.xlu2 %787 }
 0x480   :  { %v843_v5 = vmul.f32 %v2437_v45, %v837_v32 }
 0x482   :  { %v863_v7 = vpack.c.bf16 %v843_v5, %v843_v5 }
 0x484   :  { %v875_v62 = vsel %vm304_vm3, %v863_v7, 0 }
 0x485   :  { %909 = vmatpush.bf16.msra.mxu2 %v875_v62 }
 0x486   :  { %v830_v31 = vpop.permute.xlu1 %829  ;;  %v800_v39 = vpop.permute.xlu0 %799 }
 0x487   :  { %v839_v49 = vsel %vm267_vm0, %v830_v31, %v832_v29  ;;  %v840_v6 = vsel %vm267_vm0, %v836_v23, %v830_v31  ;;  %v2968_v11 = vpop.permute.xlu2 %781 }
 0x488   :  { %v841_v45 = vmul.f32 %v2960_v50, %v839_v49  ;;  %v844_v56 = vmul.f32 %v2448_v52, %v840_v6  ;;  %v792_v7 = vsel %vm204_vm4, %v788_v63, %v2968_v11 }
 0x48a   :  { %v861_v26 = vpack.c.bf16 %v841_v45, %v841_v45  ;;  %v864_v59 = vpack.c.bf16 %v844_v56, %v844_v56 }
 0x48c   :  { %v869_v4 = vsel %vm304_vm3, %v861_v26, 0  ;;  %v878_v29 = vsel %vm304_vm3, %v864_v59, 0  ;;  %v796_v59 = vmul.f32 %v792_v7, %v2542_v57  ;;  %v806_v7 = vsel %vm225_vm1, %v800_v39, %v2935_v14 }
 0x48d   :  { %883 = vmatpush.bf16.msra.mxu0 %v869_v4  ;;  %922 = vmatpush.bf16.msrb.mxu3 %v878_v29 }
 0x48e   :  { %v804_v16 = vpop.permute.xlu1 %803  ;;  %v2966_v1 = vpop.permute.xlu0 %751  ;;  %v856_v50 = vpack.c.bf16 %v796_v59, %v2872_v44 }
 0x48f   :  { %v805_v52 = vsel %vm225_vm1, %v2935_v14, %v804_v16  ;;  %v808_v23 = vsel %vm225_vm1, %v804_v16, %v798_v33  ;;  %v768_v49 = vpop.permute.xlu2 %767 }
 0x490   :  { %v811_v6 = vmul.f32 %v805_v52, %v2485_v22  ;;  %v812_v45 = vmul.f32 %v808_v23, %v2519_v43 }
 0x496   :  { %v818_v38 = vpop.permute.xlu1 %817  ;;  %v770_v32 = vpop.permute.xlu0 %769 }
 0x497   :  { %v756_v23 = vpop.permute.xlu2 %755 }
 0x49e   :  { %v820_v5 = vpop.permute.xlu1 %819  ;;  %v772_v15 = vpop.permute.xlu0 %771 }
 0x49f   :  { %v821_v62 = vsel %vm246_vm2, %v818_v38, %v820_v5  ;;  %v824_v31 = vsel %vm246_vm2, %v820_v5, %v814_v9 }
 0x4a0   :  { %v827_v56 = vmul.f32 %v821_v62, %v2481_v19  ;;  %v828_v26 = vmul.f32 %v824_v31, %v2525_v47  ;;  %v807_v31 = vsel %vm225_vm1, %v798_v33, %v800_v39  ;;  %v722_v33 = vpop.permute.xlu2 %721  ;;  %v774_v39 = vsel %vm183_vm5, %v768_v49, %v770_v32 }
 0x4a2   :  { %v859_v4 = vpack.c.bf16 %v827_v56, %v811_v6  ;;  %v860_v29 = vpack.c.bf16 %v828_v26, %v812_v45  ;;  %v810_v45 = vmul.f32 %v806_v7, %v2376_v17 }
 0x4a4   :  { %910 = vmatpush.bf16.msra.mxu2 %v859_v4  ;;  %923 = vmatpush.bf16.msrb.mxu3 %v860_v29 }
 0x4a6   :  { %v786_v16 = vpop.permute.xlu1 %785  ;;  %v3005_v26 = vpop.permute.xlu0 %735 }
 0x4a7   :  { %v789_v5 = vsel %vm204_vm4, %v786_v16, %v788_v63 }
 0x4a8   :  { %v795_v52 = vmul.f32 %v789_v5, %v2513_v13  ;;  %924 = vmatpush.bf16.msrb.mxu3 %v856_v50  ;;  %v809_v50 = vmul.f32 %v807_v31, %v2516_v41  ;;  %v779_v5 = vmul.f32 %v774_v39, %v2560_v24 }
 0x4aa   :  { %v855_v62 = vpack.c.bf16 %v795_v52, %v2862_v40 }
 0x4ac   :  { %911 = vmatpush.bf16.msra.mxu2 %v855_v62 }
 0x4ae   :  { %v816_v6 = vpop.permute.xlu1 %815 }
 0x4af   :  { %v822_v44 = vsel %vm246_vm2, %v816_v6, %v818_v38  ;;  %v823_v63 = vsel %vm246_vm2, %v814_v9, %v816_v6  ;;  %v773_v9 = vsel %vm183_vm5, %v770_v32, %v772_v15  ;;  %v750_v32 = vpop.permute.xlu2 %749 }
 0x4b0   :  { %v825_v40 = vmul.f32 %v823_v63, %v2522_v46  ;;  %v826_v56 = vmul.f32 %v822_v44, %v2383_v20  ;;  %v780_v52 = vmul.f32 %v773_v9, %v2594_v55  ;;  %v766_v44 = vpop.permute.xlu0 %765  ;;  %v759_v39 = vsel %vm162_vm6, %v750_v32, %v2966_v1 }
 0x4b2   :  { %v857_v14 = vpack.c.bf16 %v825_v40, %v809_v50  ;;  %v858_v59 = vpack.c.bf16 %v826_v56, %v810_v45  ;;  %v775_v50 = vsel %vm183_vm5, %v766_v44, %v768_v49  ;;  %v776_v45 = vsel %vm183_vm5, %v772_v15, %v766_v44 }
 0x4b3   :  { %v760_v49 = vsel %vm162_vm6, %v756_v23, %v750_v32  ;;  %v777_v15 = vmul.f32 %v776_v45, %v2591_v54  ;;  %v778_v9 = vmul.f32 %v775_v50, %v2408_v34 }
 0x4b4   :  { %884 = vmatpush.bf16.msra.mxu0 %v857_v14  ;;  %897 = vmatpush.bf16.msrb.mxu1 %v858_v59 }
 0x4b6   :  { %v754_v38 = vpop.permute.xlu1 %753 }
 0x4b7   :  { %v757_v4 = vsel %vm162_vm6, %v754_v38, %v756_v23  ;;  %v758_v29 = vsel %vm162_vm6, %v2966_v1, %v754_v38 }
 0x4b8   :  { %v763_v62 = vmul.f32 %v758_v29, %v2563_v27  ;;  %v764_v7 = vmul.f32 %v757_v4, %v2588_v37  ;;  %v762_v4 = vmul.f32 %v759_v39, %v2411_v35 }
 0x4ba   :  { %v851_v31 = vpack.c.bf16 %v779_v5, %v763_v62  ;;  %v852_v6 = vpack.c.bf16 %v780_v52, %v764_v7  ;;  %v850_v1 = vpack.c.bf16 %v778_v9, %v762_v4 }
 0x4bc   :  { %912 = vmatpush.bf16.msra.mxu2 %v851_v31  ;;  %925 = vmatpush.bf16.msrb.mxu3 %v852_v6  ;;  %v740_v31 = vpop.permute.xlu2 %739  ;;  %v716_v6 = vld [vmem:[%s3741_s10] sm:$0xf]  ;;  %s2133_s10 = smov 9  }
 0x4be   :  { %v784_v63 = vpop.permute.xlu1 %783 }
 0x4bf   :  { %v790_v40 = vsel %vm204_vm4, %v784_v63, %v786_v16  ;;  %v791_v56 = vsel %vm204_vm4, %v2968_v11, %v784_v63  ;;  %v761_v11 = vmul.f32 %v760_v49, %v2576_v51 }
 0x4c0   :  { %v793_v14 = vmul.f32 %v791_v56, %v2536_v53  ;;  %v794_v59 = vmul.f32 %v790_v40, %v2392_v25  ;;  %v718_v56 = vpop.permute.xlu0 %717 }
 0x4c1   :  { %v849_v5 = vpack.c.bf16 %v777_v15, %v761_v11 }
 0x4c2   :  { %v853_v16 = vpack.c.bf16 %v793_v14, %v2870_v28  ;;  %v854_v38 = vpack.c.bf16 %v794_v59, %v2860_v8 }
 0x4c4   :  { %885 = vmatpush.bf16.msra.mxu0 %v853_v16  ;;  %898 = vmatpush.bf16.msrb.mxu1 %v854_v38 }
 0x4c6   :  { %v720_v29 = vpop.permute.xlu1 %719 }
 0x4c7   :  { %v726_v23 = vsel %vm120_vm8, %v720_v29, %v722_v33  ;;  %v727_v14 = vsel %vm120_vm8, %v718_v56, %v720_v29 }
 0x4c8   :  { %886 = vmatpush.bf16.msra.mxu0 %v849_v5  ;;  %899 = vmatpush.bf16.msrb.mxu1 %v850_v1  ;;  %v731_v8 = vmul.f32 %v726_v23, %v2582_v2  ;;  %v730_v15 = vmul.f32 %v727_v14, %v2458_v60 }
 0x4ce   :  { %v738_v52 = vpop.permute.xlu1 %737 }
 0x4cf   :  { %v742_v28 = vsel %vm141_vm7, %v3005_v26, %v738_v52  ;;  %v741_v44 = vsel %vm141_vm7, %v738_v52, %v740_v31 }
 0x4d0   :  { %v747_v62 = vmul.f32 %v742_v28, %v2579_v12  ;;  %v748_v50 = vmul.f32 %v741_v44, %v2619_v21 }
 0x4d2   :  { %v847_v7 = vpack.c.bf16 %v747_v62, %v731_v8 }
 0x4d4   :  { %913 = vmatpush.bf16.msra.mxu2 %v847_v7 }
 0x4d6   :  { %v724_v32 = vpop.permute.xlu1 %723 }
 0x4d7   :  { %v725_v63 = vsel %vm120_vm8, %v722_v33, %v724_v32  ;;  %1975 = vmatmul.msk.bf16.vlgmr.msra.gmra.mxu2 %vm300_vm9, %v716_v6  ;;  %v728_v59 = vsel %vm120_vm8, %v724_v32, %v718_v56 }
 0x4d8   :  { %v732_v45 = vmul.f32 %v725_v63, %v2625_v30  ;;  %v729_v9 = vmul.f32 %v728_v59, %v2622_v36 }
 0x4da   :  { %v848_v40 = vpack.c.bf16 %v748_v50, %v732_v45 }
 0x4dc   :  { %926 = vmatpush.bf16.msrb.mxu3 %v848_v40 }
 0x4de   :  { %v734_v39 = vpop.permute.xlu1 %733 }
 0x4df   :  { %v743_v33 = vsel %vm141_vm7, %v734_v39, %v3005_v26  ;;  %v744_v49 = vsel %vm141_vm7, %v740_v31, %v734_v39  ;;  %1976 = vmatmul.msk.bf16.vlgmr.msrb.gmra.mxu3 %vm300_vm9, %v716_v6 }
 0x4e0   :  { %v745_v16 = vmul.f32 %v744_v49, %v2616_v18  ;;  %v746_v38 = vmul.f32 %v743_v33, %v2454_v58 }
 0x4e2   :  { %v845_v11 = vpack.c.bf16 %v745_v16, %v729_v9  ;;  %v846_v4 = vpack.c.bf16 %v746_v38, %v730_v15 }
 0x4e4   :  { %887 = vmatpush.bf16.msra.mxu0 %v845_v11  ;;  %900 = vmatpush.bf16.msrb.mxu1 %v846_v4 }
 0x4e6   :  { %v975_v4 = vpop.permute.xlu1 %974 }
 0x4e7   :  { %1973 = vmatmul.msk.bf16.vlgmr.msra.gmra.mxu0 %vm300_vm9, %v716_v6  ;;  %1974 = vmatmul.msk.bf16.vlgmr.msrb.gmra.mxu1 %vm300_vm9, %v716_v6 }
 0x55a   :  { %v915_v26 = vpop.f32.mrf.mxu2 }
 0x55b   :  { %v942_v52 = vmul.f32 %v915_v26, %v915_v26 }
 0x562   :  { %v928_v29 = vpop.f32.mrf.mxu3  ;;  %v917_v5 = vpop.f32.mrf.mxu2 }
 0x563   :  { %v943_v31 = vmul.f32 %v928_v29, %v928_v29 }
 0x564   :  { %v889_v1 = vpop.f32.mrf.mxu0  ;;  %v902_v23 = vpop.f32.mrf.mxu1 }
 0x565   :  { %v940_v28 = vmul.f32 %v889_v1, %v889_v1  ;;  %v934_v8 = vadd.f32 %v902_v23, %v889_v1  ;;  %v941_v62 = vmul.f32 %v902_v23, %v902_v23 }
 0x567   :  { %v935_v7 = vadd.f32 %v934_v8, %v915_v26  ;;  %v944_v44 = vadd.f32 %v941_v62, %v940_v28 }
 0x569   :  { %v936_v32 = vadd.f32 %v935_v7, %v928_v29  ;;  %v945_v63 = vadd.f32 %v944_v44, %v942_v52 }
 0x56a   :  { %v930_v50 = vpop.f32.mrf.mxu3 }
 0x56b   :  { %937 = vadd.xlane.f32.xlu2 %v936_v32  ;;  %v946_v45 = vadd.f32 %v945_v63, %v943_v31 }
 0x56c   :  { %v891_v40 = vpop.f32.mrf.mxu0  ;;  %v904_v56 = vpop.f32.mrf.mxu1 }
 0x56d   :  { %947 = vadd.xlane.f32.xlu0 %v946_v45  ;;  %v984_v45 = vpop.permute.xlu1 %983 }
 0x5de   :  { %v938_v6 = vpop.xlane.xlu2 %937 }
 0x5df   :  { %v939_v14 = vmul.f32 %v938_v6, %v2653_v48 }
 0x5e0   :  { %v948_v59 = vpop.xlane.xlu0 %947 }
 0x5e1   :  { %v949_v39 = vmul.f32 %v948_v59, %v2653_v48  ;;  %v950_v33 = vmul.f32 %v939_v14, %v939_v14  ;;  %v953_v8 = vsub.f32 %v889_v1, %v939_v14  ;;  %v955_v62 = vsub.f32 %v915_v26, %v939_v14 }
 0x5e2   :  { %v956_v7 = vsub.f32 %v928_v29, %v939_v14  ;;  %v954_v59 = vsub.f32 %v902_v23, %v939_v14 }
 0x5e3   :  { %v951_v49 = vsub.f32 %v949_v39, %v950_v33 }
 0x5e5   :  { %v952_v15 = vmax.f32 %v951_v49, 0.0 }
 0x5e7   :  { %v957_v9 = vadd.f32 1e-05, %v952_v15 }
 0x5e9   :  { %2041 = vrsqrt.f32 %v957_v9  ;;  %vm964_vm12 = vweird.f32 %v957_v9 }
 0x5ef   :  { %v2042_v16 = vpop.eup %2041 }
 0x5f0   :  { %v959_v38 = vmul.f32 %v2042_v16, %v957_v9  ;;  %vm965_vm11 = vweird.f32 %v2042_v16 }
 0x5f1   :  { %vm966_vm13 = vmor %vm964_vm12, %vm965_vm11 }
 0x5f2   :  { %v960_v11 = vmul.f32 %v2042_v16, %v959_v38 }
 0x5f4   :  { %v961_v5 = vmul.f32 0.5, %v960_v11 }
 0x5f6   :  { %v962_v52 = vsub.f32 1.5, %v961_v5 }
 0x5f8   :  { %v963_v28 = vmul.f32 %v2042_v16, %v962_v52  ;;  %v2061_v52 = vld [vmem:[%s3774_s26 + $0x30] ss:$0 sm:$0xff] }
 0x5fa   :  { %v967_v31 = vsel %vm966_vm13, %v2042_v16, %v963_v28 }
 0x5fb   :  { %v968_v48 = vmul.f32 %v967_v31, %v953_v8  ;;  %v970_v44 = vmul.f32 %v967_v31, %v955_v62  ;;  %v971_v32 = vmul.f32 %v967_v31, %v956_v7  ;;  %v969_v49 = vmul.f32 %v967_v31, %v954_v59 }
 0x5fd   :  { %v979_v63 = vmul.f32 %v975_v4, %v970_v44  ;;  %v980_v50 = vmul.f32 %v975_v4, %v971_v32  ;;  %v977_v40 = vmul.f32 %v975_v4, %v968_v48  ;;  %v978_v23 = vmul.f32 %v975_v4, %v969_v49  ;;  %v3782_v44 = vld [vmem:[#allocation8_spill] sm:$0xff] }
 0x5ff   :  { %v988_v56 = vadd.f32 %v984_v45, %v979_v63  ;;  %v989_v6 = vadd.f32 %v984_v45, %v980_v50  ;;  %v986_v1 = vadd.f32 %v984_v45, %v977_v40  ;;  %v987_v14 = vadd.f32 %v984_v45, %v978_v23  ;;  %v3783_v45 = vld [vmem:[#allocation9_spill] sm:$0xff] }
 0x601   :  { %v992_v39 = vadd.f32 %v988_v56, %v2659_v61  ;;  %v993_v33 = vadd.f32 %v989_v6, %v2661_v3  ;;  %v990_v61 = vadd.f32 %v986_v1, %v2669_v42  ;;  %v991_v15 = vadd.f32 %v987_v14, %v2657_v0  ;;  %v2062_v56 = vld [vmem:[%s3774_s26 + $0x38] ss:$0 sm:$0xff]  ;;  %s1955_s26 = sshll.u32 %s3755_s24, 4  ;;  %s1956_s26 = int_to_ptr.hbm [resolvable:$true] %s1955_s26 }
 0x603   :  { %v3079_v26 = vmax.f32 %v992_v39, 0.0  ;;  %v3081_v29 = vmax.f32 %v993_v33, 0.0  ;;  %v3090_v3 = vmax.f32 %v990_v61, 0.0  ;;  %v3099_v9 = vmax.f32 %v991_v15, 0.0 }
 0x605   :  { %1150 = vrot.lane.b32.xlu0 %v3081_v29, %s2119_s8  ;;  %1148 = vrot.lane.b32.xlu2 %v3079_v26, %s2119_s8 }
 0x606   :  { %1180 = vrot.lane.b32.xlu1 %v3079_v26, %s2120_s4 }
 0x60d   :  { %1132 = vrot.lane.b32.xlu2 %v3079_v26, %s2121_s28  ;;  %1160 = vrot.lane.b32.xlu0 %v3090_v3, %s2118_s25 }
 0x60e   :  { %1182 = vrot.lane.b32.xlu1 %v3081_v29, %s2120_s4 }
 0x615   :  { %1128 = vrot.lane.b32.xlu2 %v3090_v3, %s2121_s28  ;;  %1178 = vrot.lane.b32.xlu0 %v3099_v9, %s2120_s4 }
 0x616   :  { %1176 = vrot.lane.b32.xlu1 %v3090_v3, %s2120_s4 }
 0x61d   :  { %1114 = vrot.lane.b32.xlu2 %v3099_v9, %s2123_s2  ;;  %1100 = vrot.lane.b32.xlu0 %v3079_v26, %s2122_s6 }
 0x61e   :  { %1164 = vrot.lane.b32.xlu1 %v3079_v26, %s2118_s25 }
 0x625   :  { %1118 = vrot.lane.b32.xlu2 %v3081_v29, %s2123_s2  ;;  %1102 = vrot.lane.b32.xlu0 %v3081_v29, %s2122_s6 }
 0x626   :  { %1166 = vrot.lane.b32.xlu1 %v3081_v29, %s2118_s25 }
 0x62d   :  { %1066 = vrot.lane.b32.xlu2 %v3099_v9, %s2124_s30  ;;  %1162 = vrot.lane.b32.xlu0 %v3099_v9, %s2118_s25 }
 0x62e   :  { %1144 = vrot.lane.b32.xlu1 %v3090_v3, %s2119_s8 }
 0x635   :  { %1084 = vrot.lane.b32.xlu2 %v3079_v26, %s2125_s1  ;;  %1082 = vrot.lane.b32.xlu0 %v3099_v9, %s2125_s1 }
 0x636   :  { %1134 = vrot.lane.b32.xlu1 %v3081_v29, %s2121_s28 }
 0x63d   :  { %1130 = vrot.lane.b32.xlu2 %v3099_v9, %s2121_s28  ;;  %1086 = vrot.lane.b32.xlu0 %v3081_v29, %s2125_s1 }
 0x63e   :  { %1098 = vrot.lane.b32.xlu1 %v3099_v9, %s2122_s6 }
 0x645   :  { %1064 = vrot.lane.b32.xlu2 %v3090_v3, %s2124_s30  ;;  %1112 = vrot.lane.b32.xlu0 %v3090_v3, %s2123_s2 }
 0x646   :  { %1116 = vrot.lane.b32.xlu1 %v3079_v26, %s2123_s2 }
 0x64e   :  { %1146 = vrot.lane.b32.xlu1 %v3099_v9, %s2119_s8 }
 0x656   :  { %1068 = vrot.lane.b32.xlu1 %v3079_v26, %s2124_s30 }
 0x65e   :  { %1070 = vrot.lane.b32.xlu1 %v3081_v29, %s2124_s30  ;;  %s2135_s30 = smov [#allocation5]  }
 0x65f   :  { %v3153_v42 = vpop.permute.xlu2 %1148 }
 0x666   :  { %1096 = vrot.lane.b32.xlu1 %v3090_v3, %s2122_s6 }
 0x667   :  { %v3159_v5 = vpop.permute.xlu2 %1132 }
 0x66e   :  { %1080 = vrot.lane.b32.xlu1 %v3090_v3, %s2125_s1 }
 0x66f   :  { %v1129_v39 = vpop.permute.xlu2 %1128 }
 0x677   :  { %v1151_v0 = vpop.permute.xlu0 %1150  ;;  %v3179_v15 = vpop.permute.xlu2 %1114 }
 0x678   :  { %v1181_v16 = vpop.permute.xlu1 %1180 }
 0x67f   :  { %v3155_v38 = vpop.permute.xlu0 %1160 }
 0x680   :  { %v1183_v11 = vpop.permute.xlu1 %1182 }
 0x681   :  { %v1184_v4 = vsel %vm267_vm0, %v1181_v16, %v1183_v11 }
 0x682   :  { %v1190_v28 = vmul.f32 %v2061_v52, %v1184_v4 }
 0x684   :  { %v1210_v8 = vpack.c.bf16 %v1190_v28, %v1190_v28 }
 0x686   :  { %v1227_v62 = vsel %vm304_vm3, %v1210_v8, 0 }
 0x687   :  { %1263 = vmatpush.bf16.msrb.mxu2 %v1227_v62  ;;  %v1179_v7 = vpop.permute.xlu0 %1178 }
 0x688   :  { %v1185_v31 = vsel %vm267_vm0, %v1179_v7, %v1181_v16  ;;  %v1177_v48 = vpop.permute.xlu1 %1176  ;;  %v1152_v16 = vsel %vm225_vm1, %v3153_v42, %v1151_v0 }
 0x689   :  { %v1189_v32 = vmul.f32 %v3782_v44, %v1185_v31  ;;  %v1186_v63 = vsel %vm267_vm0, %v1177_v48, %v1179_v7  ;;  %v1187_v50 = vsel %vm267_vm0, %v1183_v11, %v1177_v48  ;;  %v1158_v52 = vmul.f32 %v1152_v16, %v2485_v22  ;;  %v3191_v7 = vpop.permute.xlu2 %1118 }
 0x68a   :  { %v1188_v40 = vmul.f32 %v3783_v45, %v1186_v63  ;;  %v1191_v6 = vmul.f32 %v2062_v56, %v1187_v50  ;;  %vm1551_vm0 = vcmask 64512  }
 0x68b   :  { %v1209_v59 = vpack.c.bf16 %v1189_v32, %v1189_v32 }
 0x68c   :  { %v1208_v33 = vpack.c.bf16 %v1188_v40, %v1188_v40  ;;  %v1211_v49 = vpack.c.bf16 %v1191_v6, %v1191_v6 }
 0x68d   :  { %v1224_v1 = vsel %vm304_vm3, %v1209_v59, 0 }
 0x68e   :  { %v1221_v23 = vsel %vm304_vm3, %v1208_v33, 0  ;;  %1249 = vmatpush.bf16.msra.mxu1 %v1224_v1  ;;  %v1230_v61 = vsel %vm304_vm3, %v1211_v49, 0 }
 0x68f   :  { %1235 = vmatpush.bf16.msrb.mxu0 %v1221_v23  ;;  %1277 = vmatpush.bf16.msra.mxu3 %v1230_v61  ;;  %v1101_v48 = vpop.permute.xlu0 %1100 }
 0x690   :  { %v1165_v14 = vpop.permute.xlu1 %1164 }
 0x691   :  { %v3202_v40 = vpop.permute.xlu2 %1066 }
 0x697   :  { %v3206_v6 = vpop.permute.xlu0 %1102 }
 0x698   :  { %v1167_v11 = vpop.permute.xlu1 %1166  ;;  %v1104_v1 = vsel %vm162_vm6, %v1101_v48, %v3206_v6 }
 0x699   :  { %v1168_v4 = vsel %vm246_vm2, %v1165_v14, %v1167_v11  ;;  %v1171_v62 = vsel %vm246_vm2, %v1167_v11, %v3155_v38  ;;  %v1085_v33 = vpop.permute.xlu2 %1084  ;;  %v1111_v16 = vmul.f32 %v1104_v1, %v2588_v37  ;;  %v3280_v1 = vld [vmem:[#allocation2 + $0x168] sm:$0xff] }
 0x69a   :  { %v1174_v28 = vmul.f32 %v1168_v4, %v2481_v19  ;;  %v1175_v32 = vmul.f32 %v1171_v62, %v2525_v47 }
 0x69c   :  { %v1206_v8 = vpack.c.bf16 %v1174_v28, %v1158_v52 }
 0x69e   :  { %1264 = vmatpush.bf16.msrb.mxu2 %v1206_v8 }
 0x69f   :  { %v1163_v49 = vpop.permute.xlu0 %1162 }
 0x6a0   :  { %v1145_v31 = vpop.permute.xlu1 %1144 }
 0x6a1   :  { %v1155_v44 = vsel %vm225_vm1, %v1151_v0, %v1145_v31  ;;  %v1131_v62 = vpop.permute.xlu2 %1130 }
 0x6a2   :  { %v1159_v63 = vmul.f32 %v1155_v44, %v2519_v43  ;;  %v1170_v44 = vsel %vm246_vm2, %v3155_v38, %v1163_v49 }
 0x6a4   :  { %v1207_v22 = vpack.c.bf16 %v1175_v32, %v1159_v63  ;;  %v1172_v63 = vmul.f32 %v1170_v44, %v2522_v46 }
 0x6a6   :  { %1278 = vmatpush.bf16.msra.mxu3 %v1207_v22 }
 0x6a7   :  { %v3233_v32 = vpop.permute.xlu0 %1082 }
 0x6a8   :  { %v1135_v19 = vpop.permute.xlu1 %1134 }
 0x6a9   :  { %v1136_v50 = vsel %vm204_vm4, %v3159_v5, %v1135_v19  ;;  %v1139_v45 = vsel %vm204_vm4, %v1135_v19, %v1129_v39 }
 0x6aa   :  { %v1142_v56 = vmul.f32 %v1136_v50, %v2513_v13  ;;  %v1143_v0 = vmul.f32 %v1139_v45, %v2542_v57 }
 0x6ac   :  { %v1202_v43 = vpack.c.bf16 %v1142_v56, %v3079_v26  ;;  %v1203_v47 = vpack.c.bf16 %v1143_v0, %v3081_v29  ;;  %v3263_v0 = vld [vmem:[#allocation2 + $0x178] sm:$0xff] }
 0x6ae   :  { %1265 = vmatpush.bf16.msrb.mxu2 %v1202_v43  ;;  %1279 = vmatpush.bf16.msra.mxu3 %v1203_v47  ;;  %v3268_v43 = vld [vmem:[%s3744_s13] sm:$0xff]  ;;  %s3785_s13 = sld [smem:[#allocation12_spill]] }
 0x6b0   :  { %v3210_v59 = vpop.permute.xlu1 %1098 }
 0x6b1   :  { %v1105_v13 = vsel %vm162_vm6, %v3210_v59, %v1101_v48  ;;  %v1169_v48 = vsel %vm246_vm2, %v1163_v49, %v1165_v14 }
 0x6b2   :  { %v1110_v11 = vmul.f32 %v1105_v13, %v2563_v27  ;;  %v1138_v27 = vsel %vm204_vm4, %v1129_v39, %v1131_v62  ;;  %v1173_v38 = vmul.f32 %v1169_v48, %v2383_v20  ;;  %v3316_v48 = vld [vmem:[#allocation2 + $0x1e8] sm:$0xff] }
 0x6b8   :  { %v1117_v57 = vpop.permute.xlu1 %1116 }
 0x6b9   :  { %v1120_v23 = vsel %vm183_vm5, %v1117_v57, %v3191_v7  ;;  %v1121_v61 = vsel %vm183_vm5, %v3179_v15, %v1117_v57 }
 0x6ba   :  { %v1126_v4 = vmul.f32 %v1121_v61, %v2560_v24  ;;  %v1127_v52 = vmul.f32 %v1120_v23, %v2594_v55  ;;  %v1137_v24 = vsel %vm204_vm4, %v1131_v62, %v3159_v5  ;;  %v1140_v5 = vmul.f32 %v1138_v27, %v2536_v53  ;;  %v3285_v23 = vld [vmem:[#allocation2 + $0x160] sm:$0xff] }
 0x6bb   :  { %v1141_v50 = vmul.f32 %v1137_v24, %v2392_v25  ;;  %v3325_v27 = vld [vmem:[#allocation2 + $0x140] sm:$0xff] }
 0x6bc   :  { %v1198_v28 = vpack.c.bf16 %v1126_v4, %v1110_v11  ;;  %v1199_v8 = vpack.c.bf16 %v1127_v52, %v1111_v16  ;;  %v1200_v46 = vpack.c.bf16 %v1140_v5, %v3090_v3  ;;  %v3288_v16 = vld [vmem:[#allocation2 + $0x1f8] sm:$0xff]  ;;  %v3302_v52 = vld [vmem:[#allocation2 + $0x1f0] sm:$0xff] }
 0x6bd   :  { %v1201_v20 = vpack.c.bf16 %v1141_v50, %v3099_v9  ;;  %v3290_v11 = vld [vmem:[#allocation2 + $0x158] sm:$0xff] }
 0x6be   :  { %1266 = vmatpush.bf16.msrb.mxu2 %v1198_v28  ;;  %1280 = vmatpush.bf16.msra.mxu3 %v1199_v8 }
 0x6c0   :  { %v1147_v37 = vpop.permute.xlu1 %1146 }
 0x6c1   :  { %v1153_v55 = vsel %vm225_vm1, %v1147_v37, %v3153_v42  ;;  %v1154_v14 = vsel %vm225_vm1, %v1145_v31, %v1147_v37  ;;  %v1089_v42 = vsel %vm141_vm7, %v3233_v32, %v1085_v33 }
 0x6c2   :  { %v1156_v22 = vmul.f32 %v1154_v14, %v2516_v41  ;;  %v1157_v19 = vmul.f32 %v1153_v55, %v2376_v17  ;;  %v3256_v41 = vpop.permute.xlu0 %1086  ;;  %v1094_v25 = vmul.f32 %v1089_v42, %v2579_v12  ;;  %v3274_v12 = vld [vmem:[#allocation2 + $0x170] sm:$0xff]  ;;  %v3327_v55 = vld [vmem:[#allocation2 + $0x1e0] sm:$0xff]  ;;  %v3356_v42 = vld [vmem:[#allocation2 + $0x128] sm:$0xff] }
 0x6c3   :  { %v1088_v47 = vsel %vm141_vm7, %v1085_v33, %v3256_v41 }
 0x6c4   :  { %v1204_v39 = vpack.c.bf16 %v1172_v63, %v1156_v22  ;;  %v1205_v45 = vpack.c.bf16 %v1173_v38, %v1157_v19  ;;  %v1095_v13 = vmul.f32 %v1088_v47, %v2619_v21  ;;  %v3340_v38 = vld [vmem:[#allocation2 + $0x130] sm:$0xff] }
 0x6c5   :  { %v3342_v22 = vld [vmem:[#allocation2 + $0x1d0] sm:$0xff] }
 0x6c6   :  { %1236 = vmatpush.bf16.msrb.mxu0 %v1204_v39  ;;  %1250 = vmatpush.bf16.msra.mxu1 %v1205_v45  ;;  %v3396_v47 = vld [vmem:[#allocation2 + $0x1b0] sm:$0xff] }
 0x6c8   :  { %v1069_v31 = vpop.permute.xlu1 %1068 }
 0x6c9   :  { %v1073_v17 = vsel %vm120_vm8, %v3202_v40, %v1069_v31 }
 0x6ca   :  { %v1078_v53 = vmul.f32 %v1073_v17, %v2582_v2  ;;  %1237 = vmatpush.bf16.msrb.mxu0 %v1200_v46  ;;  %1251 = vmatpush.bf16.msra.mxu1 %v1201_v20  ;;  %v1113_v33 = vpop.permute.xlu0 %1112  ;;  %v3362_v46 = vld [vmem:[#allocation2 + $0x78] sm:$0xff] }
 0x6cb   :  { %v1123_v4 = vsel %vm183_vm5, %v3191_v7, %v1113_v33  ;;  %v1122_v21 = vsel %vm183_vm5, %v1113_v33, %v3179_v15  ;;  %v3314_v15 = vld [vmem:[#allocation2 + $0x148] sm:$0xff]  ;;  %v3364_v20 = vld [vmem:[#allocation2 + $0xf8] sm:$0xff] }
 0x6cc   :  { %v1194_v56 = vpack.c.bf16 %v1094_v25, %v1078_v53  ;;  %v1124_v8 = vmul.f32 %v1123_v4, %v2591_v54  ;;  %v1125_v44 = vmul.f32 %v1122_v21, %v2408_v34  ;;  %v3329_v34 = vld [vmem:[#allocation2 + $0x138] sm:$0xff]  ;;  %v3388_v25 = vld [vmem:[#allocation2 + $0x68] sm:$0xff]  ;;  %v3420_v4 = vld [vmem:[#allocation2 + $0x1a0] sm:$0xff] }
 0x6cd   :  { %v3382_v17 = vld [vmem:[#allocation2 + $0x1b8] sm:$0xff]  ;;  %v3390_v53 = vld [vmem:[#allocation2 + $0xe8] sm:$0xff]  ;;  %v3422_v21 = vld [vmem:[#allocation2 + $0x50] sm:$0xff] }
 0x6ce   :  { %1267 = vmatpush.bf16.msrb.mxu2 %v1194_v56  ;;  %v3394_v56 = vld [vmem:[#allocation2 + $0x110] sm:$0xff]  ;;  %v3412_v33 = vld [vmem:[#allocation2 + $0xd8] sm:$0xff] }
 0x6d0   :  { %v1071_v2 = vpop.permute.xlu1 %1070 }
 0x6d1   :  { %v1072_v49 = vsel %vm120_vm8, %v1069_v31, %v1071_v2  ;;  %1983 = vmatmul.msk.bf16.vlgmr.msrb.gmra.mxu2 %vm300_vm9, %v3268_v43  ;;  %v3358_v31 = vld [vmem:[#allocation2 + $0x1c8] sm:$0xff] }
 0x6d2   :  { %1334 = vmatpush.msra.mxu2 %v3263_v0  ;;  %v1079_v57 = vmul.f32 %v1072_v49, %v2625_v30  ;;  %v3300_v30 = vld [vmem:[#allocation2 + $0x150] sm:$0xff]  ;;  %v3400_v49 = vld [vmem:[#allocation2 + $0xe0] sm:$0xff] }
 0x6d4   :  { %1335 = vmatpush.msra.mxu2 %v3274_v12  ;;  %v1195_v61 = vpack.c.bf16 %v1095_v13, %v1079_v57  ;;  %v3408_v13 = vld [vmem:[#allocation2 + $0x1a8] sm:$0xff]  ;;  %v3410_v57 = vld [vmem:[#allocation2 + $0x58] sm:$0xff] }
 0x6d6   :  { %1336 = vmatpush.msra.mxu2 %v3280_v1  ;;  %1281 = vmatpush.bf16.msra.mxu3 %v1195_v61  ;;  %v3418_v61 = vld [vmem:[#allocation2 + $0x100] sm:$0xff] }
 0x6d8   :  { %1337 = vmatpush.msra.mxu2 %v3285_v23  ;;  %v1097_v28 = vpop.permute.xlu1 %1096 }
 0x6d9   :  { %v1106_v7 = vsel %vm162_vm6, %v1097_v28, %v3210_v59  ;;  %v1107_v62 = vsel %vm162_vm6, %v3206_v6, %v1097_v28  ;;  %1984 = vmatmul.msk.bf16.vlgmr.msra.gmra.mxu3 %vm300_vm9, %v3268_v43  ;;  %v1065_v59 = vpop.permute.xlu2 %1064  ;;  %v3424_v28 = vld [vmem:[#allocation2 + $0xd0] sm:$0xff] }
 0x6da   :  { %1357 = vmatpush.msrb.mxu3 %v3288_v16  ;;  %1338 = vmatpush.msra.mxu2 %v3290_v11  ;;  %v1108_v37 = vmul.f32 %v1107_v62, %v2576_v51  ;;  %v1109_v54 = vmul.f32 %v1106_v7, %v2411_v35  ;;  %v3331_v35 = vld [vmem:[#allocation2 + $0x1d8] sm:$0xff]  ;;  %v1074_v51 = vsel %vm120_vm8, %v1065_v59, %v3202_v40  ;;  %v3432_v7 = vld [vmem:[#allocation2 + $0x48] sm:$0xff] }
 0x6db   :  { %v1075_v14 = vsel %vm120_vm8, %v1071_v2, %v1065_v59  ;;  %v1077_v5 = vmul.f32 %v1074_v51, %v2458_v60  ;;  %v3368_v60 = vld [vmem:[#allocation2 + $0x120] sm:$0xff]  ;;  %v3434_v62 = vld [vmem:[#allocation2 + $0xc8] sm:$0xff]  ;;  %v3459_v51 = vld [vmem:[#allocation2 + $0x30] sm:$0xff]  ;;  %vm1722_vm8 = vcmask 130048  }
 0x6dc   :  { %1339 = vmatpush.msra.mxu2 %v3300_v30  ;;  %1358 = vmatpush.msrb.mxu3 %v3302_v52  ;;  %v1196_v24 = vpack.c.bf16 %v1124_v8, %v1108_v37  ;;  %v1197_v6 = vpack.c.bf16 %v1125_v44, %v1109_v54  ;;  %v1076_v50 = vmul.f32 %v1075_v14, %v2622_v36  ;;  %v3376_v36 = vld [vmem:[#allocation2 + $0xf0] sm:$0xff]  ;;  %v3398_v2 = vld [vmem:[#allocation2 + $0x60] sm:$0xff]  ;;  %v3430_v8 = vld [vmem:[#allocation2 + $0x198] sm:$0xff] }
 0x6dd   :  { %v3440_v44 = vld [vmem:[#allocation2 + $0x190] sm:$0xff]  ;;  %v3443_v37 = vld [vmem:[#allocation2 + $0x40] sm:$0xff]  ;;  %v1047_v59 = vld [vmem:[#allocation2 + $0x188] sm:$0xff] }
 0x6de   :  { %1340 = vmatpush.msra.mxu2 %v3314_v15  ;;  %1359 = vmatpush.msrb.mxu3 %v3316_v48  ;;  %v3445_v54 = vld [vmem:[#allocation2 + $0xc0] sm:$0xff]  ;;  %v3461_v14 = vld [vmem:[#allocation2 + $0xb0] sm:$0xff] }
 0x6df   :  { %1238 = vmatpush.bf16.msrb.mxu0 %v1196_v24  ;;  %1252 = vmatpush.bf16.msra.mxu1 %v1197_v6  ;;  %v3451_v24 = vld [vmem:[#allocation2 + $0x38] sm:$0xff] }
 0x6e0   :  { %1341 = vmatpush.msra.mxu2 %v3325_v27  ;;  %1360 = vmatpush.msrb.mxu3 %v3327_v55  ;;  %v1081_v63 = vpop.permute.xlu1 %1080  ;;  %v3453_v6 = vld [vmem:[#allocation2 + $0xb8] sm:$0xff] }
 0x6e1   :  { %v1090_v19 = vsel %vm141_vm7, %v1081_v63, %v3233_v32  ;;  %v1091_v40 = vsel %vm141_vm7, %v3256_v41, %v1081_v63  ;;  %v3380_v41 = vld [vmem:[#allocation2 + $0x118] sm:$0xff]  ;;  %v3468_v63 = vld [vmem:[#allocation2 + $0xa8] sm:$0xff] }
 0x6e2   :  { %1342 = vmatpush.msra.mxu2 %v3329_v34  ;;  %1361 = vmatpush.msrb.mxu3 %v3331_v35  ;;  %v1092_v39 = vmul.f32 %v1091_v40, %v2616_v18  ;;  %v1093_v45 = vmul.f32 %v1090_v19, %v2454_v58  ;;  %v3370_v58 = vld [vmem:[#allocation2 + $0x1c0] sm:$0xff]  ;;  %v3374_v18 = vld [vmem:[#allocation2 + $0x70] sm:$0xff]  ;;  %v3484_v40 = vld [vmem:[#allocation2 + $0x98] sm:$0xff] }
 0x6e3   :  { %v3476_v19 = vld [vmem:[#allocation2 + $0xa0] sm:$0xff] }
 0x6e4   :  { %1343 = vmatpush.msra.mxu2 %v3340_v38  ;;  %1362 = vmatpush.msrb.mxu3 %v3342_v22  ;;  %v1192_v10 = vpack.c.bf16 %v1092_v39, %v1076_v50  ;;  %v1193_v32 = vpack.c.bf16 %v1093_v45, %v1077_v5 }
 0x6e6   :  { %1344 = vmatpush.msra.mxu2 %v3356_v42  ;;  %1363 = vmatpush.msrb.mxu3 %v3358_v31 }
 0x6e7   :  { %1239 = vmatpush.bf16.msrb.mxu0 %v1192_v10  ;;  %1253 = vmatpush.bf16.msra.mxu1 %v1193_v32 }
 0x6e8   :  { %1345 = vmatpush.msra.mxu2 %v3368_v60  ;;  %1364 = vmatpush.msrb.mxu3 %v3370_v58 }
 0x6ea   :  { %1981 = vmatmul.msk.bf16.vlgmr.msrb.gmra.mxu0 %vm300_vm9, %v3268_v43  ;;  %1982 = vmatmul.msk.bf16.vlgmr.msra.gmra.mxu1 %vm300_vm9, %v3268_v43  ;;  %v3406_v43 = vld [vmem:[#allocation2 + $0x108] sm:$0xff] }
 0x6eb   :  { %1288 = vmatpush.msra.mxu0 %v3362_v46  ;;  %1311 = vmatpush.msrb.mxu1 %v3364_v20 }
 0x6ec   :  { %1346 = vmatpush.msra.mxu2 %v3380_v41  ;;  %1365 = vmatpush.msrb.mxu3 %v3382_v17 }
 0x6ed   :  { %1289 = vmatpush.msra.mxu0 %v3374_v18  ;;  %1312 = vmatpush.msrb.mxu1 %v3376_v36 }
 0x6ee   :  { %1347 = vmatpush.msra.mxu2 %v3394_v56  ;;  %1366 = vmatpush.msrb.mxu3 %v3396_v47 }
 0x6ef   :  { %1290 = vmatpush.msra.mxu0 %v3388_v25  ;;  %1313 = vmatpush.msrb.mxu1 %v3390_v53 }
 0x6f0   :  { %1348 = vmatpush.msra.mxu2 %v3406_v43  ;;  %1367 = vmatpush.msrb.mxu3 %v3408_v13 }
 0x6f1   :  { %1291 = vmatpush.msra.mxu0 %v3398_v2  ;;  %1314 = vmatpush.msrb.mxu1 %v3400_v49 }
 0x6f2   :  { %1349 = vmatpush.msra.mxu2 %v3418_v61  ;;  %1368 = vmatpush.msrb.mxu3 %v3420_v4 }
 0x6f3   :  { %1292 = vmatpush.msra.mxu0 %v3410_v57  ;;  %1315 = vmatpush.msrb.mxu1 %v3412_v33 }
 0x6f4   :  { %1503 = vmatpush.msrb.mxu2 %v3263_v0  ;;  %1369 = vmatpush.msrb.mxu3 %v3430_v8  ;;  %v1046_v0 = vld [vmem:[#allocation2 + $0x180] sm:$0xff] }
 0x6f5   :  { %1293 = vmatpush.msra.mxu0 %v3422_v21  ;;  %1316 = vmatpush.msrb.mxu1 %v3424_v28 }
 0x6f6   :  { %1504 = vmatpush.msrb.mxu2 %v3274_v12  ;;  %1370 = vmatpush.msrb.mxu3 %v3440_v44  ;;  %v3466_v12 = vld [vmem:[#allocation2 + $0x28] sm:$0xff] }
 0x6f7   :  { %1294 = vmatpush.msra.mxu0 %v3432_v7  ;;  %1317 = vmatpush.msrb.mxu1 %v3434_v62 }
 0x6f8   :  { %1505 = vmatpush.msrb.mxu2 %v3280_v1  ;;  %1371 = vmatpush.msrb.mxu3 %v1047_v59  ;;  %v3474_v1 = vld [vmem:[#allocation2 + $0x20] sm:$0xff] }
 0x6f9   :  { %1295 = vmatpush.msra.mxu0 %v3443_v37  ;;  %1318 = vmatpush.msrb.mxu1 %v3445_v54 }
 0x6fa   :  { %1506 = vmatpush.msrb.mxu2 %v3285_v23  ;;  %1372 = vmatpush.msrb.mxu3 %v1046_v0  ;;  %v3482_v23 = vld [vmem:[#allocation2 + $0x18] sm:$0xff] }
 0x6fb   :  { %1296 = vmatpush.msra.mxu0 %v3451_v24  ;;  %1319 = vmatpush.msrb.mxu1 %v3453_v6 }
 0x6fc   :  { %1507 = vmatpush.msrb.mxu2 %v3290_v11  ;;  %1523 = vmatpush.msra.mxu3 %v3288_v16  ;;  %v1000_v16 = vld [vmem:[#allocation2 + $0x10] sm:$0xff] }
 0x6fd   :  { %1297 = vmatpush.msra.mxu0 %v3459_v51  ;;  %1320 = vmatpush.msrb.mxu1 %v3461_v14  ;;  %v1016_v11 = vld [vmem:[#allocation2 + $0x90] sm:$0xff] }
 0x6fe   :  { %1508 = vmatpush.msrb.mxu2 %v3300_v30  ;;  %1524 = vmatpush.msra.mxu3 %v3302_v52  ;;  %v999_v30 = vld [vmem:[#allocation2 + $0x8] sm:$0xff] }
 0x6ff   :  { %1298 = vmatpush.msra.mxu0 %v3466_v12  ;;  %1321 = vmatpush.msrb.mxu1 %v3468_v63  ;;  %v1015_v52 = vld [vmem:[#allocation2 + $0x88] sm:$0xff] }
 0x700   :  { %1509 = vmatpush.msrb.mxu2 %v3314_v15  ;;  %1525 = vmatpush.msra.mxu3 %v3316_v48  ;;  %v998_v15 = vld [vmem:[#allocation2] sm:$0xff] }
 0x701   :  { %1299 = vmatpush.msra.mxu0 %v3474_v1  ;;  %1322 = vmatpush.msrb.mxu1 %v3476_v19  ;;  %v1014_v48 = vld [vmem:[#allocation2 + $0x80] sm:$0xff] }
 0x702   :  { %1510 = vmatpush.msrb.mxu2 %v3325_v27  ;;  %1526 = vmatpush.msra.mxu3 %v3327_v55  ;;  %v1380_v55 = vld [vmem:[%s3745_s14] sm:$0xff] }
 0x703   :  { %1300 = vmatpush.msra.mxu0 %v3482_v23  ;;  %1323 = vmatpush.msrb.mxu1 %v3484_v40 }
 0x704   :  { %1511 = vmatpush.msrb.mxu2 %v3329_v34  ;;  %1527 = vmatpush.msra.mxu3 %v3331_v35 }
 0x705   :  { %1301 = vmatpush.msra.mxu0 %v1000_v16  ;;  %1324 = vmatpush.msrb.mxu1 %v1016_v11 }
 0x706   :  { %1512 = vmatpush.msrb.mxu2 %v3340_v38  ;;  %1528 = vmatpush.msra.mxu3 %v3342_v22 }
 0x707   :  { %1302 = vmatpush.msra.mxu0 %v999_v30  ;;  %1325 = vmatpush.msrb.mxu1 %v1015_v52 }
 0x708   :  { %1513 = vmatpush.msrb.mxu2 %v3356_v42  ;;  %1529 = vmatpush.msra.mxu3 %v3358_v31 }
 0x709   :  { %1303 = vmatpush.msra.mxu0 %v998_v15  ;;  %1326 = vmatpush.msrb.mxu1 %v1014_v48 }
 0x70a   :  { %1514 = vmatpush.msrb.mxu2 %v3368_v60  ;;  %1530 = vmatpush.msra.mxu3 %v3370_v58 }
 0x70b   :  { %1463 = vmatpush.msrb.mxu0 %v3362_v46  ;;  %1483 = vmatpush.msra.mxu1 %v3364_v20 }
 0x70c   :  { %1515 = vmatpush.msrb.mxu2 %v3380_v41  ;;  %1531 = vmatpush.msra.mxu3 %v3382_v17 }
 0x70d   :  { %1464 = vmatpush.msrb.mxu0 %v3374_v18  ;;  %1484 = vmatpush.msra.mxu1 %v3376_v36 }
 0x70e   :  { %1516 = vmatpush.msrb.mxu2 %v3394_v56  ;;  %1532 = vmatpush.msra.mxu3 %v3396_v47 }
 0x70f   :  { %1465 = vmatpush.msrb.mxu0 %v3388_v25  ;;  %1485 = vmatpush.msra.mxu1 %v3390_v53 }
 0x710   :  { %1517 = vmatpush.msrb.mxu2 %v3406_v43  ;;  %1533 = vmatpush.msra.mxu3 %v3408_v13 }
 0x711   :  { %1466 = vmatpush.msrb.mxu0 %v3398_v2  ;;  %1486 = vmatpush.msra.mxu1 %v3400_v49 }
 0x712   :  { %1518 = vmatpush.msrb.mxu2 %v3418_v61  ;;  %1534 = vmatpush.msra.mxu3 %v3420_v4  ;;  %v1382_v61 = vld [vmem:[%s3746_s15] sm:$0xff]  ;;  %v1383_v4 = vld [vmem:[%s3746_s15 + $0x8] sm:$0xff]  ;;  %s2130_s15 = smov 121  }
 0x713   :  { %1467 = vmatpush.msrb.mxu0 %v3410_v57  ;;  %1487 = vmatpush.msra.mxu1 %v3412_v33  ;;  %v2001_v57 = vld [vmem:[%s3747_s16] sm:$0xff]  ;;  %v1381_v33 = vld [vmem:[%s3745_s14 + $0x8] sm:$0xff]  ;;  %s2129_s14 = smov 120   ;;  %s2131_s16 = smov 7  }
 0x714   :  { %1535 = vmatpush.msra.mxu3 %v3430_v8  ;;  %1439 = vperm.xlu2 %2027, %v1380_v55  }
 0x715   :  { %1468 = vmatpush.msrb.mxu0 %v3422_v21  ;;  %1488 = vmatpush.msra.mxu1 %v3424_v28  ;;  %v2128_v21 = vmov 128.0  }
 0x716   :  { %1536 = vmatpush.msra.mxu3 %v3440_v44  ;;  %2043 = vrcp.f32 %v2128_v21  ;;  %v1754_v21 = vld [vmem:[%s3751_s20] sm:$0xff] }
 0x717   :  { %1469 = vmatpush.msrb.mxu0 %v3432_v7  ;;  %1489 = vmatpush.msra.mxu1 %v3434_v62 }
 0x718   :  { %1537 = vmatpush.msra.mxu3 %v1047_v59 }
 0x719   :  { %1470 = vmatpush.msrb.mxu0 %v3443_v37  ;;  %1490 = vmatpush.msra.mxu1 %v3445_v54 }
 0x71a   :  { %1538 = vmatpush.msra.mxu3 %v1046_v0 }
 0x71b   :  { %1471 = vmatpush.msrb.mxu0 %v3451_v24  ;;  %1491 = vmatpush.msra.mxu1 %v3453_v6 }
 0x71c   :  { %v2044_v28 = vpop.eup %2043 }
 0x71d   :  { %1472 = vmatpush.msrb.mxu0 %v3459_v51  ;;  %1492 = vmatpush.msra.mxu1 %v3461_v14  ;;  %v1389_v8 = vmul.f32 128.0, %v2044_v28  ;;  %vm1393_vm1 = vweird.f32 %v2044_v28 }
 0x71f   :  { %1473 = vmatpush.msrb.mxu0 %v3466_v12  ;;  %1493 = vmatpush.msra.mxu1 %v3468_v63  ;;  %v1390_v7 = vsub.f32 1.0, %v1389_v8 }
 0x721   :  { %1474 = vmatpush.msrb.mxu0 %v3474_v1  ;;  %1494 = vmatpush.msra.mxu1 %v3476_v19  ;;  %v1391_v62 = vmul.f32 %v2044_v28, %v1390_v7 }
 0x723   :  { %1475 = vmatpush.msrb.mxu0 %v3482_v23  ;;  %1495 = vmatpush.msra.mxu1 %v3484_v40  ;;  %v1392_v44 = vadd.f32 %v2044_v28, %v1391_v62 }
 0x725   :  { %1476 = vmatpush.msrb.mxu0 %v1000_v16  ;;  %1496 = vmatpush.msra.mxu1 %v1016_v11  ;;  %v3568_v37 = vsel %vm1393_vm1, %v2044_v28, %v1392_v44 }
 0x727   :  { %1477 = vmatpush.msrb.mxu0 %v999_v30  ;;  %1497 = vmatpush.msra.mxu1 %v1015_v52 }
 0x729   :  { %1478 = vmatpush.msrb.mxu0 %v998_v15  ;;  %1498 = vmatpush.msra.mxu1 %v1014_v48 }
 0x754   :  { %v1269_v27 = vpop.f32.mrf.mxu2 }
 0x755   :  { %1350 = vmatmul.f32.vlgmr.msra.gmra.mxu2 %v1269_v27 }
 0x75c   :  { %v1271_v34 = vpop.f32.mrf.mxu2  ;;  %v1283_v35 = vpop.f32.mrf.mxu3 }
 0x75d   :  { %1353 = vmatmul.f32.gmra.mxu2 %v1271_v34  ;;  %1373 = vmatmul.f32.vlgmr.msrb.gmra.mxu3 %v1283_v35 }
 0x764   :  { %v1285_v38 = vpop.f32.mrf.mxu3 }
 0x765   :  { %1376 = vmatmul.f32.gmra.mxu3 %v1285_v38  ;;  %1519 = vmatmul.f32.vlgmr.msrb.gmra.mxu2 %v3079_v26 }
 0x767   :  { %v1241_v22 = vpop.f32.mrf.mxu0  ;;  %v1255_v5 = vpop.f32.mrf.mxu1 }
 0x768   :  { %1304 = vmatmul.f32.vlgmr.msra.gmra.mxu0 %v1241_v22  ;;  %1327 = vmatmul.f32.vlgmr.msrb.gmra.mxu1 %v1255_v5 }
 0x76d   :  { %1539 = vmatmul.f32.vlgmr.msra.gmra.mxu3 %v3081_v29 }
 0x76e   :  { %v1440_v54 = vpop.permute.xlu2 %1439 }
 0x76f   :  { %v1243_v50 = vpop.f32.mrf.mxu0  ;;  %v1257_v39 = vpop.f32.mrf.mxu1 }
 0x770   :  { %1307 = vmatmul.f32.gmra.mxu0 %v1243_v50  ;;  %1330 = vmatmul.f32.gmra.mxu1 %v1257_v39 }
 0x778   :  { %1479 = vmatmul.f32.vlgmr.msrb.gmra.mxu0 %v3090_v3  ;;  %1499 = vmatmul.f32.vlgmr.msra.gmra.mxu1 %v3099_v9 }
 0x7d8   :  { %v1351_v45 = vpop.f32.mrf.mxu2 }
 0x7e0   :  { %v1374_v42 = vpop.f32.mrf.mxu3  ;;  %v1354_v20 = vpop.f32.mrf.mxu2 }
 0x7e5   :  { %v1305_v31 = vpop.f32.mrf.mxu0  ;;  %v1328_v10 = vpop.f32.mrf.mxu1 }
 0x7e6   :  { %v1329_v32 = vadd.f32 %v1328_v10, %v1305_v31 }
 0x7e8   :  { %v1352_v26 = vadd.f32 %v1351_v45, %v1329_v32  ;;  %v1377_v3 = vpop.f32.mrf.mxu3  ;;  %v1520_v56 = vpop.f32.mrf.mxu2 }
 0x7ea   :  { %v3545_v46 = vadd.f32 %v1374_v42, %v1352_v26 }
 0x7ec   :  { %1384 = vadd.xlane.f32.xlu0 %v3545_v46  ;;  %v1397_v29 = vmul.f32 %v3545_v46, %v3545_v46 }
 0x7ed   :  { %v1308_v60 = vpop.f32.mrf.mxu0  ;;  %v1331_v58 = vpop.f32.mrf.mxu1 }
 0x7ee   :  { %v1332_v18 = vadd.f32 %v1331_v58, %v1308_v60  ;;  %1399 = vadd.xlane.f32.xlu1 %v1397_v29 }
 0x7f0   :  { %v1355_v9 = vadd.f32 %v1354_v20, %v1332_v18  ;;  %v1540_v2 = vpop.f32.mrf.mxu3 }
 0x7f2   :  { %v3550_v36 = vadd.f32 %v1377_v3, %v1355_v9 }
 0x7f4   :  { %1386 = vadd.xlane.f32.xlu2 %v3550_v36  ;;  %v1398_v41 = vmul.f32 %v3550_v36, %v3550_v36 }
 0x7f5   :  { %v1480_v17 = vpop.f32.mrf.mxu0  ;;  %v1500_v25 = vpop.f32.mrf.mxu1 }
 0x7f6   :  { %v1501_v53 = vadd.f32 %v1500_v25, %v1480_v17  ;;  %1401 = vadd.xlane.f32.xlu0 %v1398_v41  ;;  %v1572_v25 = vld [vmem:[%s3748_s17] sm:$0xff] }
 0x7f8   :  { %v1521_v47 = vadd.f32 %v1520_v56, %v1501_v53  ;;  %v1756_v53 = vld [vmem:[%s3752_s21] sm:$0xff]  ;;  %v1573_v56 = vld [vmem:[%s3748_s17 + $0x8] sm:$0xff]  ;;  %s1953_s17 = sshll.u32 %s2135_s30, 4  ;;  %s1954_s17 = int_to_ptr.vmem [resolvable:$true] %s1953_s17 }
 0x7fa   :  { %v1541_v49 = vadd.f32 %v1540_v2, %v1521_v47 }
 0x7fc   :  { %v1545_v43 = vpack.c.bf16 %v1541_v49, %v1541_v49 }
 0x7fe   :  { %v1556_v13 = vsel %vm304_vm3, %v1545_v43, 0 }
 0x7ff   :  { %1565 = vmatpush.bf16.msra.mxu0 %v1556_v13 }
 0x802   :  { %1989 = vmatmul.msk.bf16.vlgmr.msra.gmra.mxu0 %vm1551_vm0, %v2001_v57  ;;  %v3626_v57 = vld [vmem:[%s3785_s13] sm:$0xff] }
 0x803   :  { %v1687_v44 = vperm.slane %v3626_v57, 6 }
 0x807   :  { %1444 = vperm.xlu1 %2026, %v1381_v33  }
 0x80a   :  { %1451 = vperm.xlu0 %2028, %v1382_v61   ;;  %v1694_v61 = vperm.slane %v3626_v57, 7 }
 0x80c   :  { %1456 = vperm.xlu2 %2027, %v1383_v4   ;;  %v1574_v4 = vld [vmem:[%s3749_s18] sm:$0xff] }
 0x85f   :  { %v1385_v59 = vpop.xlane.xlu0 %1384 }
 0x860   :  { %v1395_v24 = vmul.f32 %v3568_v37, %v1385_v59 }
 0x861   :  { %v1400_v6 = vpop.xlane.xlu1 %1399 }
 0x862   :  { %v1405_v0 = vmul.f32 %v1395_v24, %v1395_v24  ;;  %v1403_v51 = vmul.f32 %v1400_v6, %v3568_v37  ;;  %v1411_v22 = vsub.f32 %v3545_v46, %v1395_v24 }
 0x864   :  { %v1407_v14 = vsub.f32 %v1403_v51, %v1405_v0 }
 0x866   :  { %v1409_v12 = vmax.f32 %v1407_v14, 0.0  ;;  %v1680_v14 = vperm.slane %v3626_v57, 5 }
 0x867   :  { %v1387_v63 = vpop.xlane.xlu2 %1386 }
 0x868   :  { %v1413_v1 = vadd.f32 1e-05, %v1409_v12  ;;  %v1396_v19 = vmul.f32 %v3568_v37, %v1387_v63 }
 0x869   :  { %v1402_v23 = vpop.xlane.xlu0 %1401 }
 0x86a   :  { %2045 = vrsqrt.f32 %v1413_v1  ;;  %v1406_v40 = vmul.f32 %v1396_v19, %v1396_v19  ;;  %v1404_v16 = vmul.f32 %v1402_v23, %v3568_v37  ;;  %vm1421_vm3 = vweird.f32 %v1413_v1 }
 0x86b   :  { %v1412_v60 = vsub.f32 %v3550_v36, %v1396_v19 }
 0x86c   :  { %v1408_v11 = vsub.f32 %v1404_v16, %v1406_v40  ;;  %v2033_v40 = vld [vmem:[%s3785_s13 + $0x8] ss:$0 sm:$0xff] }
 0x86e   :  { %v1410_v30 = vmax.f32 %v1408_v11, 0.0 }
 0x86f   :  { %v1457_v9 = vpop.permute.xlu2 %1456 }
 0x870   :  { %v2046_v52 = vpop.eup %2045  ;;  %v1414_v48 = vadd.f32 1e-05, %v1410_v30 }
 0x871   :  { %v1416_v15 = vmul.f32 %v2046_v52, %v1413_v1  ;;  %vm1422_vm2 = vweird.f32 %v2046_v52 }
 0x872   :  { %2047 = vrsqrt.f32 %v1414_v48  ;;  %vm1423_vm4 = vmor %vm1421_vm3, %vm1422_vm2  ;;  %vm1431_vm6 = vweird.f32 %v1414_v48 }
 0x873   :  { %v1417_v27 = vmul.f32 %v2046_v52, %v1416_v15 }
 0x875   :  { %v1418_v55 = vmul.f32 0.5, %v1417_v27  ;;  %v1994_v27 = vld [vmem:[%s3750_s19 + $0x8] sm:$0xf0] }
 0x877   :  { %v1419_v34 = vsub.f32 1.5, %v1418_v55 }
 0x878   :  { %v2048_v35 = vpop.eup %2047 }
 0x879   :  { %v1420_v38 = vmul.f32 %v2046_v52, %v1419_v34  ;;  %v1426_v5 = vmul.f32 %v2048_v35, %v1414_v48  ;;  %vm1432_vm5 = vweird.f32 %v2048_v35  ;;  %v1445_v18 = vpop.permute.xlu1 %1444  ;;  %v2002_v48 = vld [vmem:[%s3750_s19 + $0x4] sm:$0xf]  ;;  %v1673_v34 = vperm.slane %v3626_v57, 3 }
 0x87a   :  { %vm1433_vm7 = vmor %vm1431_vm6, %vm1432_vm5  ;;  %vm1923_vm6 = vcmask 1041409  }
 0x87b   :  { %v1424_v50 = vsel %vm1423_vm4, %v2046_v52, %v1420_v38  ;;  %v1427_v39 = vmul.f32 %v2048_v35, %v1426_v5 }
 0x87c   :  { %v1435_v45 = vmul.f32 %v1424_v50, %v1411_v22  ;;  %v1452_v42 = vpop.permute.xlu0 %1451  ;;  %v1666_v50 = vperm.slane %v3626_v57, 2 }
 0x87d   :  { %v1428_v31 = vmul.f32 0.5, %v1427_v39 }
 0x87e   :  { %v1447_v10 = vmul.f32 %v1440_v54, %v1435_v45 }
 0x87f   :  { %v1429_v32 = vsub.f32 1.5, %v1428_v31  ;;  %v3613_v47 = vpop.f32.mrf.mxu0  ;;  %v1659_v31 = vperm.slane %v3626_v57, 1 }
 0x880   :  { %v1459_v26 = vadd.f32 %v1452_v42, %v1447_v10  ;;  %v1582_v2 = vmul.f32 %v3613_v47, %v3613_v47 }
 0x881   :  { %v1430_v20 = vmul.f32 %v2048_v35, %v1429_v32 }
 0x882   :  { %v3575_v29 = vmax.f32 %v1459_v26, 0.0 }
 0x883   :  { %v1434_v58 = vsel %vm1433_vm7, %v2048_v35, %v1430_v20  ;;  %v1997_v35 = vor.u32 %v2002_v48, %v1994_v27 }
 0x884   :  { %1669 = vrot.lane.b32.xlu2 %v3575_v29, %s2123_s2  ;;  %1690 = vrot.lane.b32.xlu1 %v3575_v29, %s2129_s14  ;;  %v1436_v46 = vmul.f32 %v1434_v58, %v1412_v60  ;;  %v1652_v60 = vperm.slane %v3626_v57, 0 }
 0x886   :  { %v1448_v3 = vmul.f32 %v1445_v18, %v1436_v46 }
 0x887   :  { %v3618_v49 = vpop.f32.mrf.mxu0 }
 0x888   :  { %v1460_v41 = vadd.f32 %v1457_v9, %v1448_v3  ;;  %v1583_v43 = vmul.f32 %v3618_v49, %v3618_v49 }
 0x88a   :  { %v3581_v17 = vmax.f32 %v1460_v41, 0.0  ;;  %v1992_v41 = vld [vmem:[%s3750_s19] sm:$0xf] }
 0x88c   :  { %1683 = vrot.lane.b32.xlu1 %v3575_v29, %s2130_s15  ;;  %1678 = vrot.lane.b32.xlu0 %v3581_v17, %s2121_s28  ;;  %v1708_v36 = vpack.c.bf16 %v3581_v17, %v3575_v29 }
 0x88d   :  { %1692 = vrot.lane.b32.xlu2 %v3581_v17, %s2129_s14 }
 0x894   :  { %1676 = vrot.lane.b32.xlu1 %v3575_v29, %s2121_s28  ;;  %1662 = vrot.lane.b32.xlu0 %v3575_v29, %s2131_s16 }
 0x895   :  { %1685 = vrot.lane.b32.xlu2 %v3581_v17, %s2130_s15 }
 0x89c   :  { %1697 = vrot.lane.b32.xlu1 %v3575_v29, %s2132_s0  ;;  %1699 = vrot.lane.b32.xlu0 %v3581_v17, %s2132_s0 }
 0x89d   :  { %1655 = vrot.lane.b32.xlu2 %v3575_v29, %s3784_s7 }
 0x8a4   :  { %1671 = vrot.lane.b32.xlu1 %v3581_v17, %s2123_s2  ;;  %1648 = vrot.lane.b32.xlu0 %v3575_v29, %s2133_s10 }
 0x8a5   :  { %1664 = vrot.lane.b32.xlu2 %v3581_v17, %s2131_s16 }
 0x8ac   :  { %1657 = vrot.lane.b32.xlu1 %v3581_v17, %s3784_s7  ;;  %1624 = vperm.xlu0 %2028, %v1572_v25  }
 0x8ad   :  { %1650 = vrot.lane.b32.xlu2 %v3581_v17, %s2133_s10  ;;  %v2003_v17 = vld [vmem:[%s3750_s19 + $0x4] sm:$0xf0] }
 0x8ae   :  { %v1993_v25 = vor.u32 %v2003_v17, %v1992_v41 }
 0x8b4   :  { %1818 = vperm.xlu0 %2028, %v1756_v53  }
 0x8bc   :  { %1629 = vperm.xlu0 %2028, %v1573_v56  }
 0x8d6   :  { %1584 = vadd.xlane.f32.xlu2 %v1582_v2  ;;  %1576 = vadd.xlane.f32.xlu1 %v3613_v47 }
 0x8de   :  { %1578 = vadd.xlane.f32.xlu2 %v3618_v49  ;;  %1586 = vadd.xlane.f32.xlu1 %v1583_v43  ;;  %v1670_v13 = vpop.permute.xlu2 %1669 }
 0x8df   :  { %v1674_v5 = vmul.f32 %v1673_v34, %v1670_v13 }
 0x8e7   :  { %v1693_v33 = vpop.permute.xlu2 %1692 }
 0x8e8   :  { %v1696_v8 = vmul.f32 %v1694_v61, %v1693_v33 }
 0x8ef   :  { %v1686_v54 = vpop.permute.xlu2 %1685 }
 0x8f0   :  { %v1689_v24 = vmul.f32 %v1687_v44, %v1686_v54 }
 0x8f6   :  { %1636 = vperm.xlu2 %2027, %v1574_v4   ;;  %v1691_v28 = vpop.permute.xlu1 %1690  ;;  %v1575_v4 = vld [vmem:[%s3749_s18 + $0x8] sm:$0xff] }
 0x8f7   :  { %v1695_v7 = vmul.f32 %v1694_v61, %v1691_v28  ;;  %1806 = vperm.xlu1 %2026, %v1754_v21   ;;  %v1656_v16 = vpop.permute.xlu2 %1655  ;;  %v1757_v21 = vld [vmem:[%s3752_s21 + $0x8] sm:$0xff] }
 0x8f8   :  { %v1660_v29 = vmul.f32 %v1659_v31, %v1656_v16  ;;  %v1755_v28 = vld [vmem:[%s3751_s20 + $0x8] sm:$0xff] }
 0x8f9   :  { %v1711_v62 = vpack.c.bf16 %v1696_v8, %v1695_v7 }
 0x8fb   :  { %1726 = vmatpush.bf16.msrb.mxu1 %v1711_v62 }
 0x8fe   :  { %v1684_v59 = vpop.permute.xlu1 %1683  ;;  %v1679_v0 = vpop.permute.xlu0 %1678 }
 0x8ff   :  { %v1688_v6 = vmul.f32 %v1687_v44, %v1684_v59  ;;  %v1682_v63 = vmul.f32 %v1680_v14, %v1679_v0  ;;  %v1665_v38 = vpop.permute.xlu2 %1664 }
 0x900   :  { %v1668_v10 = vmul.f32 %v1666_v50, %v1665_v38 }
 0x901   :  { %v1710_v51 = vpack.c.bf16 %v1689_v24, %v1688_v6 }
 0x903   :  { %1727 = vmatpush.bf16.msrb.mxu1 %v1710_v51 }
 0x906   :  { %v1677_v12 = vpop.permute.xlu1 %1676  ;;  %v1663_v19 = vpop.permute.xlu0 %1662 }
 0x907   :  { %v1681_v1 = vmul.f32 %v1680_v14, %v1677_v12  ;;  %v1667_v45 = vmul.f32 %v1666_v50, %v1663_v19  ;;  %v1651_v46 = vpop.permute.xlu2 %1650 }
 0x908   :  { %v1654_v9 = vmul.f32 %v1652_v60, %v1651_v46 }
 0x909   :  { %v1709_v23 = vpack.c.bf16 %v1682_v63, %v1681_v1  ;;  %v1706_v32 = vpack.c.bf16 %v1668_v10, %v1667_v45 }
 0x90b   :  { %1728 = vmatpush.bf16.msrb.mxu1 %v1709_v23 }
 0x90e   :  { %v1698_v11 = vpop.permute.xlu1 %1697  ;;  %v1700_v52 = vpop.permute.xlu0 %1699 }
 0x90f   :  { %v1702_v30 = vmul.f32 %v2033_v40, %v1698_v11  ;;  %1729 = vmatpush.bf16.msrb.mxu1 %v1708_v36  ;;  %v1703_v15 = vmul.f32 %v2033_v40, %v1700_v52 }
 0x911   :  { %v1712_v55 = vpack.c.bf16 %v1703_v15, %v1702_v30 }
 0x913   :  { %1747 = vmatpush.bf16.msra.mxu2 %v1712_v55 }
 0x916   :  { %v1672_v22 = vpop.permute.xlu1 %1671  ;;  %1998 = vmatmul.msk.bf16.vlgmr.msra.gmra.mxu2 %vm1722_vm8, %v1997_v35  ;;  %v1649_v26 = vpop.permute.xlu0 %1648 }
 0x917   :  { %v1675_v39 = vmul.f32 %v1673_v34, %v1672_v22  ;;  %v1653_v18 = vmul.f32 %v1652_v60, %v1649_v26 }
 0x919   :  { %v1707_v42 = vpack.c.bf16 %v1675_v39, %v1674_v5  ;;  %v1704_v36 = vpack.c.bf16 %v1654_v9, %v1653_v18 }
 0x91b   :  { %1730 = vmatpush.bf16.msrb.mxu1 %v1707_v42 }
 0x91e   :  { %v1658_v20 = vpop.permute.xlu1 %1657  ;;  %v3676_v62 = vpop.permute.xlu0 %1624 }
 0x91f   :  { %v1661_v58 = vmul.f32 %v1659_v31, %v1658_v20  ;;  %1731 = vmatpush.bf16.msrb.mxu1 %v1706_v32 }
 0x921   :  { %v1705_v3 = vpack.c.bf16 %v1661_v58, %v1660_v29 }
 0x923   :  { %1732 = vmatpush.bf16.msrb.mxu1 %v1705_v3 }
 0x926   :  { %v3680_v0 = vpop.permute.xlu0 %1818 }
 0x927   :  { %1733 = vmatpush.bf16.msrb.mxu1 %v1704_v36 }
 0x92a   :  { %1734 = vmatmul.bf16.vlgmr.msrb.gmra.mxu1 %v1993_v25 }
 0x92e   :  { %v3688_v23 = vpop.permute.xlu0 %1629 }
 0x949   :  { %v1577_v8 = vpop.xlane.xlu1 %1576  ;;  %v1585_v7 = vpop.xlane.xlu2 %1584 }
 0x94a   :  { %v1580_v44 = vmul.f32 %v1577_v8, %v3568_v37  ;;  %v1588_v54 = vmul.f32 %v1585_v7, %v3568_v37 }
 0x94c   :  { %v1590_v59 = vmul.f32 %v1580_v44, %v1580_v44 }
 0x94e   :  { %v1592_v24 = vsub.f32 %v1588_v54, %v1590_v59 }
 0x950   :  { %v1594_v51 = vmax.f32 %v1592_v24, 0.0 }
 0x951   :  { %v1579_v6 = vpop.xlane.xlu2 %1578  ;;  %v1587_v12 = vpop.xlane.xlu1 %1586 }
 0x952   :  { %v3683_v14 = vmul.f32 %v1579_v6, %v3568_v37  ;;  %v1598_v63 = vadd.f32 1e-05, %v1594_v51  ;;  %v1589_v19 = vmul.f32 %v1587_v12, %v3568_v37 }
 0x954   :  { %v1591_v1 = vmul.f32 %v3683_v14, %v3683_v14  ;;  %2049 = vrsqrt.f32 %v1598_v63  ;;  %vm1606_vm9 = vweird.f32 %v1598_v63 }
 0x956   :  { %v1593_v40 = vsub.f32 %v1589_v19, %v1591_v1 }
 0x958   :  { %v1595_v11 = vmax.f32 %v1593_v40, 0.0 }
 0x959   :  { %v1637_v55 = vpop.permute.xlu2 %1636 }
 0x95a   :  { %v2050_v30 = vpop.eup %2049  ;;  %v1599_v52 = vadd.f32 1e-05, %v1595_v11 }
 0x95b   :  { %v1601_v48 = vmul.f32 %v2050_v30, %v1598_v63  ;;  %vm1607_vm14 = vweird.f32 %v2050_v30 }
 0x95c   :  { %2051 = vrsqrt.f32 %v1599_v52  ;;  %vm1608_vm15 = vmor %vm1606_vm9, %vm1607_vm14  ;;  %vm1616_vm12 = vweird.f32 %v1599_v52 }
 0x95d   :  { %v1602_v22 = vmul.f32 %v2050_v30, %v1601_v48 }
 0x95f   :  { %v1603_v45 = vmul.f32 0.5, %v1602_v22 }
 0x961   :  { %v1604_v60 = vsub.f32 1.5, %v1603_v45 }
 0x962   :  { %v2052_v10 = vpop.eup %2051 }
 0x963   :  { %v1611_v29 = vmul.f32 %v2052_v10, %v1599_v52  ;;  %v1605_v9 = vmul.f32 %v2050_v30, %v1604_v60  ;;  %vm1617_vm0 = vweird.f32 %v2052_v10 }
 0x964   :  { %vm1618_vm1 = vmor %vm1616_vm12, %vm1617_vm0 }
 0x965   :  { %v1612_v3 = vmul.f32 %v2052_v10, %v1611_v29 }
 0x967   :  { %v1613_v25 = vmul.f32 0.5, %v1612_v3 }
 0x969   :  { %v1807_v16 = vpop.permute.xlu1 %1806 }
 0x999   :  { %v1749_v53 = vpop.f32.mrf.mxu2 }
 0x9a1   :  { %v1751_v13 = vpop.f32.mrf.mxu2 }
 0x9a7   :  { %v1735_v56 = vpop.f32.mrf.mxu1 }
 0x9a8   :  { %v3657_v2 = vadd.f32 %v1749_v53, %v1735_v56  ;;  %v1609_v53 = vsel %vm1608_vm15, %v2050_v30, %v1605_v9  ;;  %v1596_v56 = vsub.f32 %v3613_v47, %v1580_v44 }
 0x9aa   :  { %1758 = vadd.xlane.f32.xlu0 %v3657_v2  ;;  %v1764_v43 = vmul.f32 %v3657_v2, %v3657_v2 }
 0x9ac   :  { %1766 = vadd.xlane.f32.xlu1 %v1764_v43 }
 0x9af   :  { %v1737_v57 = vpop.f32.mrf.mxu1 }
 0x9b0   :  { %v3662_v33 = vadd.f32 %v1751_v13, %v1737_v57  ;;  %v1614_v57 = vsub.f32 1.5, %v1613_v25 }
 0x9b2   :  { %1760 = vadd.xlane.f32.xlu0 %v3662_v33  ;;  %v1765_v61 = vmul.f32 %v3662_v33, %v3662_v33  ;;  %v1615_v47 = vmul.f32 %v2052_v10, %v1614_v57 }
 0x9b4   :  { %1768 = vadd.xlane.f32.xlu2 %v1765_v61  ;;  %v1619_v12 = vsel %vm1618_vm1, %v2052_v10, %v1615_v47 }
 0x9c5   :  { %1641 = vperm.xlu1 %2026, %v1575_v4  }
 0x9c6   :  { %1823 = vperm.xlu0 %2028, %v1757_v21  }
 0x9cc   :  { %1811 = vperm.xlu2 %2027, %v1755_v28  }
 0xa1d   :  { %v1759_v15 = vpop.xlane.xlu0 %1758 }
 0xa1e   :  { %v1762_v27 = vmul.f32 %v1759_v15, %v3568_v37 }
 0xa1f   :  { %v1767_v34 = vpop.xlane.xlu1 %1766 }
 0xa20   :  { %v1772_v35 = vmul.f32 %v1762_v27, %v1762_v27  ;;  %v1770_v38 = vmul.f32 %v1767_v34, %v3568_v37  ;;  %v1778_v21 = vsub.f32 %v3657_v2, %v1762_v27  ;;  %v1597_v2 = vsub.f32 %v3618_v49, %v3683_v14 }
 0xa22   :  { %v1774_v5 = vsub.f32 %v1770_v38, %v1772_v35  ;;  %v1621_v40 = vmul.f32 %v1619_v12, %v1597_v2 }
 0xa24   :  { %v1776_v50 = vmax.f32 %v1774_v5, 0.0  ;;  %v1633_v27 = vmul.f32 %v3688_v23, %v1621_v40 }
 0xa25   :  { %v1761_v39 = vpop.xlane.xlu0 %1760 }
 0xa26   :  { %v1780_v42 = vadd.f32 1e-05, %v1776_v50  ;;  %v1763_v31 = vmul.f32 %v1761_v39, %v3568_v37 }
 0xa27   :  { %v1769_v32 = vpop.xlane.xlu2 %1768 }
 0xa28   :  { %2053 = vrsqrt.f32 %v1780_v42  ;;  %v1773_v26 = vmul.f32 %v1763_v31, %v1763_v31  ;;  %v1771_v20 = vmul.f32 %v1769_v32, %v3568_v37  ;;  %v1620_v37 = vmul.f32 %v1609_v53, %v1596_v56 }
 0xa29   :  { %vm1788_vm11 = vweird.f32 %v1780_v42 }
 0xa2a   :  { %v1775_v58 = vsub.f32 %v1771_v20, %v1773_v26  ;;  %v1632_v8 = vmul.f32 %v3676_v62, %v1620_v37  ;;  %v1779_v62 = vsub.f32 %v3662_v33, %v1763_v31 }
 0xa2c   :  { %v1777_v46 = vmax.f32 %v1775_v58, 0.0  ;;  %v1644_v6 = vadd.f32 %v1637_v55, %v1632_v8 }
 0xa2e   :  { %v2054_v18 = vpop.eup %2053  ;;  %v1781_v17 = vadd.f32 1e-05, %v1777_v46 }
 0xa2f   :  { %v1783_v41 = vmul.f32 %v2054_v18, %v1780_v42  ;;  %vm1789_vm10 = vweird.f32 %v2054_v18 }
 0xa30   :  { %2055 = vrsqrt.f32 %v1781_v17  ;;  %vm1790_vm13 = vmor %vm1788_vm11, %vm1789_vm10  ;;  %vm1798_vm3 = vweird.f32 %v1781_v17 }
 0xa31   :  { %v1784_v36 = vmul.f32 %v2054_v18, %v1783_v41 }
 0xa33   :  { %v1785_v43 = vmul.f32 0.5, %v1784_v36 }
 0xa35   :  { %v1786_v13 = vsub.f32 1.5, %v1785_v43  ;;  %v1916_v43 = vld [vmem:[%s3753_s22 + $0x8] sm:$0xff] }
 0xa36   :  { %v2056_v61 = vpop.eup %2055  ;;  %1941 = vmatpush.msrb.mxu0 %v1916_v43 }
 0xa37   :  { %v1787_v4 = vmul.f32 %v2054_v18, %v1786_v13  ;;  %v1793_v28 = vmul.f32 %v2056_v61, %v1781_v17  ;;  %vm1799_vm2 = vweird.f32 %v2056_v61  ;;  %v1642_v15 = vpop.permute.xlu1 %1641  ;;  %v1915_v13 = vld [vmem:[%s3753_s22] sm:$0xff] }
 0xa38   :  { %vm1800_vm4 = vmor %vm1798_vm3, %vm1799_vm2  ;;  %v1645_v55 = vadd.f32 %v1642_v15, %v1633_v27  ;;  %1942 = vmatpush.msrb.mxu0 %v1915_v13 }
 0xa39   :  { %v1791_v7 = vsel %vm1790_vm13, %v2054_v18, %v1787_v4  ;;  %v1794_v59 = vmul.f32 %v2056_v61, %v1793_v28 }
 0xa3a   :  { %v1802_v54 = vmul.f32 %v1791_v7, %v1778_v21 }
 0xa3b   :  { %v1795_v44 = vmul.f32 0.5, %v1794_v59 }
 0xa3c   :  { %v1814_v24 = vmul.f32 %v1807_v16, %v1802_v54  ;;  %v1812_v16 = vpop.permute.xlu2 %1811 }
 0xa3d   :  { %v1796_v51 = vsub.f32 1.5, %v1795_v44 }
 0xa3e   :  { %v1826_v63 = vadd.f32 %v3680_v0, %v1814_v24  ;;  %v1824_v0 = vpop.permute.xlu0 %1823 }
 0xa3f   :  { %v1797_v1 = vmul.f32 %v2056_v61, %v1796_v51 }
 0xa40   :  { %v1828_v19 = vadd.f32 %v1826_v63, %v1644_v6 }
 0xa41   :  { %v1801_v11 = vsel %vm1800_vm4, %v2056_v61, %v1797_v1  ;;  %v2134_v61 = vmov 64.0  }
 0xa42   :  { %v1830_v30 = vmax.f32 %v1828_v19, 0.0  ;;  %v1803_v52 = vmul.f32 %v1801_v11, %v1779_v62  ;;  %2057 = vrcp.f32 %v2134_v61 }
 0xa44   :  { %1832 = vxpose.xlu2.b32.start [1/2] (short) %v1830_v30, 128  ;;  %v1815_v48 = vmul.f32 %v1812_v16, %v1803_v52 }
 0xa46   :  { %v1827_v34 = vadd.f32 %v1824_v0, %v1815_v48 }
 0xa48   :  { %v1829_v49 = vadd.f32 %v1827_v34, %v1645_v55  ;;  %v2058_v44 = vpop.eup %2057 }
 0xa49   :  { %v1907_v63 = vmul.f32 64.0, %v2058_v44  ;;  %vm1911_vm5 = vweird.f32 %v2058_v44 }
 0xa4a   :  { %v1831_v14 = vmax.f32 %v1829_v49, 0.0 }
 0xa4b   :  { %v1908_v11 = vsub.f32 1.0, %v1907_v63 }
 0xa4c   :  { %1833 = vxpose.xlu2.b32.end [2/2] (short) %v1831_v14, 128 }
 0xa4d   :  { %v1909_v48 = vmul.f32 %v2058_v44, %v1908_v11 }
 0xa4f   :  { %v1910_v34 = vadd.f32 %v2058_v44, %v1909_v48 }
 0xadd   :  { %v1848_v35 = vpop.trf.xlu2 }
 0xade   :  { %v1864_v33 = vsel %vm1722_vm8, %v1848_v35, 0.0 }
 0xae5   :  { %v1849_v38 = vpop.trf.xlu2 }
 0xae6   :  { %v1865_v22 = vsel %vm1722_vm8, %v1849_v38, 0.0  ;;  %v1912_v38 = vsel %vm1911_vm5, %v2058_v44, %v1910_v34 }
 0xae7   :  { %v1866_v5 = vadd.f32 %v1865_v22, %v1864_v33 }
 0xaed   :  { %v1850_v50 = vpop.trf.xlu2 }
 0xaee   :  { %v1867_v39 = vsel %vm1722_vm8, %v1850_v50, 0.0 }
 0xaef   :  { %v1868_v45 = vadd.f32 %v1867_v39, %v1866_v5  ;;  %v2034_v39 = vld [vmem:[%s3754_s23] ss:$0 sm:$0xff] }
 0xaf5   :  { %v1851_v42 = vpop.trf.xlu2 }
 0xaf6   :  { %v1869_v23 = vsel %vm1722_vm8, %v1851_v42, 0.0 }
 0xaf7   :  { %v1870_v31 = vadd.f32 %v1869_v23, %v1868_v45 }
 0xafd   :  { %v1852_v10 = vpop.trf.xlu2 }
 0xafe   :  { %v1871_v32 = vsel %vm1722_vm8, %v1852_v10, 0.0 }
 0xaff   :  { %v1872_v26 = vadd.f32 %v1871_v32, %v1870_v31 }
 0xb05   :  { %v1853_v20 = vpop.trf.xlu2 }
 0xb06   :  { %v1873_v29 = vsel %vm1722_vm8, %v1853_v20, 0.0 }
 0xb07   :  { %v1874_v60 = vadd.f32 %v1873_v29, %v1872_v26 }
 0xb0d   :  { %v1854_v58 = vpop.trf.xlu2 }
 0xb0e   :  { %v1875_v46 = vsel %vm1722_vm8, %v1854_v58, 0.0 }
 0xb0f   :  { %v1876_v18 = vadd.f32 %v1875_v46, %v1874_v60 }
 0xb15   :  { %v1855_v3 = vpop.trf.xlu2 }
 0xb16   :  { %v1877_v9 = vsel %vm1722_vm8, %v1855_v3, 0.0 }
 0xb17   :  { %v1878_v41 = vadd.f32 %v1877_v9, %v1876_v18 }
 0xb19   :  { %v1879_v7 = vrot.slane %v1878_v41, 4 }
 0xb1b   :  { %v1880_v51 = vadd.f32 %v1879_v7, %v1878_v41 }
 0xb1d   :  { %v1856_v17 = vpop.trf.xlu2  ;;  %v1881_v19 = vrot.slane %v1880_v51, 2 }
 0xb1e   :  { %v1885_v4 = vsel %vm1722_vm8, %v1856_v17, 0.0 }
 0xb1f   :  { %v1882_v16 = vadd.f32 %v1881_v19, %v1880_v51 }
 0xb21   :  { %v1883_v0 = vrot.slane %v1882_v16, 1 }
 0xb23   :  { %v1884_v14 = vadd.f32 %v1883_v0, %v1882_v16 }
 0xb25   :  { %v1857_v36 = vpop.trf.xlu2  ;;  %v1913_v22 = vmul.f32 %v1912_v38, %v1884_v14 }
 0xb26   :  { %v1886_v57 = vsel %vm1722_vm8, %v1857_v36, 0.0 }
 0xb27   :  { %v1887_v28 = vadd.f32 %v1886_v57, %v1885_v4 }
 0xb2d   :  { %v1858_v25 = vpop.trf.xlu2 }
 0xb2e   :  { %v1888_v21 = vsel %vm1722_vm8, %v1858_v25, 0.0 }
 0xb2f   :  { %v1889_v54 = vadd.f32 %v1888_v21, %v1887_v28 }
 0xb35   :  { %v1859_v53 = vpop.trf.xlu2 }
 0xb36   :  { %v1890_v8 = vsel %vm1722_vm8, %v1859_v53, 0.0 }
 0xb37   :  { %v1891_v24 = vadd.f32 %v1890_v8, %v1889_v54 }
 0xb3d   :  { %v1860_v56 = vpop.trf.xlu2 }
 0xb3e   :  { %v1892_v47 = vsel %vm1722_vm8, %v1860_v56, 0.0 }
 0xb3f   :  { %v1893_v12 = vadd.f32 %v1892_v47, %v1891_v24 }
 0xb45   :  { %v1861_v37 = vpop.trf.xlu2 }
 0xb46   :  { %v1894_v6 = vsel %vm1722_vm8, %v1861_v37, 0.0 }
 0xb47   :  { %v1895_v1 = vadd.f32 %v1894_v6, %v1893_v12 }
 0xb4d   :  { %v1862_v59 = vpop.trf.xlu2 }
 0xb4e   :  { %v1896_v2 = vsel %vm1722_vm8, %v1862_v59, 0.0 }
 0xb4f   :  { %v1897_v62 = vadd.f32 %v1896_v2, %v1895_v1 }
 0xb55   :  { %v1863_v40 = vpop.trf.xlu2 }
 0xb56   :  { %v1898_v30 = vsel %vm1722_vm8, %v1863_v40, 0.0 }
 0xb57   :  { %v1899_v52 = vadd.f32 %v1898_v30, %v1897_v62 }
 0xb59   :  { %v1900_v15 = vrot.slane %v1899_v52, 4 }
 0xb5b   :  { %v1901_v27 = vadd.f32 %v1900_v15, %v1899_v52 }
 0xb5d   :  { %v1902_v55 = vrot.slane %v1901_v27, 2 }
 0xb5f   :  { %v1903_v49 = vadd.f32 %v1902_v55, %v1901_v27 }
 0xb61   :  { %v1904_v35 = vrot.slane %v1903_v49, 1 }
 0xb63   :  { %v1905_v33 = vadd.f32 %v1904_v35, %v1903_v49 }
 0xb65   :  { %v1914_v5 = vmul.f32 %v1912_v38, %v1905_v33 }
 0xb67   :  { %v1924_v50 = vsel %vm1923_vm6, %v1914_v5, %v1913_v22 }
 0xb68   :  { %1999 = vmatmul.msk.f32.vlgmr.msrb.gmra.mxu0 %vm1722_vm8, %v1924_v50 }
 0xbe5   :  { %v1944_v45 = vpop.f32.mrf.mxu0 }
 0xbe6   :  { %v1945_v42 = vadd.f32 %v2034_v39, %v1944_v45 }
 0xbe8   :  { %1947 = vst [vmem:[#allocation5] sm:$0x3] %v1945_v42 }
 0xbe9   :  { %1958 = dma.vmem_to_hbm [thread:$0]  %s1954_s17, 32, %s1956_s26, [#allocation4]  }
 0xbea   :  { %2113 = dma.done.wait [#allocation4], 32  }
 0xbeb   :  { %2114 = vsyncadd [#allocation4], 4294967264 }
 0xbec   :  { %1963 = vsyncpa [#allocation3], 1 }
 0xbed   :  { %1964 = vsyncpa [#allocation4], 1 }

</bundles_post_ra>
